<compile_context>
chip_gen: v7x
topology: tpu7x:2x2x1
jax: 0.10.0
libtpu: 0.0.40
codegen_flags: <defaults>
</compile_context>

<pallas_src>
import functools

import numpy as np
import jax
import jax.numpy as jnp
from jax import lax
from jax.experimental import pallas as pl
from jax.experimental.pallas import tpu as pltpu

EPS = 1e-5
NEG_SLOPE = 0.01  # nn.LeakyReLU default

# Fixed enumeration orders shared by kernels and weight builders.
_CORNERS = tuple((i, j, k) for i in (0, 1) for j in (0, 1) for k in (0, 1))
_DELTAS = tuple((dd, dh, dw) for dd in (-1, 0, 1) for dh in (-1, 0, 1) for dw in (-1, 0, 1))


def _vmem_limit_bytes():
    """Generation-aware VMEM budget: ~half of physical (32 MiB on v7x, 64 MiB on v5e/v6e)."""
    try:
        cap = int(getattr(pltpu.get_tpu_info(), "vmem_capacity_bytes"))
        return max(16 * 1024 * 1024, min(cap // 2, 100 * 1024 * 1024))
    except Exception:
        return 32 * 1024 * 1024


def _lrelu(x):
    return jnp.where(x >= 0, x, NEG_SLOPE * x)


# ---------------------------------------------------------------------------
# Pallas kernels
# ---------------------------------------------------------------------------
def _idconv_pool_kernel(mask_ref, x_ref, w_ref, o_ref, *,
                        cout, ppad, guard, pw, hpwp, wp, inv_cnt):
    """Fused Conv3d(3,pad=1,bias=False) + InstanceNorm3d + MaxPool3d(2), one sample.

    mask_ref: (1, ppad) f32        -- 1.0 at interior voxels, 0.0 at the halo.
    x_ref:    (1, 8*Cin, pw) bf16  -- corner-decomposed, spatially padded, flat,
                                      guarded input (zeros at halo + guards).
    w_ref:    (8*Cout, 27*8*Cin) bf16 -- corner-grouped taps folded into K.
    o_ref:    (1, Cout, pw) f32    -- pooled + instance-normalized output, in the
                                      same guarded padded-flat layout (halos = 0).
    """
    # Tap-stacked RHS: 27 shifted slices stacked along the contraction axis.
    slices = []
    for (dd, dh, dw) in _DELTAS:
        delta = dd * hpwp + dh * wp + dw
        slices.append(x_ref[0, :, guard + delta:guard + delta + ppad])
    rhs = jnp.concatenate(slices, axis=0)                                # (27*8Cin, ppad)
    acc = jnp.dot(w_ref[...], rhs, preferred_element_type=jnp.float32)  # (8Cout, ppad)

    mask = mask_ref[0:1, :]                                              # (1, ppad)

    # InstanceNorm statistics over the FULL-resolution extent (= 8 corners * p8).
    row_sum = jnp.sum(acc * mask, axis=1, keepdims=True)                 # (8Cout, 1)
    ch_sum = row_sum[0:cout]
    for a in range(1, 8):
        ch_sum = ch_sum + row_sum[a * cout:(a + 1) * cout]
    mean = ch_sum * inv_cnt                                              # (Cout, 1)

    ssq = None
    pooled = None
    for a in range(8):
        g = acc[a * cout:(a + 1) * cout, :]                              # (Cout, ppad)
        gc = (g - mean) * mask
        part = jnp.sum(gc * gc, axis=1, keepdims=True)
        ssq = part if ssq is None else ssq + part
        pooled = g if pooled is None else jnp.maximum(pooled, g)
    inv_std = lax.rsqrt(ssq * inv_cnt + EPS)                             # biased variance

    # MaxPool(2) = max over the 8 corners; it commutes with the positive
    # per-channel affine, so pool raw conv outputs, then normalize.  The mask
    # restores zeros at halo positions so the output is directly consumable as
    # an already-padded input by the next conv.
    res = (pooled - mean) * inv_std * mask                               # (Cout, ppad)
    o_ref[0] = jnp.zeros((cout, pw), jnp.float32)
    o_ref[0, :, pl.ds(guard, ppad)] = res


def _double_conv_kernel(mask_ref, now_ref, up_ref, upp_ref, w1_ref, w2_ref,
                        o_ref, mid_ref, *, cout, ppad, guard, pw, hpwp, wp, inv_cnt):
    """Fused x = LReLU(now + up + upp); conv1(+IN+LReLU); conv2(+IN+LReLU), one sample.

    All activations use the guarded padded-flat layout (zeros at halo/guards), so
    every 3x3x3 tap is a clean shifted slice -- no boundary masks in the tap loop.
    """
    mask = mask_ref[0:1, :]                                              # (1, ppad)

    def conv_in_lrelu(src, w_ref_):                                      # src: (Cout, pw) f32
        slices = []
        for (dd, dh, dw) in _DELTAS:
            delta = dd * hpwp + dh * wp + dw
            slices.append(src[:, guard + delta:guard + delta + ppad])
        rhs = jnp.concatenate(slices, axis=0).astype(jnp.bfloat16)       # (27*Cout, ppad)
        acc = jnp.dot(w_ref_[...], rhs, preferred_element_type=jnp.float32)
        mean = jnp.sum(acc * mask, axis=1, keepdims=True) * inv_cnt
        cen = (acc - mean) * mask
        var = jnp.sum(cen * cen, axis=1, keepdims=True) * inv_cnt        # biased
        y = cen * lax.rsqrt(var + EPS)
        return _lrelu(y)                                                 # halos stay 0

    # halo/guard positions of all three inputs are zero -> stays zero after LReLU.
    xsum = _lrelu(now_ref[0] + up_ref[0] + upp_ref[0])                   # (Cout, pw) f32
    y1 = conv_in_lrelu(xsum, w1_ref)                                     # (Cout, ppad)

    # Re-embed x1 into the guarded layout in VMEM only (never hits HBM).
    mid_ref[...] = jnp.zeros((cout, pw), jnp.float32)
    mid_ref[:, pl.ds(guard, ppad)] = y1
    y2 = conv_in_lrelu(mid_ref[...], w2_ref)

    o_ref[0] = jnp.zeros((cout, pw), jnp.float32)
    o_ref[0, :, pl.ds(guard, ppad)] = y2


# ---------------------------------------------------------------------------
# Wrapper glue: layout plumbing + weight regrouping + pallas_call setup
# ---------------------------------------------------------------------------
def _corner_decompose(x):
    """(B, C, D, H, W) -> (B, 8*C, D/2, H/2, W/2): corner-major parity sub-lattices."""
    B, C, D, H, W = x.shape
    d2, h2, w2 = D // 2, H // 2, W // 2
    xr = x.reshape(B, C, d2, 2, h2, 2, w2, 2)
    xr = jnp.transpose(xr, (0, 3, 5, 7, 1, 2, 4, 6))                     # (B,2,2,2,C,d2,h2,w2)
    return xr.reshape(B, 8 * C, d2, h2, w2)


def _pad_flat(x5, guard, pw):
    """(B, R, d2, h2, w2) -> (B, R, pw): zero-pad spatially by 1, flatten, add flat guards."""
    B, R, d2, h2, w2 = x5.shape
    xp = jnp.pad(x5, ((0, 0), (0, 0), (1, 1), (1, 1), (1, 1)))
    ppad = (d2 + 2) * (h2 + 2) * (w2 + 2)
    xp = xp.reshape(B, R, ppad)
    return jnp.pad(xp, ((0, 0), (0, 0), (guard, pw - guard - ppad)))


def _interior_mask(d2, h2, w2):
    dp, hp, wp = d2 + 2, h2 + 2, w2 + 2
    m = np.zeros((dp, hp, wp), np.float32)
    m[1:-1, 1:-1, 1:-1] = 1.0
    return jnp.asarray(m.reshape(1, dp * hp * wp))


def _corner_tap_weights_2d(w):
    """PyTorch (Cout, Cin, 3,3,3) -> (8*Cout, 27*8*Cin) bf16 grouped by half-res shift."""
    cout, cin = int(w.shape[0]), int(w.shape[1])
    sel = np.zeros((27, 8, 8, 3, 3, 3), np.float32)
    for t, (dd, dh, dw) in enumerate(_DELTAS):
        for a, (i, j, k) in enumerate(_CORNERS):          # output corner parity
            for b, (ip, jp, kp) in enumerate(_CORNERS):   # input corner parity
                od = 2 * dd + ip - i
                oh = 2 * dh + jp - j
                ow = 2 * dw + kp - k
                if od in (-1, 0, 1) and oh in (-1, 0, 1) and ow in (-1, 0, 1):
                    sel[t, a, b, od + 1, oh + 1, ow + 1] = 1.0
    wg = jnp.einsum("tabpqr,oipqr->aotbi", jnp.asarray(sel), w)          # (8,Cout,27,8,Cin)
    return wg.reshape(8 * cout, 27 * 8 * cin).astype(jnp.bfloat16)


def _tap_weights_2d(w):
    """PyTorch (Cout, Cin, 3,3,3) -> (Cout, 27*Cin) bf16, tap order matching _DELTAS."""
    cout, cin = int(w.shape[0]), int(w.shape[1])
    return jnp.transpose(w, (0, 2, 3, 4, 1)).reshape(cout, 27 * cin).astype(jnp.bfloat16)


def _idconv_pool_call(x_full, w2d, mask, cout, guard, ppad, pw, hpwp, wp, p8, vmem):
    """One pallas_call of the fused id_conv + IN + MaxPool over a batch of full-res inputs."""
    x8 = _pad_flat(_corner_decompose(x_full).astype(jnp.bfloat16), guard, pw)   # (B,8Cin,pw)
    B, rows, _ = x8.shape
    kern = functools.partial(_idconv_pool_kernel, cout=cout, ppad=ppad, guard=guard,
                             pw=pw, hpwp=hpwp, wp=wp, inv_cnt=1.0 / (8.0 * p8))
    return pl.pallas_call(
        kern,
        out_shape=jax.ShapeDtypeStruct((B, cout, pw), jnp.float32),
        grid=(B,),
        in_specs=[
            pl.BlockSpec((1, ppad), lambda b: (0, 0)),
            pl.BlockSpec((1, rows, pw), lambda b: (b, 0, 0)),
            pl.BlockSpec(w2d.shape, lambda b: (0, 0)),
        ],
        out_specs=pl.BlockSpec((1, cout, pw), lambda b: (b, 0, 0)),
        compiler_params=pltpu.CompilerParams(
            dimension_semantics=("parallel",), vmem_limit_bytes=vmem),
    )(mask, x8, w2d)


@jax.jit
def share_combine3_forward(share_up, share_now, share_upp, w_id, w_c1, w_c2):
    """Inputs/outputs use PyTorch NCDHW layout.

    share_up, share_upp: (N, feat_in, D, H, W)       (D, H, W even -- MaxPool3d(2))
    share_now:           (N, feat_out, D/2, H/2, W/2)
    Note: self.alpha (nn.Parameter(zeros(1))) is unused in the reference forward.
    """
    N, _, D, H, W = share_up.shape
    cout = int(w_id.shape[0])
    d2, h2, w2 = D // 2, H // 2, W // 2
    dp, hp, wp = d2 + 2, h2 + 2, w2 + 2
    ppad = dp * hp * wp
    p8 = d2 * h2 * w2
    guard = hp * wp + wp + 1
    pw = ((ppad + 2 * guard + 127) // 128) * 128      # lane-dense buffer width

    mask = _interior_mask(d2, h2, w2)
    vmem = _vmem_limit_bytes()

    # ---- id_conv path (Conv + IN + fused 2x2x2 MaxPool), weights shared by up / upp.
    w_id2d = _corner_tap_weights_2d(w_id)
    pooled_up = _idconv_pool_call(share_up, w_id2d, mask, cout, guard, ppad, pw,
                                  hp * wp, wp, p8, vmem)                 # (N, Cout, pw)
    pooled_upp = _idconv_pool_call(share_upp, w_id2d, mask, cout, guard, ppad, pw,
                                   hp * wp, wp, p8, vmem)                # (N, Cout, pw)

    # ---- conv1 + conv2 fused: x = LReLU(now + up + upp); 2x (Conv + IN + LReLU).
    now_pad = _pad_flat(share_now, guard, pw)                            # (N, Cout, pw) f32
    w1_2d = _tap_weights_2d(w_c1)
    w2_2d = _tap_weights_2d(w_c2)

    kern_b = functools.partial(_double_conv_kernel, cout=cout, ppad=ppad, guard=guard,
                               pw=pw, hpwp=hp * wp, wp=wp, inv_cnt=1.0 / p8)
    x2_pad = pl.pallas_call(
        kern_b,
        out_shape=jax.ShapeDtypeStruct((N, cout, pw), jnp.float32),
        grid=(N,),
        in_specs=[
            pl.BlockSpec((1, ppad), lambda b: (0, 0)),
            pl.BlockSpec((1, cout, pw), lambda b: (b, 0, 0)),            # share_now
            pl.BlockSpec((1, cout, pw), lambda b: (b, 0, 0)),            # x_ori_up
            pl.BlockSpec((1, cout, pw), lambda b: (b, 0, 0)),            # x_ori_upp
            pl.BlockSpec(w1_2d.shape, lambda b: (0, 0)),
            pl.BlockSpec(w2_2d.shape, lambda b: (0, 0)),
        ],
        out_specs=pl.BlockSpec((1, cout, pw), lambda b: (b, 0, 0)),
        scratch_shapes=[pltpu.VMEM((cout, pw), jnp.float32)],
        compiler_params=pltpu.CompilerParams(
            dimension_semantics=("parallel",), vmem_limit_bytes=vmem),
    )(mask, now_pad, pooled_up, pooled_upp, w1_2d, w2_2d)

    def to_dense(ypad):
        yin = ypad[:, :, guard:guard + ppad].reshape(-1, cout, dp, hp, wp)
        return yin[:, :, 1:-1, 1:-1, 1:-1]

    return to_dense(x2_pad), to_dense(pooled_up), to_dense(pooled_upp)


# ---------------------------------------------------------------------------
# Pure-JAX reference (loose self-check only; bf16 MXU operands give ~% drift).
# ---------------------------------------------------------------------------
def _reference_forward(share_up, share_now, share_upp, w_id, w_c1, w_c2):
    def conv3(x, w):
        return jax.lax.conv_general_dilated(
            x, w, window_strides=(1, 1, 1), padding=((1, 1), (1, 1), (1, 1)),
            dimension_numbers=("NCDHW", "OIDHW", "NCDHW"))

    def inorm(x):
        mu = jnp.mean(x, axis=(2, 3, 4), keepdims=True)
        var = jnp.mean((x - mu) ** 2, axis=(2, 3, 4), keepdims=True)
        return (x - mu) / jnp.sqrt(var + EPS)

    def pool(x):
        n, c, d, h, w = x.shape
        return x.reshape(n, c, d // 2, 2, h // 2, 2, w // 2, 2).max(axis=(3, 5, 7))

    up = pool(inorm(conv3(share_up, w_id)))
    upp = pool(inorm(conv3(share_upp, w_id)))
    x = _lrelu(share_now + up + upp)
    x = _lrelu(inorm(conv3(x, w_c1)))
    x = _lrelu(inorm(conv3(x, w_c2)))
    return x, up, upp


# ---------------------------------------------------------------------------
if __name__ == "__main__":
    feat_in, feat_out = 4, 8
    N, D, H, W = 2, 8, 8, 8

    key = jax.random.PRNGKey(0)
    k1, k2, k3, k4, k5, k6 = jax.random.split(key, 6)

    share_up = jax.random.normal(k1, (N, feat_in, D, H, W), jnp.float32)
    share_upp = jax.random.normal(k2, (N, feat_in, D, H, W), jnp.float32)
    share_now = jax.random.normal(k3, (N, feat_out, D // 2, H // 2, W // 2), jnp.float32)

    # Deterministic synthetic parameters (PyTorch Conv3d weight layout, bias=False).
    w_id = 0.1 * jax.random.normal(k4, (feat_out, feat_in, 3, 3, 3), jnp.float32)
    w_c1 = 0.1 * jax.random.normal(k5, (feat_out, feat_out, 3, 3, 3), jnp.float32)
    w_c2 = 0.1 * jax.random.normal(k6, (feat_out, feat_out, 3, 3, 3), jnp.float32)

    x, x_ori_up, x_ori_upp = share_combine3_forward(
        share_up, share_now, share_upp, w_id, w_c1, w_c2)
    jax.block_until_ready((x, x_ori_up, x_ori_upp))

    half = (N, feat_out, D // 2, H // 2, W // 2)
    assert x.shape == half and x_ori_up.shape == half and x_ori_upp.shape == half

    # Loose numerical self-check against the pure-JAX reference (bf16 matmul path).
    xr, upr, uppr = _reference_forward(share_up, share_now, share_upp, w_id, w_c1, w_c2)
    np.testing.assert_allclose(np.asarray(x_ori_up), np.asarray(upr), rtol=5e-2, atol=5e-2)
    np.testing.assert_allclose(np.asarray(x_ori_upp), np.asarray(uppr), rtol=5e-2, atol=5e-2)
    np.testing.assert_allclose(np.asarray(x), np.asarray(xr), rtol=8e-2, atol=8e-2)

    print("KERNEL_OK")
</pallas_src>

<mosaic_0001>
module attributes {stable_mosaic.version = 11 : i64} {
  func.func @_idconv_pool_kernel(%arg0: i32, %arg1: memref<1x216xf32, #tpu.memory_space<vmem>>, %arg2: memref<1x32x384xbf16, #tpu.memory_space<vmem>>, %arg3: memref<64x864xbf16, #tpu.memory_space<vmem>>, %arg4: memref<1x8x384xf32, #tpu.memory_space<vmem>>) attributes {dimension_semantics = [#tpu.dimension_semantics<parallel>], iteration_bounds = array<i64: 2>, scalar_prefetch = 0 : i64, scratch_operands = 0 : i64, tpu.core_type = #tpu.core_type<tc>, window_params = [{pipeline_mode = #tpu.pipeline_mode<synchronous>, transform_indices = @transform_0, window_bounds = array<i64: 1, 216>}, {transform_indices = @transform_1, window_bounds = array<i64: 1, 32, 384>}, {pipeline_mode = #tpu.pipeline_mode<synchronous>, transform_indices = @transform_2, window_bounds = array<i64: 64, 864>}, {transform_indices = @transform_3, window_bounds = array<i64: 1, 8, 384>}]} {
    %c0 = arith.constant 0 : index
    %c0_0 = arith.constant 0 : index
    %c0_1 = arith.constant 0 : index
    %0 = vector.load %arg2[%c0, %c0_0, %c0_1] : memref<1x32x384xbf16, #tpu.memory_space<vmem>>, vector<1x32x216xbf16>
    %1 = vector.shape_cast %0 : vector<1x32x216xbf16> to vector<32x216xbf16>
    %c0_2 = arith.constant 0 : index
    %c0_3 = arith.constant 0 : index
    %c1 = arith.constant 1 : index
    %2 = vector.load %arg2[%c0_2, %c0_3, %c1] : memref<1x32x384xbf16, #tpu.memory_space<vmem>>, vector<1x32x216xbf16>
    %3 = vector.shape_cast %2 : vector<1x32x216xbf16> to vector<32x216xbf16>
    %c0_4 = arith.constant 0 : index
    %c0_5 = arith.constant 0 : index
    %c2 = arith.constant 2 : index
    %4 = vector.load %arg2[%c0_4, %c0_5, %c2] : memref<1x32x384xbf16, #tpu.memory_space<vmem>>, vector<1x32x216xbf16>
    %5 = vector.shape_cast %4 : vector<1x32x216xbf16> to vector<32x216xbf16>
    %c0_6 = arith.constant 0 : index
    %c0_7 = arith.constant 0 : index
    %c6 = arith.constant 6 : index
    %6 = vector.load %arg2[%c0_6, %c0_7, %c6] : memref<1x32x384xbf16, #tpu.memory_space<vmem>>, vector<1x32x216xbf16>
    %7 = vector.shape_cast %6 : vector<1x32x216xbf16> to vector<32x216xbf16>
    %c0_8 = arith.constant 0 : index
    %c0_9 = arith.constant 0 : index
    %c7 = arith.constant 7 : index
    %8 = vector.load %arg2[%c0_8, %c0_9, %c7] : memref<1x32x384xbf16, #tpu.memory_space<vmem>>, vector<1x32x216xbf16>
    %9 = vector.shape_cast %8 : vector<1x32x216xbf16> to vector<32x216xbf16>
    %c0_10 = arith.constant 0 : index
    %c0_11 = arith.constant 0 : index
    %c8 = arith.constant 8 : index
    %10 = vector.load %arg2[%c0_10, %c0_11, %c8] : memref<1x32x384xbf16, #tpu.memory_space<vmem>>, vector<1x32x216xbf16>
    %11 = vector.shape_cast %10 : vector<1x32x216xbf16> to vector<32x216xbf16>
    %c0_12 = arith.constant 0 : index
    %c0_13 = arith.constant 0 : index
    %c12 = arith.constant 12 : index
    %12 = vector.load %arg2[%c0_12, %c0_13, %c12] : memref<1x32x384xbf16, #tpu.memory_space<vmem>>, vector<1x32x216xbf16>
    %13 = vector.shape_cast %12 : vector<1x32x216xbf16> to vector<32x216xbf16>
    %c0_14 = arith.constant 0 : index
    %c0_15 = arith.constant 0 : index
    %c13 = arith.constant 13 : index
    %14 = vector.load %arg2[%c0_14, %c0_15, %c13] : memref<1x32x384xbf16, #tpu.memory_space<vmem>>, vector<1x32x216xbf16>
    %15 = vector.shape_cast %14 : vector<1x32x216xbf16> to vector<32x216xbf16>
    %c0_16 = arith.constant 0 : index
    %c0_17 = arith.constant 0 : index
    %c14 = arith.constant 14 : index
    %16 = vector.load %arg2[%c0_16, %c0_17, %c14] : memref<1x32x384xbf16, #tpu.memory_space<vmem>>, vector<1x32x216xbf16>
    %17 = vector.shape_cast %16 : vector<1x32x216xbf16> to vector<32x216xbf16>
    %c0_18 = arith.constant 0 : index
    %c0_19 = arith.constant 0 : index
    %c36 = arith.constant 36 : index
    %18 = vector.load %arg2[%c0_18, %c0_19, %c36] : memref<1x32x384xbf16, #tpu.memory_space<vmem>>, vector<1x32x216xbf16>
    %19 = vector.shape_cast %18 : vector<1x32x216xbf16> to vector<32x216xbf16>
    %c0_20 = arith.constant 0 : index
    %c0_21 = arith.constant 0 : index
    %c37 = arith.constant 37 : index
    %20 = vector.load %arg2[%c0_20, %c0_21, %c37] : memref<1x32x384xbf16, #tpu.memory_space<vmem>>, vector<1x32x216xbf16>
    %21 = vector.shape_cast %20 : vector<1x32x216xbf16> to vector<32x216xbf16>
    %c0_22 = arith.constant 0 : index
    %c0_23 = arith.constant 0 : index
    %c38 = arith.constant 38 : index
    %22 = vector.load %arg2[%c0_22, %c0_23, %c38] : memref<1x32x384xbf16, #tpu.memory_space<vmem>>, vector<1x32x216xbf16>
    %23 = vector.shape_cast %22 : vector<1x32x216xbf16> to vector<32x216xbf16>
    %c0_24 = arith.constant 0 : index
    %c0_25 = arith.constant 0 : index
    %c42 = arith.constant 42 : index
    %24 = vector.load %arg2[%c0_24, %c0_25, %c42] : memref<1x32x384xbf16, #tpu.memory_space<vmem>>, vector<1x32x216xbf16>
    %25 = vector.shape_cast %24 : vector<1x32x216xbf16> to vector<32x216xbf16>
    %c0_26 = arith.constant 0 : index
    %c0_27 = arith.constant 0 : index
    %c43 = arith.constant 43 : index
    %26 = vector.load %arg2[%c0_26, %c0_27, %c43] : memref<1x32x384xbf16, #tpu.memory_space<vmem>>, vector<1x32x216xbf16>
    %27 = vector.shape_cast %26 : vector<1x32x216xbf16> to vector<32x216xbf16>
    %c0_28 = arith.constant 0 : index
    %c0_29 = arith.constant 0 : index
    %c44 = arith.constant 44 : index
    %28 = vector.load %arg2[%c0_28, %c0_29, %c44] : memref<1x32x384xbf16, #tpu.memory_space<vmem>>, vector<1x32x216xbf16>
    %29 = vector.shape_cast %28 : vector<1x32x216xbf16> to vector<32x216xbf16>
    %c0_30 = arith.constant 0 : index
    %c0_31 = arith.constant 0 : index
    %c48 = arith.constant 48 : index
    %30 = vector.load %arg2[%c0_30, %c0_31, %c48] : memref<1x32x384xbf16, #tpu.memory_space<vmem>>, vector<1x32x216xbf16>
    %31 = vector.shape_cast %30 : vector<1x32x216xbf16> to vector<32x216xbf16>
    %c0_32 = arith.constant 0 : index
    %c0_33 = arith.constant 0 : index
    %c49 = arith.constant 49 : index
    %32 = vector.load %arg2[%c0_32, %c0_33, %c49] : memref<1x32x384xbf16, #tpu.memory_space<vmem>>, vector<1x32x216xbf16>
    %33 = vector.shape_cast %32 : vector<1x32x216xbf16> to vector<32x216xbf16>
    %c0_34 = arith.constant 0 : index
    %c0_35 = arith.constant 0 : index
    %c50 = arith.constant 50 : index
    %34 = vector.load %arg2[%c0_34, %c0_35, %c50] : memref<1x32x384xbf16, #tpu.memory_space<vmem>>, vector<1x32x216xbf16>
    %35 = vector.shape_cast %34 : vector<1x32x216xbf16> to vector<32x216xbf16>
    %c0_36 = arith.constant 0 : index
    %c0_37 = arith.constant 0 : index
    %c72 = arith.constant 72 : index
    %36 = vector.load %arg2[%c0_36, %c0_37, %c72] : memref<1x32x384xbf16, #tpu.memory_space<vmem>>, vector<1x32x216xbf16>
    %37 = vector.shape_cast %36 : vector<1x32x216xbf16> to vector<32x216xbf16>
    %c0_38 = arith.constant 0 : index
    %c0_39 = arith.constant 0 : index
    %c73 = arith.constant 73 : index
    %38 = vector.load %arg2[%c0_38, %c0_39, %c73] : memref<1x32x384xbf16, #tpu.memory_space<vmem>>, vector<1x32x216xbf16>
    %39 = vector.shape_cast %38 : vector<1x32x216xbf16> to vector<32x216xbf16>
    %c0_40 = arith.constant 0 : index
    %c0_41 = arith.constant 0 : index
    %c74 = arith.constant 74 : index
    %40 = vector.load %arg2[%c0_40, %c0_41, %c74] : memref<1x32x384xbf16, #tpu.memory_space<vmem>>, vector<1x32x216xbf16>
    %41 = vector.shape_cast %40 : vector<1x32x216xbf16> to vector<32x216xbf16>
    %c0_42 = arith.constant 0 : index
    %c0_43 = arith.constant 0 : index
    %c78 = arith.constant 78 : index
    %42 = vector.load %arg2[%c0_42, %c0_43, %c78] : memref<1x32x384xbf16, #tpu.memory_space<vmem>>, vector<1x32x216xbf16>
    %43 = vector.shape_cast %42 : vector<1x32x216xbf16> to vector<32x216xbf16>
    %c0_44 = arith.constant 0 : index
    %c0_45 = arith.constant 0 : index
    %c79 = arith.constant 79 : index
    %44 = vector.load %arg2[%c0_44, %c0_45, %c79] : memref<1x32x384xbf16, #tpu.memory_space<vmem>>, vector<1x32x216xbf16>
    %45 = vector.shape_cast %44 : vector<1x32x216xbf16> to vector<32x216xbf16>
    %c0_46 = arith.constant 0 : index
    %c0_47 = arith.constant 0 : index
    %c80 = arith.constant 80 : index
    %46 = vector.load %arg2[%c0_46, %c0_47, %c80] : memref<1x32x384xbf16, #tpu.memory_space<vmem>>, vector<1x32x216xbf16>
    %47 = vector.shape_cast %46 : vector<1x32x216xbf16> to vector<32x216xbf16>
    %c0_48 = arith.constant 0 : index
    %c0_49 = arith.constant 0 : index
    %c84 = arith.constant 84 : index
    %48 = vector.load %arg2[%c0_48, %c0_49, %c84] : memref<1x32x384xbf16, #tpu.memory_space<vmem>>, vector<1x32x216xbf16>
    %49 = vector.shape_cast %48 : vector<1x32x216xbf16> to vector<32x216xbf16>
    %c0_50 = arith.constant 0 : index
    %c0_51 = arith.constant 0 : index
    %c85 = arith.constant 85 : index
    %50 = vector.load %arg2[%c0_50, %c0_51, %c85] : memref<1x32x384xbf16, #tpu.memory_space<vmem>>, vector<1x32x216xbf16>
    %51 = vector.shape_cast %50 : vector<1x32x216xbf16> to vector<32x216xbf16>
    %c0_52 = arith.constant 0 : index
    %c0_53 = arith.constant 0 : index
    %c86 = arith.constant 86 : index
    %52 = vector.load %arg2[%c0_52, %c0_53, %c86] : memref<1x32x384xbf16, #tpu.memory_space<vmem>>, vector<1x32x216xbf16>
    %53 = vector.shape_cast %52 : vector<1x32x216xbf16> to vector<32x216xbf16>
    %54 = tpu.concatenate %1, %3, %5, %7, %9, %11, %13, %15, %17, %19, %21, %23, %25, %27, %29, %31 in 0 : vector<32x216xbf16>, vector<32x216xbf16>, vector<32x216xbf16>, vector<32x216xbf16>, vector<32x216xbf16>, vector<32x216xbf16>, vector<32x216xbf16>, vector<32x216xbf16>, vector<32x216xbf16>, vector<32x216xbf16>, vector<32x216xbf16>, vector<32x216xbf16>, vector<32x216xbf16>, vector<32x216xbf16>, vector<32x216xbf16>, vector<32x216xbf16> -> vector<512x216xbf16>
    %55 = tpu.concatenate %33, %35, %37, %39, %41, %43, %45, %47, %49, %51, %53 in 0 : vector<32x216xbf16>, vector<32x216xbf16>, vector<32x216xbf16>, vector<32x216xbf16>, vector<32x216xbf16>, vector<32x216xbf16>, vector<32x216xbf16>, vector<32x216xbf16>, vector<32x216xbf16>, vector<32x216xbf16>, vector<32x216xbf16> -> vector<352x216xbf16>
    %56 = tpu.concatenate %54, %55 in 0 : vector<512x216xbf16>, vector<352x216xbf16> -> vector<864x216xbf16>
    %c0_54 = arith.constant 0 : index
    %c0_55 = arith.constant 0 : index
    %57 = vector.load %arg3[%c0_54, %c0_55] : memref<64x864xbf16, #tpu.memory_space<vmem>>, vector<64x864xbf16>
    %cst = arith.constant dense<0.000000e+00> : vector<64x216xf32>
    %58 = tpu.matmul %57, %56, %cst {dimension_numbers = #tpu.dot_dimension_numbers<[1], [0], [0], [1], [0, 0, 1, 1], [], []>} : vector<64x864xbf16>, vector<864x216xbf16>, vector<64x216xf32> -> vector<64x216xf32>
    %c0_56 = arith.constant 0 : index
    %c0_57 = arith.constant 0 : index
    %59 = vector.load %arg1[%c0_56, %c0_57] : memref<1x216xf32, #tpu.memory_space<vmem>>, vector<1x216xf32>
    %60 = vector.broadcast %59 : vector<1x216xf32> to vector<64x216xf32>
    %61 = arith.mulf %58, %60 : vector<64x216xf32>
    %cst_58 = arith.constant dense<0.000000e+00> : vector<64xf32>
    %62 = vector.multi_reduction <add>, %61, %cst_58 [1] : vector<64x216xf32> to vector<64xf32>
    %63 = vector.shape_cast %62 : vector<64xf32> to vector<64x1xf32>
    %64 = vector.extract_strided_slice %63 {offsets = [0, 0], sizes = [8, 1], strides = [1, 1]} : vector<64x1xf32> to vector<8x1xf32>
    %65 = vector.extract_strided_slice %63 {offsets = [8, 0], sizes = [8, 1], strides = [1, 1]} : vector<64x1xf32> to vector<8x1xf32>
    %66 = arith.addf %64, %65 : vector<8x1xf32>
    %67 = vector.extract_strided_slice %63 {offsets = [16, 0], sizes = [8, 1], strides = [1, 1]} : vector<64x1xf32> to vector<8x1xf32>
    %68 = arith.addf %66, %67 : vector<8x1xf32>
    %69 = vector.extract_strided_slice %63 {offsets = [24, 0], sizes = [8, 1], strides = [1, 1]} : vector<64x1xf32> to vector<8x1xf32>
    %70 = arith.addf %68, %69 : vector<8x1xf32>
    %71 = vector.extract_strided_slice %63 {offsets = [32, 0], sizes = [8, 1], strides = [1, 1]} : vector<64x1xf32> to vector<8x1xf32>
    %72 = arith.addf %70, %71 : vector<8x1xf32>
    %73 = vector.extract_strided_slice %63 {offsets = [40, 0], sizes = [8, 1], strides = [1, 1]} : vector<64x1xf32> to vector<8x1xf32>
    %74 = arith.addf %72, %73 : vector<8x1xf32>
    %75 = vector.extract_strided_slice %63 {offsets = [48, 0], sizes = [8, 1], strides = [1, 1]} : vector<64x1xf32> to vector<8x1xf32>
    %76 = arith.addf %74, %75 : vector<8x1xf32>
    %77 = vector.extract_strided_slice %63 {offsets = [56, 0], sizes = [8, 1], strides = [1, 1]} : vector<64x1xf32> to vector<8x1xf32>
    %78 = arith.addf %76, %77 : vector<8x1xf32>
    %cst_59 = arith.constant 0.001953125 : f32
    %79 = vector.broadcast %cst_59 : f32 to vector<8x1xf32>
    %80 = arith.mulf %78, %79 : vector<8x1xf32>
    %81 = vector.extract_strided_slice %58 {offsets = [0, 0], sizes = [8, 216], strides = [1, 1]} : vector<64x216xf32> to vector<8x216xf32>
    %82 = vector.broadcast %80 : vector<8x1xf32> to vector<8x216xf32>
    %83 = arith.subf %81, %82 : vector<8x216xf32>
    %84 = vector.broadcast %59 : vector<1x216xf32> to vector<8x216xf32>
    %85 = arith.mulf %83, %84 : vector<8x216xf32>
    %86 = arith.mulf %85, %85 : vector<8x216xf32>
    %cst_60 = arith.constant dense<0.000000e+00> : vector<8xf32>
    %87 = vector.multi_reduction <add>, %86, %cst_60 [1] : vector<8x216xf32> to vector<8xf32>
    %88 = vector.shape_cast %87 : vector<8xf32> to vector<8x1xf32>
    %89 = vector.extract_strided_slice %58 {offsets = [8, 0], sizes = [8, 216], strides = [1, 1]} : vector<64x216xf32> to vector<8x216xf32>
    %90 = vector.broadcast %80 : vector<8x1xf32> to vector<8x216xf32>
    %91 = arith.subf %89, %90 : vector<8x216xf32>
    %92 = vector.broadcast %59 : vector<1x216xf32> to vector<8x216xf32>
    %93 = arith.mulf %91, %92 : vector<8x216xf32>
    %94 = arith.mulf %93, %93 : vector<8x216xf32>
    %cst_61 = arith.constant dense<0.000000e+00> : vector<8xf32>
    %95 = vector.multi_reduction <add>, %94, %cst_61 [1] : vector<8x216xf32> to vector<8xf32>
    %96 = vector.shape_cast %95 : vector<8xf32> to vector<8x1xf32>
    %97 = arith.addf %88, %96 : vector<8x1xf32>
    %98 = arith.maximumf %81, %89 : vector<8x216xf32>
    %99 = vector.extract_strided_slice %58 {offsets = [16, 0], sizes = [8, 216], strides = [1, 1]} : vector<64x216xf32> to vector<8x216xf32>
    %100 = vector.broadcast %80 : vector<8x1xf32> to vector<8x216xf32>
    %101 = arith.subf %99, %100 : vector<8x216xf32>
    %102 = vector.broadcast %59 : vector<1x216xf32> to vector<8x216xf32>
    %103 = arith.mulf %101, %102 : vector<8x216xf32>
    %104 = arith.mulf %103, %103 : vector<8x216xf32>
    %cst_62 = arith.constant dense<0.000000e+00> : vector<8xf32>
    %105 = vector.multi_reduction <add>, %104, %cst_62 [1] : vector<8x216xf32> to vector<8xf32>
    %106 = vector.shape_cast %105 : vector<8xf32> to vector<8x1xf32>
    %107 = arith.addf %97, %106 : vector<8x1xf32>
    %108 = arith.maximumf %98, %99 : vector<8x216xf32>
    %109 = vector.extract_strided_slice %58 {offsets = [24, 0], sizes = [8, 216], strides = [1, 1]} : vector<64x216xf32> to vector<8x216xf32>
    %110 = vector.broadcast %80 : vector<8x1xf32> to vector<8x216xf32>
    %111 = arith.subf %109, %110 : vector<8x216xf32>
    %112 = vector.broadcast %59 : vector<1x216xf32> to vector<8x216xf32>
    %113 = arith.mulf %111, %112 : vector<8x216xf32>
    %114 = arith.mulf %113, %113 : vector<8x216xf32>
    %cst_63 = arith.constant dense<0.000000e+00> : vector<8xf32>
    %115 = vector.multi_reduction <add>, %114, %cst_63 [1] : vector<8x216xf32> to vector<8xf32>
    %116 = vector.shape_cast %115 : vector<8xf32> to vector<8x1xf32>
    %117 = arith.addf %107, %116 : vector<8x1xf32>
    %118 = arith.maximumf %108, %109 : vector<8x216xf32>
    %119 = vector.extract_strided_slice %58 {offsets = [32, 0], sizes = [8, 216], strides = [1, 1]} : vector<64x216xf32> to vector<8x216xf32>
    %120 = vector.broadcast %80 : vector<8x1xf32> to vector<8x216xf32>
    %121 = arith.subf %119, %120 : vector<8x216xf32>
    %122 = vector.broadcast %59 : vector<1x216xf32> to vector<8x216xf32>
    %123 = arith.mulf %121, %122 : vector<8x216xf32>
    %124 = arith.mulf %123, %123 : vector<8x216xf32>
    %cst_64 = arith.constant dense<0.000000e+00> : vector<8xf32>
    %125 = vector.multi_reduction <add>, %124, %cst_64 [1] : vector<8x216xf32> to vector<8xf32>
    %126 = vector.shape_cast %125 : vector<8xf32> to vector<8x1xf32>
    %127 = arith.addf %117, %126 : vector<8x1xf32>
    %128 = arith.maximumf %118, %119 : vector<8x216xf32>
    %129 = vector.extract_strided_slice %58 {offsets = [40, 0], sizes = [8, 216], strides = [1, 1]} : vector<64x216xf32> to vector<8x216xf32>
    %130 = vector.broadcast %80 : vector<8x1xf32> to vector<8x216xf32>
    %131 = arith.subf %129, %130 : vector<8x216xf32>
    %132 = vector.broadcast %59 : vector<1x216xf32> to vector<8x216xf32>
    %133 = arith.mulf %131, %132 : vector<8x216xf32>
    %134 = arith.mulf %133, %133 : vector<8x216xf32>
    %cst_65 = arith.constant dense<0.000000e+00> : vector<8xf32>
    %135 = vector.multi_reduction <add>, %134, %cst_65 [1] : vector<8x216xf32> to vector<8xf32>
    %136 = vector.shape_cast %135 : vector<8xf32> to vector<8x1xf32>
    %137 = arith.addf %127, %136 : vector<8x1xf32>
    %138 = arith.maximumf %128, %129 : vector<8x216xf32>
    %139 = vector.extract_strided_slice %58 {offsets = [48, 0], sizes = [8, 216], strides = [1, 1]} : vector<64x216xf32> to vector<8x216xf32>
    %140 = vector.broadcast %80 : vector<8x1xf32> to vector<8x216xf32>
    %141 = arith.subf %139, %140 : vector<8x216xf32>
    %142 = vector.broadcast %59 : vector<1x216xf32> to vector<8x216xf32>
    %143 = arith.mulf %141, %142 : vector<8x216xf32>
    %144 = arith.mulf %143, %143 : vector<8x216xf32>
    %cst_66 = arith.constant dense<0.000000e+00> : vector<8xf32>
    %145 = vector.multi_reduction <add>, %144, %cst_66 [1] : vector<8x216xf32> to vector<8xf32>
    %146 = vector.shape_cast %145 : vector<8xf32> to vector<8x1xf32>
    %147 = arith.addf %137, %146 : vector<8x1xf32>
    %148 = arith.maximumf %138, %139 : vector<8x216xf32>
    %149 = vector.extract_strided_slice %58 {offsets = [56, 0], sizes = [8, 216], strides = [1, 1]} : vector<64x216xf32> to vector<8x216xf32>
    %150 = vector.broadcast %80 : vector<8x1xf32> to vector<8x216xf32>
    %151 = arith.subf %149, %150 : vector<8x216xf32>
    %152 = vector.broadcast %59 : vector<1x216xf32> to vector<8x216xf32>
    %153 = arith.mulf %151, %152 : vector<8x216xf32>
    %154 = arith.mulf %153, %153 : vector<8x216xf32>
    %cst_67 = arith.constant dense<0.000000e+00> : vector<8xf32>
    %155 = vector.multi_reduction <add>, %154, %cst_67 [1] : vector<8x216xf32> to vector<8xf32>
    %156 = vector.shape_cast %155 : vector<8xf32> to vector<8x1xf32>
    %157 = arith.addf %147, %156 : vector<8x1xf32>
    %158 = arith.maximumf %148, %149 : vector<8x216xf32>
    %cst_68 = arith.constant 0.001953125 : f32
    %159 = vector.broadcast %cst_68 : f32 to vector<8x1xf32>
    %160 = arith.mulf %157, %159 : vector<8x1xf32>
    %cst_69 = arith.constant 9.99999974E-6 : f32
    %161 = vector.broadcast %cst_69 : f32 to vector<8x1xf32>
    %162 = arith.addf %160, %161 : vector<8x1xf32>
    %163 = math.rsqrt %162 : vector<8x1xf32>
    %164 = vector.broadcast %80 : vector<8x1xf32> to vector<8x216xf32>
    %165 = arith.subf %158, %164 : vector<8x216xf32>
    %166 = vector.broadcast %163 : vector<8x1xf32> to vector<8x216xf32>
    %167 = arith.mulf %165, %166 : vector<8x216xf32>
    %168 = vector.broadcast %59 : vector<1x216xf32> to vector<8x216xf32>
    %169 = arith.mulf %167, %168 : vector<8x216xf32>
    %cst_70 = arith.constant 0.000000e+00 : f32
    %170 = vector.broadcast %cst_70 : f32 to vector<8x384xf32>
    %c0_71 = arith.constant 0 : index
    %c0_72 = arith.constant 0 : index
    %c0_73 = arith.constant 0 : index
    %171 = vector.load %arg4[%c0_71, %c0_72, %c0_73] : memref<1x8x384xf32, #tpu.memory_space<vmem>>, vector<1x8x384xf32>
    %172 = vector.shape_cast %171 : vector<1x8x384xf32> to vector<8x384xf32>
    %173 = vector.shape_cast %170 : vector<8x384xf32> to vector<1x8x384xf32>
    tpu.vector_store %arg4[%c0_71, %c0_72, %c0_73], %173 {strides = array<i32>} : memref<1x8x384xf32, #tpu.memory_space<vmem>>, vector<1x8x384xf32>,
    %c0_74 = arith.constant 0 : index
    %c0_75 = arith.constant 0 : index
    %c43_76 = arith.constant 43 : index
    %174 = vector.load %arg4[%c0_74, %c0_75, %c43_76] : memref<1x8x384xf32, #tpu.memory_space<vmem>>, vector<1x8x216xf32>
    %175 = vector.shape_cast %174 : vector<1x8x216xf32> to vector<8x216xf32>
    %176 = vector.shape_cast %169 : vector<8x216xf32> to vector<1x8x216xf32>
    tpu.vector_store %arg4[%c0_74, %c0_75, %c43_76], %176 {strides = array<i32>} : memref<1x8x384xf32, #tpu.memory_space<vmem>>, vector<1x8x216xf32>,
    return
  }
  func.func @transform_0(%arg0: i32) -> (i32, i32) {
    %c0_i32 = arith.constant 0 : i32
    %c0_i32_0 = arith.constant 0 : i32
    %c0_i32_1 = arith.constant 0 : i32
    return %c0_i32, %c0_i32_0 : i32, i32
  }
  func.func @transform_1(%arg0: i32) -> (i32, i32, i32) {
    %c0_i32 = arith.constant 0 : i32
    %c0_i32_0 = arith.constant 0 : i32
    %c0_i32_1 = arith.constant 0 : i32
    return %arg0, %c0_i32, %c0_i32_0 : i32, i32, i32
  }
  func.func @transform_2(%arg0: i32) -> (i32, i32) {
    %c0_i32 = arith.constant 0 : i32
    %c0_i32_0 = arith.constant 0 : i32
    %c0_i32_1 = arith.constant 0 : i32
    return %c0_i32, %c0_i32_0 : i32, i32
  }
  func.func @transform_3(%arg0: i32) -> (i32, i32, i32) {
    %c0_i32 = arith.constant 0 : i32
    %c0_i32_0 = arith.constant 0 : i32
    %c0_i32_1 = arith.constant 0 : i32
    return %arg0, %c0_i32, %c0_i32_0 : i32, i32, i32
  }
}

module attributes {stable_mosaic.version = 11 : i64} {
  func.func @_double_conv_kernel(%arg0: i32, %arg1: memref<1x216xf32, #tpu.memory_space<vmem>>, %arg2: memref<1x8x384xf32, #tpu.memory_space<vmem>>, %arg3: memref<1x8x384xf32, #tpu.memory_space<vmem>>, %arg4: memref<1x8x384xf32, #tpu.memory_space<vmem>>, %arg5: memref<8x216xbf16, #tpu.memory_space<vmem>>, %arg6: memref<8x216xbf16, #tpu.memory_space<vmem>>, %arg7: memref<1x8x384xf32, #tpu.memory_space<vmem>>, %arg8: memref<8x384xf32, #tpu.memory_space<vmem>>) attributes {dimension_semantics = [#tpu.dimension_semantics<parallel>], iteration_bounds = array<i64: 2>, scalar_prefetch = 0 : i64, scratch_operands = 1 : i64, tpu.core_type = #tpu.core_type<tc>, window_params = [{pipeline_mode = #tpu.pipeline_mode<synchronous>, transform_indices = @transform_0, window_bounds = array<i64: 1, 216>}, {transform_indices = @transform_1, window_bounds = array<i64: 1, 8, 384>}, {transform_indices = @transform_2, window_bounds = array<i64: 1, 8, 384>}, {transform_indices = @transform_3, window_bounds = array<i64: 1, 8, 384>}, {pipeline_mode = #tpu.pipeline_mode<synchronous>, transform_indices = @transform_4, window_bounds = array<i64: 8, 216>}, {pipeline_mode = #tpu.pipeline_mode<synchronous>, transform_indices = @transform_5, window_bounds = array<i64: 8, 216>}, {transform_indices = @transform_6, window_bounds = array<i64: 1, 8, 384>}]} {
    %c0 = arith.constant 0 : index
    %c0_0 = arith.constant 0 : index
    %0 = vector.load %arg1[%c0, %c0_0] : memref<1x216xf32, #tpu.memory_space<vmem>>, vector<1x216xf32>
    %c0_1 = arith.constant 0 : index
    %c0_2 = arith.constant 0 : index
    %c0_3 = arith.constant 0 : index
    %1 = vector.load %arg2[%c0_1, %c0_2, %c0_3] : memref<1x8x384xf32, #tpu.memory_space<vmem>>, vector<1x8x384xf32>
    %2 = vector.shape_cast %1 : vector<1x8x384xf32> to vector<8x384xf32>
    %c0_4 = arith.constant 0 : index
    %c0_5 = arith.constant 0 : index
    %c0_6 = arith.constant 0 : index
    %3 = vector.load %arg3[%c0_4, %c0_5, %c0_6] : memref<1x8x384xf32, #tpu.memory_space<vmem>>, vector<1x8x384xf32>
    %4 = vector.shape_cast %3 : vector<1x8x384xf32> to vector<8x384xf32>
    %5 = arith.addf %2, %4 : vector<8x384xf32>
    %c0_7 = arith.constant 0 : index
    %c0_8 = arith.constant 0 : index
    %c0_9 = arith.constant 0 : index
    %6 = vector.load %arg4[%c0_7, %c0_8, %c0_9] : memref<1x8x384xf32, #tpu.memory_space<vmem>>, vector<1x8x384xf32>
    %7 = vector.shape_cast %6 : vector<1x8x384xf32> to vector<8x384xf32>
    %8 = arith.addf %5, %7 : vector<8x384xf32>
    %cst = arith.constant 0.000000e+00 : f32
    %9 = vector.broadcast %cst : f32 to vector<8x384xf32>
    %10 = arith.cmpf oge, %8, %9 : vector<8x384xf32>
    %cst_10 = arith.constant 0.00999999977 : f32
    %11 = vector.broadcast %cst_10 : f32 to vector<8x384xf32>
    %12 = arith.mulf %11, %8 : vector<8x384xf32>
    %13 = arith.select %10, %8, %12 : vector<8x384xi1>, vector<8x384xf32>
    %14 = vector.extract_strided_slice %13 {offsets = [0, 0], sizes = [8, 216], strides = [1, 1]} : vector<8x384xf32> to vector<8x216xf32>
    %15 = vector.extract_strided_slice %13 {offsets = [0, 1], sizes = [8, 216], strides = [1, 1]} : vector<8x384xf32> to vector<8x216xf32>
    %16 = vector.extract_strided_slice %13 {offsets = [0, 2], sizes = [8, 216], strides = [1, 1]} : vector<8x384xf32> to vector<8x216xf32>
    %17 = vector.extract_strided_slice %13 {offsets = [0, 6], sizes = [8, 216], strides = [1, 1]} : vector<8x384xf32> to vector<8x216xf32>
    %18 = vector.extract_strided_slice %13 {offsets = [0, 7], sizes = [8, 216], strides = [1, 1]} : vector<8x384xf32> to vector<8x216xf32>
    %19 = vector.extract_strided_slice %13 {offsets = [0, 8], sizes = [8, 216], strides = [1, 1]} : vector<8x384xf32> to vector<8x216xf32>
    %20 = vector.extract_strided_slice %13 {offsets = [0, 12], sizes = [8, 216], strides = [1, 1]} : vector<8x384xf32> to vector<8x216xf32>
    %21 = vector.extract_strided_slice %13 {offsets = [0, 13], sizes = [8, 216], strides = [1, 1]} : vector<8x384xf32> to vector<8x216xf32>
    %22 = vector.extract_strided_slice %13 {offsets = [0, 14], sizes = [8, 216], strides = [1, 1]} : vector<8x384xf32> to vector<8x216xf32>
    %23 = vector.extract_strided_slice %13 {offsets = [0, 36], sizes = [8, 216], strides = [1, 1]} : vector<8x384xf32> to vector<8x216xf32>
    %24 = vector.extract_strided_slice %13 {offsets = [0, 37], sizes = [8, 216], strides = [1, 1]} : vector<8x384xf32> to vector<8x216xf32>
    %25 = vector.extract_strided_slice %13 {offsets = [0, 38], sizes = [8, 216], strides = [1, 1]} : vector<8x384xf32> to vector<8x216xf32>
    %26 = vector.extract_strided_slice %13 {offsets = [0, 42], sizes = [8, 216], strides = [1, 1]} : vector<8x384xf32> to vector<8x216xf32>
    %27 = vector.extract_strided_slice %13 {offsets = [0, 43], sizes = [8, 216], strides = [1, 1]} : vector<8x384xf32> to vector<8x216xf32>
    %28 = vector.extract_strided_slice %13 {offsets = [0, 44], sizes = [8, 216], strides = [1, 1]} : vector<8x384xf32> to vector<8x216xf32>
    %29 = vector.extract_strided_slice %13 {offsets = [0, 48], sizes = [8, 216], strides = [1, 1]} : vector<8x384xf32> to vector<8x216xf32>
    %30 = vector.extract_strided_slice %13 {offsets = [0, 49], sizes = [8, 216], strides = [1, 1]} : vector<8x384xf32> to vector<8x216xf32>
    %31 = vector.extract_strided_slice %13 {offsets = [0, 50], sizes = [8, 216], strides = [1, 1]} : vector<8x384xf32> to vector<8x216xf32>
    %32 = vector.extract_strided_slice %13 {offsets = [0, 72], sizes = [8, 216], strides = [1, 1]} : vector<8x384xf32> to vector<8x216xf32>
    %33 = vector.extract_strided_slice %13 {offsets = [0, 73], sizes = [8, 216], strides = [1, 1]} : vector<8x384xf32> to vector<8x216xf32>
    %34 = vector.extract_strided_slice %13 {offsets = [0, 74], sizes = [8, 216], strides = [1, 1]} : vector<8x384xf32> to vector<8x216xf32>
    %35 = vector.extract_strided_slice %13 {offsets = [0, 78], sizes = [8, 216], strides = [1, 1]} : vector<8x384xf32> to vector<8x216xf32>
    %36 = vector.extract_strided_slice %13 {offsets = [0, 79], sizes = [8, 216], strides = [1, 1]} : vector<8x384xf32> to vector<8x216xf32>
    %37 = vector.extract_strided_slice %13 {offsets = [0, 80], sizes = [8, 216], strides = [1, 1]} : vector<8x384xf32> to vector<8x216xf32>
    %38 = vector.extract_strided_slice %13 {offsets = [0, 84], sizes = [8, 216], strides = [1, 1]} : vector<8x384xf32> to vector<8x216xf32>
    %39 = vector.extract_strided_slice %13 {offsets = [0, 85], sizes = [8, 216], strides = [1, 1]} : vector<8x384xf32> to vector<8x216xf32>
    %40 = vector.extract_strided_slice %13 {offsets = [0, 86], sizes = [8, 216], strides = [1, 1]} : vector<8x384xf32> to vector<8x216xf32>
    %41 = tpu.concatenate %14, %15, %16, %17, %18, %19, %20, %21, %22, %23, %24, %25, %26, %27, %28, %29 in 0 : vector<8x216xf32>, vector<8x216xf32>, vector<8x216xf32>, vector<8x216xf32>, vector<8x216xf32>, vector<8x216xf32>, vector<8x216xf32>, vector<8x216xf32>, vector<8x216xf32>, vector<8x216xf32>, vector<8x216xf32>, vector<8x216xf32>, vector<8x216xf32>, vector<8x216xf32>, vector<8x216xf32>, vector<8x216xf32> -> vector<128x216xf32>
    %42 = tpu.concatenate %30, %31, %32, %33, %34, %35, %36, %37, %38, %39, %40 in 0 : vector<8x216xf32>, vector<8x216xf32>, vector<8x216xf32>, vector<8x216xf32>, vector<8x216xf32>, vector<8x216xf32>, vector<8x216xf32>, vector<8x216xf32>, vector<8x216xf32>, vector<8x216xf32>, vector<8x216xf32> -> vector<88x216xf32>
    %43 = tpu.concatenate %41, %42 in 0 : vector<128x216xf32>, vector<88x216xf32> -> vector<216x216xf32>
    %44 = arith.truncf %43 : vector<216x216xf32> to vector<216x216xbf16>
    %c0_11 = arith.constant 0 : index
    %c0_12 = arith.constant 0 : index
    %45 = vector.load %arg5[%c0_11, %c0_12] : memref<8x216xbf16, #tpu.memory_space<vmem>>, vector<8x216xbf16>
    %cst_13 = arith.constant dense<0.000000e+00> : vector<8x216xf32>
    %46 = tpu.matmul %45, %44, %cst_13 {dimension_numbers = #tpu.dot_dimension_numbers<[1], [0], [0], [1], [0, 0, 1, 1], [], []>} : vector<8x216xbf16>, vector<216x216xbf16>, vector<8x216xf32> -> vector<8x216xf32>
    %47 = vector.broadcast %0 : vector<1x216xf32> to vector<8x216xf32>
    %48 = arith.mulf %46, %47 : vector<8x216xf32>
    %cst_14 = arith.constant dense<0.000000e+00> : vector<8xf32>
    %49 = vector.multi_reduction <add>, %48, %cst_14 [1] : vector<8x216xf32> to vector<8xf32>
    %50 = vector.shape_cast %49 : vector<8xf32> to vector<8x1xf32>
    %cst_15 = arith.constant 1.562500e-02 : f32
    %51 = vector.broadcast %cst_15 : f32 to vector<8x1xf32>
    %52 = arith.mulf %50, %51 : vector<8x1xf32>
    %53 = vector.broadcast %52 : vector<8x1xf32> to vector<8x216xf32>
    %54 = arith.subf %46, %53 : vector<8x216xf32>
    %55 = vector.broadcast %0 : vector<1x216xf32> to vector<8x216xf32>
    %56 = arith.mulf %54, %55 : vector<8x216xf32>
    %57 = arith.mulf %56, %56 : vector<8x216xf32>
    %cst_16 = arith.constant dense<0.000000e+00> : vector<8xf32>
    %58 = vector.multi_reduction <add>, %57, %cst_16 [1] : vector<8x216xf32> to vector<8xf32>
    %59 = vector.shape_cast %58 : vector<8xf32> to vector<8x1xf32>
    %cst_17 = arith.constant 1.562500e-02 : f32
    %60 = vector.broadcast %cst_17 : f32 to vector<8x1xf32>
    %61 = arith.mulf %59, %60 : vector<8x1xf32>
    %cst_18 = arith.constant 9.99999974E-6 : f32
    %62 = vector.broadcast %cst_18 : f32 to vector<8x1xf32>
    %63 = arith.addf %61, %62 : vector<8x1xf32>
    %64 = math.rsqrt %63 : vector<8x1xf32>
    %65 = vector.broadcast %64 : vector<8x1xf32> to vector<8x216xf32>
    %66 = arith.mulf %56, %65 : vector<8x216xf32>
    %cst_19 = arith.constant 0.000000e+00 : f32
    %67 = vector.broadcast %cst_19 : f32 to vector<8x216xf32>
    %68 = arith.cmpf oge, %66, %67 : vector<8x216xf32>
    %cst_20 = arith.constant 0.00999999977 : f32
    %69 = vector.broadcast %cst_20 : f32 to vector<8x216xf32>
    %70 = arith.mulf %69, %66 : vector<8x216xf32>
    %71 = arith.select %68, %66, %70 : vector<8x216xi1>, vector<8x216xf32>
    %cst_21 = arith.constant 0.000000e+00 : f32
    %72 = vector.broadcast %cst_21 : f32 to vector<8x384xf32>
    %c0_22 = arith.constant 0 : index
    %c0_23 = arith.constant 0 : index
    %73 = vector.load %arg8[%c0_22, %c0_23] : memref<8x384xf32, #tpu.memory_space<vmem>>, vector<8x384xf32>
    tpu.vector_store %arg8[%c0_22, %c0_23], %72 {strides = array<i32>} : memref<8x384xf32, #tpu.memory_space<vmem>>, vector<8x384xf32>,
    %c0_24 = arith.constant 0 : index
    %c43 = arith.constant 43 : index
    %74 = vector.load %arg8[%c0_24, %c43] : memref<8x384xf32, #tpu.memory_space<vmem>>, vector<8x216xf32>
    tpu.vector_store %arg8[%c0_24, %c43], %71 {strides = array<i32>} : memref<8x384xf32, #tpu.memory_space<vmem>>, vector<8x216xf32>,
    %c0_25 = arith.constant 0 : index
    %c0_26 = arith.constant 0 : index
    %75 = vector.load %arg8[%c0_25, %c0_26] : memref<8x384xf32, #tpu.memory_space<vmem>>, vector<8x384xf32>
    %76 = vector.extract_strided_slice %75 {offsets = [0, 0], sizes = [8, 216], strides = [1, 1]} : vector<8x384xf32> to vector<8x216xf32>
    %77 = vector.extract_strided_slice %75 {offsets = [0, 1], sizes = [8, 216], strides = [1, 1]} : vector<8x384xf32> to vector<8x216xf32>
    %78 = vector.extract_strided_slice %75 {offsets = [0, 2], sizes = [8, 216], strides = [1, 1]} : vector<8x384xf32> to vector<8x216xf32>
    %79 = vector.extract_strided_slice %75 {offsets = [0, 6], sizes = [8, 216], strides = [1, 1]} : vector<8x384xf32> to vector<8x216xf32>
    %80 = vector.extract_strided_slice %75 {offsets = [0, 7], sizes = [8, 216], strides = [1, 1]} : vector<8x384xf32> to vector<8x216xf32>
    %81 = vector.extract_strided_slice %75 {offsets = [0, 8], sizes = [8, 216], strides = [1, 1]} : vector<8x384xf32> to vector<8x216xf32>
    %82 = vector.extract_strided_slice %75 {offsets = [0, 12], sizes = [8, 216], strides = [1, 1]} : vector<8x384xf32> to vector<8x216xf32>
    %83 = vector.extract_strided_slice %75 {offsets = [0, 13], sizes = [8, 216], strides = [1, 1]} : vector<8x384xf32> to vector<8x216xf32>
    %84 = vector.extract_strided_slice %75 {offsets = [0, 14], sizes = [8, 216], strides = [1, 1]} : vector<8x384xf32> to vector<8x216xf32>
    %85 = vector.extract_strided_slice %75 {offsets = [0, 36], sizes = [8, 216], strides = [1, 1]} : vector<8x384xf32> to vector<8x216xf32>
    %86 = vector.extract_strided_slice %75 {offsets = [0, 37], sizes = [8, 216], strides = [1, 1]} : vector<8x384xf32> to vector<8x216xf32>
    %87 = vector.extract_strided_slice %75 {offsets = [0, 38], sizes = [8, 216], strides = [1, 1]} : vector<8x384xf32> to vector<8x216xf32>
    %88 = vector.extract_strided_slice %75 {offsets = [0, 42], sizes = [8, 216], strides = [1, 1]} : vector<8x384xf32> to vector<8x216xf32>
    %89 = vector.extract_strided_slice %75 {offsets = [0, 43], sizes = [8, 216], strides = [1, 1]} : vector<8x384xf32> to vector<8x216xf32>
    %90 = vector.extract_strided_slice %75 {offsets = [0, 44], sizes = [8, 216], strides = [1, 1]} : vector<8x384xf32> to vector<8x216xf32>
    %91 = vector.extract_strided_slice %75 {offsets = [0, 48], sizes = [8, 216], strides = [1, 1]} : vector<8x384xf32> to vector<8x216xf32>
    %92 = vector.extract_strided_slice %75 {offsets = [0, 49], sizes = [8, 216], strides = [1, 1]} : vector<8x384xf32> to vector<8x216xf32>
    %93 = vector.extract_strided_slice %75 {offsets = [0, 50], sizes = [8, 216], strides = [1, 1]} : vector<8x384xf32> to vector<8x216xf32>
    %94 = vector.extract_strided_slice %75 {offsets = [0, 72], sizes = [8, 216], strides = [1, 1]} : vector<8x384xf32> to vector<8x216xf32>
    %95 = vector.extract_strided_slice %75 {offsets = [0, 73], sizes = [8, 216], strides = [1, 1]} : vector<8x384xf32> to vector<8x216xf32>
    %96 = vector.extract_strided_slice %75 {offsets = [0, 74], sizes = [8, 216], strides = [1, 1]} : vector<8x384xf32> to vector<8x216xf32>
    %97 = vector.extract_strided_slice %75 {offsets = [0, 78], sizes = [8, 216], strides = [1, 1]} : vector<8x384xf32> to vector<8x216xf32>
    %98 = vector.extract_strided_slice %75 {offsets = [0, 79], sizes = [8, 216], strides = [1, 1]} : vector<8x384xf32> to vector<8x216xf32>
    %99 = vector.extract_strided_slice %75 {offsets = [0, 80], sizes = [8, 216], strides = [1, 1]} : vector<8x384xf32> to vector<8x216xf32>
    %100 = vector.extract_strided_slice %75 {offsets = [0, 84], sizes = [8, 216], strides = [1, 1]} : vector<8x384xf32> to vector<8x216xf32>
    %101 = vector.extract_strided_slice %75 {offsets = [0, 85], sizes = [8, 216], strides = [1, 1]} : vector<8x384xf32> to vector<8x216xf32>
    %102 = vector.extract_strided_slice %75 {offsets = [0, 86], sizes = [8, 216], strides = [1, 1]} : vector<8x384xf32> to vector<8x216xf32>
    %103 = tpu.concatenate %76, %77, %78, %79, %80, %81, %82, %83, %84, %85, %86, %87, %88, %89, %90, %91 in 0 : vector<8x216xf32>, vector<8x216xf32>, vector<8x216xf32>, vector<8x216xf32>, vector<8x216xf32>, vector<8x216xf32>, vector<8x216xf32>, vector<8x216xf32>, vector<8x216xf32>, vector<8x216xf32>, vector<8x216xf32>, vector<8x216xf32>, vector<8x216xf32>, vector<8x216xf32>, vector<8x216xf32>, vector<8x216xf32> -> vector<128x216xf32>
    %104 = tpu.concatenate %92, %93, %94, %95, %96, %97, %98, %99, %100, %101, %102 in 0 : vector<8x216xf32>, vector<8x216xf32>, vector<8x216xf32>, vector<8x216xf32>, vector<8x216xf32>, vector<8x216xf32>, vector<8x216xf32>, vector<8x216xf32>, vector<8x216xf32>, vector<8x216xf32>, vector<8x216xf32> -> vector<88x216xf32>
    %105 = tpu.concatenate %103, %104 in 0 : vector<128x216xf32>, vector<88x216xf32> -> vector<216x216xf32>
    %106 = arith.truncf %105 : vector<216x216xf32> to vector<216x216xbf16>
    %c0_27 = arith.constant 0 : index
    %c0_28 = arith.constant 0 : index
    %107 = vector.load %arg6[%c0_27, %c0_28] : memref<8x216xbf16, #tpu.memory_space<vmem>>, vector<8x216xbf16>
    %cst_29 = arith.constant dense<0.000000e+00> : vector<8x216xf32>
    %108 = tpu.matmul %107, %106, %cst_29 {dimension_numbers = #tpu.dot_dimension_numbers<[1], [0], [0], [1], [0, 0, 1, 1], [], []>} : vector<8x216xbf16>, vector<216x216xbf16>, vector<8x216xf32> -> vector<8x216xf32>
    %109 = vector.broadcast %0 : vector<1x216xf32> to vector<8x216xf32>
    %110 = arith.mulf %108, %109 : vector<8x216xf32>
    %cst_30 = arith.constant dense<0.000000e+00> : vector<8xf32>
    %111 = vector.multi_reduction <add>, %110, %cst_30 [1] : vector<8x216xf32> to vector<8xf32>
    %112 = vector.shape_cast %111 : vector<8xf32> to vector<8x1xf32>
    %cst_31 = arith.constant 1.562500e-02 : f32
    %113 = vector.broadcast %cst_31 : f32 to vector<8x1xf32>
    %114 = arith.mulf %112, %113 : vector<8x1xf32>
    %115 = vector.broadcast %114 : vector<8x1xf32> to vector<8x216xf32>
    %116 = arith.subf %108, %115 : vector<8x216xf32>
    %117 = vector.broadcast %0 : vector<1x216xf32> to vector<8x216xf32>
    %118 = arith.mulf %116, %117 : vector<8x216xf32>
    %119 = arith.mulf %118, %118 : vector<8x216xf32>
    %cst_32 = arith.constant dense<0.000000e+00> : vector<8xf32>
    %120 = vector.multi_reduction <add>, %119, %cst_32 [1] : vector<8x216xf32> to vector<8xf32>
    %121 = vector.shape_cast %120 : vector<8xf32> to vector<8x1xf32>
    %cst_33 = arith.constant 1.562500e-02 : f32
    %122 = vector.broadcast %cst_33 : f32 to vector<8x1xf32>
    %123 = arith.mulf %121, %122 : vector<8x1xf32>
    %cst_34 = arith.constant 9.99999974E-6 : f32
    %124 = vector.broadcast %cst_34 : f32 to vector<8x1xf32>
    %125 = arith.addf %123, %124 : vector<8x1xf32>
    %126 = math.rsqrt %125 : vector<8x1xf32>
    %127 = vector.broadcast %126 : vector<8x1xf32> to vector<8x216xf32>
    %128 = arith.mulf %118, %127 : vector<8x216xf32>
    %cst_35 = arith.constant 0.000000e+00 : f32
    %129 = vector.broadcast %cst_35 : f32 to vector<8x216xf32>
    %130 = arith.cmpf oge, %128, %129 : vector<8x216xf32>
    %cst_36 = arith.constant 0.00999999977 : f32
    %131 = vector.broadcast %cst_36 : f32 to vector<8x216xf32>
    %132 = arith.mulf %131, %128 : vector<8x216xf32>
    %133 = arith.select %130, %128, %132 : vector<8x216xi1>, vector<8x216xf32>
    %cst_37 = arith.constant 0.000000e+00 : f32
    %134 = vector.broadcast %cst_37 : f32 to vector<8x384xf32>
    %c0_38 = arith.constant 0 : index
    %c0_39 = arith.constant 0 : index
    %c0_40 = arith.constant 0 : index
    %135 = vector.load %arg7[%c0_38, %c0_39, %c0_40] : memref<1x8x384xf32, #tpu.memory_space<vmem>>, vector<1x8x384xf32>
    %136 = vector.shape_cast %135 : vector<1x8x384xf32> to vector<8x384xf32>
    %137 = vector.shape_cast %134 : vector<8x384xf32> to vector<1x8x384xf32>
    tpu.vector_store %arg7[%c0_38, %c0_39, %c0_40], %137 {strides = array<i32>} : memref<1x8x384xf32, #tpu.memory_space<vmem>>, vector<1x8x384xf32>,
    %c0_41 = arith.constant 0 : index
    %c0_42 = arith.constant 0 : index
    %c43_43 = arith.constant 43 : index
    %138 = vector.load %arg7[%c0_41, %c0_42, %c43_43] : memref<1x8x384xf32, #tpu.memory_space<vmem>>, vector<1x8x216xf32>
    %139 = vector.shape_cast %138 : vector<1x8x216xf32> to vector<8x216xf32>
    %140 = vector.shape_cast %133 : vector<8x216xf32> to vector<1x8x216xf32>
    tpu.vector_store %arg7[%c0_41, %c0_42, %c43_43], %140 {strides = array<i32>} : memref<1x8x384xf32, #tpu.memory_space<vmem>>, vector<1x8x216xf32>,
    return
  }
  func.func @transform_0(%arg0: i32) -> (i32, i32) {
    %c0_i32 = arith.constant 0 : i32
    %c0_i32_0 = arith.constant 0 : i32
    %c0_i32_1 = arith.constant 0 : i32
    return %c0_i32, %c0_i32_0 : i32, i32
  }
  func.func @transform_1(%arg0: i32) -> (i32, i32, i32) {
    %c0_i32 = arith.constant 0 : i32
    %c0_i32_0 = arith.constant 0 : i32
    %c0_i32_1 = arith.constant 0 : i32
    return %arg0, %c0_i32, %c0_i32_0 : i32, i32, i32
  }
  func.func @transform_2(%arg0: i32) -> (i32, i32, i32) {
    %c0_i32 = arith.constant 0 : i32
    %c0_i32_0 = arith.constant 0 : i32
    %c0_i32_1 = arith.constant 0 : i32
    return %arg0, %c0_i32, %c0_i32_0 : i32, i32, i32
  }
  func.func @transform_3(%arg0: i32) -> (i32, i32, i32) {
    %c0_i32 = arith.constant 0 : i32
    %c0_i32_0 = arith.constant 0 : i32
    %c0_i32_1 = arith.constant 0 : i32
    return %arg0, %c0_i32, %c0_i32_0 : i32, i32, i32
  }
  func.func @transform_4(%arg0: i32) -> (i32, i32) {
    %c0_i32 = arith.constant 0 : i32
    %c0_i32_0 = arith.constant 0 : i32
    %c0_i32_1 = arith.constant 0 : i32
    return %c0_i32, %c0_i32_0 : i32, i32
  }
  func.func @transform_5(%arg0: i32) -> (i32, i32) {
    %c0_i32 = arith.constant 0 : i32
    %c0_i32_0 = arith.constant 0 : i32
    %c0_i32_1 = arith.constant 0 : i32
    return %c0_i32, %c0_i32_0 : i32, i32
  }
  func.func @transform_6(%arg0: i32) -> (i32, i32, i32) {
    %c0_i32 = arith.constant 0 : i32
    %c0_i32_0 = arith.constant 0 : i32
    %c0_i32_1 = arith.constant 0 : i32
    return %arg0, %c0_i32, %c0_i32_0 : i32, i32, i32
  }
}

</mosaic_0001>

<bundles_post_ra>
// kernel: share_combine3_forward.3
= control target key start
LH: loop header
LB: loop body
LE: loop exit
PB: predicated region body
PF: predicated region fallthrough
CT: control target
= control target key end

     0   :  { %s1842_s12 = smov 0   ;;  %s2704_s0 = inlined_call_operand.vmem [shape: f32[1,216], index: 0, kind: input, shape index: {}]   ;;  %s2705_s1 = inlined_call_operand.vmem [shape: bf16[2,32,384], index: 1, kind: input, shape index: {}]   ;;  %s2706_s2 = inlined_call_operand.vmem [shape: bf16[64,864], index: 2, kind: input, shape index: {}]   ;;  %s2707_s3 = inlined_call_operand.vmem [shape: f32[2,8,384], index: 3, kind: output, shape index: {}]  }
   0x1 LB: > { %s1597_s13 = sadd.s32 4294967295, %s1794_s12   ;;  %p1601_p0 = scmp.ge.s32.totalorder %s1794_s12, 1  ;;  %s1794_s12 = sphi %s1842_s12, %s13_s12  }
   0x2   : > { %p137_p1 = scmp.lt.s32.totalorder %s1794_s12, 3 }
   0x4   : > { %p138_p2 = pnand %p1601_p0, %p137_p1 }
   0x5   : > { %p161_p3 = scmp.lt.s32.totalorder (!%p138_p2), %s1597_s13, 1  ;;  %s1796_s18 = smov (!%p138_p2), 127   ;;  %vm212_vm0 = vcmask (!%p138_p2), 1039360   ;;  %vm507_vm1 = vcmask (!%p138_p2), 859136   ;;  %vm227_vm2 = vcmask (!%p138_p2), 1031168   ;;  %vm524_vm3 = vcmask (!%p138_p2), 850944  }
   0x6   : > { %141 = sbr.rel (%p138_p2) target bundleno = 1218 (0x4c2), region = 32  ;;  %s1797_s19 = smov (!%p138_p2), 105   ;;  %vm242_vm4 = vcmask (!%p138_p2), 998400   ;;  %vm541_vm5 = vcmask (!%p138_p2), 842752   ;;  %vm778_vm6 = vcmask (!%p138_p2), 646144   ;;  %vm257_vm7 = vcmask (!%p138_p2), 990208  }
   0x7   : > { %s1798_s20 = smov (!%p138_p2), 104   ;;  %s1799_s21 = smov (!%p138_p2), 103   ;;  %vm558_vm8 = vcmask (!%p138_p2), 809984   ;;  %vm272_vm9 = vcmask (!%p138_p2), 982016   ;;  %vm575_vm10 = vcmask (!%p138_p2), 801792   ;;  %vm287_vm11 = vcmask (!%p138_p2), 949248  }
   0x8   : > { %s1800_s22 = smov (!%p138_p2), 99   ;;  %s1801_s23 = smov (!%p138_p2), 126   ;;  %vm592_vm12 = vcmask (!%p138_p2), 793600   ;;  %vm302_vm13 = vcmask (!%p138_p2), 941056   ;;  %vm609_vm14 = vcmask (!%p138_p2), 760832   ;;  %vm317_vm15 = vcmask (!%p138_p2), 932864  }
   0x9   : > { %s1802_s24 = smov (!%p138_p2), 98   ;;  %s1803_s25 = smov (!%p138_p2), 122  }
   0xa   : > { %s1804_s26 = smov (!%p138_p2), 97   ;;  %s1805_s27 = smov (!%p138_p2), 79  }
   0xb   : > { %s1806_s28 = smov (!%p138_p2), 121   ;;  %s1807_s29 = smov (!%p138_p2), 120  }
   0xc   : > { %s1808_s30 = smov (!%p138_p2), 93   ;;  %s1809_s4 = smov (!%p138_p2), 116  }
   0xd   : > { %s2709_s13 = smov (!%p161_p3, %s1597_s13), 1  ;;  %s1810_s5 = smov 92  }
   0xe   : > { %s1696_s14 = smul.u32 48, %s2709_s13  ;;  %s1811_s6 = smov 115  }
   0xf   : > { %s1812_s7 = smov 91   ;;  %s1813_s10 = smov 114  }
  0x10   : > { %s1856_s17 = scalar_lea.vmem %s2705_s1, %s1696_s14  ;;  %s1814_s11 = smov 90  }
  0x11   : > { %v1859_v0 = vld [vmem:[%s1856_s17 + $0x4] ss:$12 sps:$4 sm:$0xff]   ;;  %v1862_v1 = vld [vmem:[%s1856_s17] ss:$12 sps:$4 sm:$0xff]   ;;  %v1867_v2 = vld [vmem:[%s1856_s17 + $0x8] ss:$12 sps:$4 sm:$0xff]  }
  0x12   : > { %481 = vrot.lane.b32.xlu0 %v1859_v0, %s1796_s18  ;;  %1052 = vmatprep.subr.bf16.mxu1 %v1859_v0  ;;  %v1873_v3 = vld [vmem:[%s1856_s17 + $0x1c] ss:$12 sps:$4 sm:$0xff]   ;;  %v1877_v4 = vld [vmem:[%s1856_s17 + $0x20] ss:$12 sps:$4 sm:$0xff]   ;;  %v1880_v5 = vld [vmem:[%s1856_s17 + $0x18] ss:$12 sps:$4 sm:$0xff]  }
  0x13   : > { %479 = vrot.lane.b32.xlu1 %v1862_v1, %s1796_s18  ;;  %1053 = vmatpush1.bf16.msra.mxu1 %v1862_v1  ;;  %s1815_s14 = smov 86  }
  0x14   : > { %1054 = vmatprep.subr.bf16.mxu1 %v1873_v3 }
  0x16   : > { %483 = vrot.lane.b32.xlu0 %v1867_v2, %s1796_s18 }
  0x17   : > { %487 = vrot.lane.b32.xlu1 %v1873_v3, %s1796_s18  ;;  %1055 = vmatpush1.bf16.msra.mxu1 %v1880_v5 }
  0x1a   : > { %489 = vrot.lane.b32.xlu0 %v1877_v4, %s1796_s18 }
  0x1b   : > { %485 = vrot.lane.b32.xlu1 %v1880_v5, %s1796_s18 }
  0x1e   : > { %497 = vrot.lane.b32.xlu0 %v1859_v0, %s1797_s19 }
  0x1f   : > { %499 = vrot.lane.b32.xlu1 %v1867_v2, %s1797_s19 }
  0x22   : > { %495 = vrot.lane.b32.xlu0 %v1862_v1, %s1797_s19 }
  0x23   : > { %503 = vrot.lane.b32.xlu1 %v1873_v3, %s1797_s19 }
  0x26   : > { %505 = vrot.lane.b32.xlu0 %v1877_v4, %s1797_s19 }
  0x27   : > { %501 = vrot.lane.b32.xlu1 %v1880_v5, %s1797_s19 }
  0x2a   : > { %514 = vrot.lane.b32.xlu0 %v1859_v0, %s1798_s20 }
  0x2b   : > { %516 = vrot.lane.b32.xlu1 %v1867_v2, %s1798_s20 }
  0x2e   : > { %512 = vrot.lane.b32.xlu0 %v1862_v1, %s1798_s20 }
  0x2f   : > { %520 = vrot.lane.b32.xlu1 %v1873_v3, %s1798_s20 }
  0x32   : > { %522 = vrot.lane.b32.xlu0 %v1877_v4, %s1798_s20 }
  0x33   : > { %518 = vrot.lane.b32.xlu1 %v1880_v5, %s1798_s20 }
  0x36   : > { %531 = vrot.lane.b32.xlu0 %v1859_v0, %s1799_s21 }
  0x37   : > { %533 = vrot.lane.b32.xlu1 %v1867_v2, %s1799_s21 }
  0x3a   : > { %529 = vrot.lane.b32.xlu0 %v1862_v1, %s1799_s21 }
  0x3b   : > { %204 = vrot.lane.b32.xlu1 %v1862_v1, %s1796_s18 }
  0x3e   : > { %206 = vrot.lane.b32.xlu0 %v1859_v0, %s1796_s18 }
  0x3f   : > { %537 = vrot.lane.b32.xlu1 %v1873_v3, %s1799_s21 }
  0x42   : > { %539 = vrot.lane.b32.xlu0 %v1877_v4, %s1799_s21 }
  0x43   : > { %535 = vrot.lane.b32.xlu1 %v1880_v5, %s1799_s21  ;;  %s1817_s21 = smov 84  }
  0x46   : > { %208 = vrot.lane.b32.xlu0 %v1880_v5, %s1796_s18 }
  0x47   : > { %210 = vrot.lane.b32.xlu1 %v1873_v3, %s1796_s18  ;;  %s1816_s18 = smov 85  }
  0x4a   : > { %548 = vrot.lane.b32.xlu0 %v1859_v0, %s1800_s22 }
  0x4b   : > { %550 = vrot.lane.b32.xlu1 %v1867_v2, %s1800_s22 }
  0x4e   : > { %546 = vrot.lane.b32.xlu0 %v1862_v1, %s1800_s22 }
  0x4f   : > { %219 = vrot.lane.b32.xlu1 %v1862_v1, %s1801_s23 }
  0x52   : > { %221 = vrot.lane.b32.xlu0 %v1859_v0, %s1801_s23 }
  0x53   : > { %554 = vrot.lane.b32.xlu1 %v1873_v3, %s1800_s22 }
  0x56   : > { %556 = vrot.lane.b32.xlu0 %v1877_v4, %s1800_s22 }
  0x57   : > { %552 = vrot.lane.b32.xlu1 %v1880_v5, %s1800_s22 }
  0x5a   : > { %223 = vrot.lane.b32.xlu0 %v1880_v5, %s1801_s23 }
  0x5b   : > { %225 = vrot.lane.b32.xlu1 %v1873_v3, %s1801_s23 }
  0x5e   : > { %565 = vrot.lane.b32.xlu0 %v1859_v0, %s1802_s24 }
  0x5f   : > { %567 = vrot.lane.b32.xlu1 %v1867_v2, %s1802_s24 }
  0x62   : > { %563 = vrot.lane.b32.xlu0 %v1862_v1, %s1802_s24 }
  0x63   : > { %234 = vrot.lane.b32.xlu1 %v1862_v1, %s1803_s25 }
  0x66   : > { %236 = vrot.lane.b32.xlu0 %v1859_v0, %s1803_s25 }
  0x67   : > { %571 = vrot.lane.b32.xlu1 %v1873_v3, %s1802_s24 }
  0x6a   : > { %573 = vrot.lane.b32.xlu0 %v1877_v4, %s1802_s24 }
  0x6b   : > { %569 = vrot.lane.b32.xlu1 %v1880_v5, %s1802_s24 }
  0x6e   : > { %238 = vrot.lane.b32.xlu0 %v1880_v5, %s1803_s25 }
  0x6f   : > { %240 = vrot.lane.b32.xlu1 %v1873_v3, %s1803_s25  ;;  %s1697_s25 = smul.u32 24, %s2709_s13  ;;  %s1821_s13 = smov 43  }
  0x72   : > { %582 = vrot.lane.b32.xlu0 %v1859_v0, %s1804_s26 }
  0x73   : > { %584 = vrot.lane.b32.xlu1 %v1867_v2, %s1804_s26 }
  0x76   : > { %580 = vrot.lane.b32.xlu0 %v1862_v1, %s1804_s26 }
  0x77   : > { %648 = vrot.lane.b32.xlu1 %v1859_v0, %s1805_s27 }
  0x7a   : > { %650 = vrot.lane.b32.xlu0 %v1867_v2, %s1805_s27 }
  0x7b   : > { %249 = vrot.lane.b32.xlu1 %v1862_v1, %s1806_s28 }
  0x7e   : > { %251 = vrot.lane.b32.xlu0 %v1859_v0, %s1806_s28 }
  0x7f   : > { %588 = vrot.lane.b32.xlu1 %v1873_v3, %s1804_s26 }
  0x82   : > { %590 = vrot.lane.b32.xlu0 %v1877_v4, %s1804_s26 }
  0x83   : > { %646 = vrot.lane.b32.xlu1 %v1862_v1, %s1805_s27 }
  0x84   : > { %v482_v6 = vpop.permute.xlu0 %481 }
  0x85   : > { %v480_v7 = vpop.permute.xlu1 %479 }
  0x86   : > { %586 = vrot.lane.b32.xlu0 %v1880_v5, %s1804_s26  ;;  %v491_v19 = vsel %vm212_vm0, %v480_v7, %v482_v6 }
  0x87   : > { %654 = vrot.lane.b32.xlu1 %v1873_v3, %s1805_s27 }
  0x88   : > { %v484_v8 = vpop.permute.xlu0 %483 }
  0x89   : > { %v488_v9 = vpop.permute.xlu1 %487  ;;  %v492_v14 = vsel %vm212_vm0, %v482_v6, %v484_v8 }
  0x8a   : > { %656 = vrot.lane.b32.xlu0 %v1877_v4, %s1805_s27 }
  0x8b   : > { %253 = vrot.lane.b32.xlu1 %v1880_v5, %s1806_s28 }
  0x8c   : > { %v490_v10 = vpop.permute.xlu0 %489 }
  0x8d   : > { %v486_v11 = vpop.permute.xlu1 %485  ;;  %v494_v20 = vsel %vm212_vm0, %v488_v9, %v490_v10 }
  0x8e   : > { %255 = vrot.lane.b32.xlu0 %v1873_v3, %s1806_s28  ;;  %v493_v27 = vsel %vm212_vm0, %v486_v11, %v488_v9 }
  0x8f   : > { %652 = vrot.lane.b32.xlu1 %v1880_v5, %s1805_s27 }
  0x90   : > { %v498_v12 = vpop.permute.xlu0 %497 }
  0x91   : > { %v500_v13 = vpop.permute.xlu1 %499 }
  0x92   : > { %660 = vrot.lane.b32.xlu0 %v492_v14, %s1805_s27  ;;  %v509_v30 = vsel %vm507_vm1, %v498_v12, %v500_v13  ;;  %v1742_v14 = vld [vmem:[%s2706_s2 + $0x4] ss:$28 sps:$4 sm:$0xff]  }
  0x93   : > { %662 = vrot.lane.b32.xlu1 %v484_v8, %s1805_s27  ;;  %1084 = vmatprep.mubr.bf16.mxu1 %v1742_v14 }
  0x94   : > { %v496_v15 = vpop.permute.xlu0 %495 }
  0x95   : > { %v1963_v16 = vpop.permute.xlu1 %503  ;;  %v508_v38 = vsel %vm507_vm1, %v496_v15, %v498_v12 }
  0x96   : > { %264 = vrot.lane.b32.xlu0 %v1862_v1, %s1807_s29 }
  0x97   : > { %266 = vrot.lane.b32.xlu1 %v1859_v0, %s1807_s29 }
  0x98   : > { %v506_v17 = vpop.permute.xlu0 %505 }
  0x99   : > { %v1967_v18 = vpop.permute.xlu1 %501  ;;  %v511_v41 = vsel %vm507_vm1, %v1963_v16, %v506_v17 }
  0x9a   : > { %658 = vrot.lane.b32.xlu0 %v491_v19, %s1805_s27  ;;  %v510_v50 = vsel %vm507_vm1, %v1967_v18, %v1963_v16  ;;  %vm347_vm1 = vcmask 744448  }
  0x9b   : > { %666 = vrot.lane.b32.xlu1 %v494_v20, %s1805_s27 }
  0x9c   : > { %v1973_v21 = vpop.permute.xlu0 %514 }
  0x9d   : > { %v1975_v22 = vpop.permute.xlu1 %516 }
  0x9e   : > { %668 = vrot.lane.b32.xlu0 %v490_v10, %s1805_s27  ;;  %v526_v53 = vsel %vm524_vm3, %v1973_v21, %v1975_v22 }
  0x9f   : > { %268 = vrot.lane.b32.xlu1 %v1880_v5, %s1807_s29 }
  0xa0   : > { %v1979_v23 = vpop.permute.xlu0 %512 }
  0xa1   : > { %v1981_v24 = vpop.permute.xlu1 %520  ;;  %v525_v61 = vsel %vm524_vm3, %v1979_v23, %v1973_v21 }
  0xa2   : > { %270 = vrot.lane.b32.xlu0 %v1873_v3, %s1807_s29  ;;  %s2674_s29 = scalar_lea.vmem %s2707_s3, %s1697_s25 }
  0xa3   : > { %599 = vrot.lane.b32.xlu1 %v1859_v0, %s1808_s30 }
  0xa4   : > { %v1986_v25 = vpop.permute.xlu0 %522 }
  0xa5   : > { %v1988_v26 = vpop.permute.xlu1 %518  ;;  %v528_v7 = vsel %vm524_vm3, %v1981_v24, %v1986_v25 }
  0xa6   : > { %601 = vrot.lane.b32.xlu0 %v1867_v2, %s1808_s30  ;;  %v527_v16 = vsel %vm524_vm3, %v1988_v26, %v1981_v24  ;;  %vm407_vm3 = vcmask 703488  }
  0xa7   : > { %664 = vrot.lane.b32.xlu1 %v493_v27, %s1805_s27 }
  0xa8   : > { %v1994_v28 = vpop.permute.xlu0 %531 }
  0xa9   : > { %v1996_v29 = vpop.permute.xlu1 %533 }
  0xaa   : > { %597 = vrot.lane.b32.xlu0 %v1862_v1, %s1808_s30  ;;  %v543_v19 = vsel %vm541_vm5, %v1994_v28, %v1996_v29 }
  0xab   : > { %672 = vrot.lane.b32.xlu1 %v509_v30, %s1805_s27 }
  0xac   : > { %v2002_v31 = vpop.permute.xlu0 %529 }
  0xad   : > { %v205_v32 = vpop.permute.xlu1 %204 }
  0xae   : > { %674 = vrot.lane.b32.xlu0 %v500_v13, %s1805_s27 }
  0xaf   : > { %279 = vrot.lane.b32.xlu1 %v1862_v1, %s1809_s4 }
  0xb0   : > { %v207_v33 = vpop.permute.xlu0 %206 }
  0xb1   : > { %v2006_v34 = vpop.permute.xlu1 %537  ;;  %1056 = vmatprep.subr.bf16.mxu1 %v207_v33  ;;  %v213_v35 = vsel %vm212_vm0, %v205_v32, %v207_v33 }
  0xb2   : > { %281 = vrot.lane.b32.xlu0 %v1859_v0, %s1809_s4  ;;  %1057 = vmatpush1.bf16.msra.mxu1 %v213_v35 }
  0xb3   : > { %605 = vrot.lane.b32.xlu1 %v1873_v3, %s1808_s30 }
  0xb4   : > { %v2012_v36 = vpop.permute.xlu0 %539 }
  0xb5   : > { %v2014_v37 = vpop.permute.xlu1 %535  ;;  %v545_v35 = vsel %vm541_vm5, %v2006_v34, %v2012_v36 }
  0xb6   : > { %607 = vrot.lane.b32.xlu0 %v1877_v4, %s1808_s30 }
  0xb7   : > { %670 = vrot.lane.b32.xlu1 %v508_v38, %s1805_s27 }
  0xb8   : > { %v209_v39 = vpop.permute.xlu0 %208 }
  0xb9   : > { %v211_v40 = vpop.permute.xlu1 %210 }
  0xba   : > { %1058 = vmatprep.subr.bf16.mxu1 %v211_v40  ;;  %603 = vrot.lane.b32.xlu0 %v1880_v5, %s1808_s30  ;;  %v214_v42 = vsel %vm212_vm0, %v209_v39, %v211_v40  ;;  %vm332_vm0 = vcmask 752640  }
  0xbb   : > { %678 = vrot.lane.b32.xlu1 %v511_v41, %s1805_s27  ;;  %1059 = vmatpush1.bf16.msra.mxu1 %v214_v42  ;;  %v544_v42 = vsel %vm541_vm5, %v2014_v37, %v2006_v34 }
  0xbc   : > { %v2026_v43 = vpop.permute.xlu0 %548 }
  0xbd   : > { %v2028_v44 = vpop.permute.xlu1 %550 }
  0xbe   : > { %680 = vrot.lane.b32.xlu0 %v506_v17, %s1805_s27 }
  0xbf   : > { %283 = vrot.lane.b32.xlu1 %v1880_v5, %s1809_s4 }
  0xc0   : > { %v2032_v45 = vpop.permute.xlu0 %546 }
  0xc1   : > { %v220_v46 = vpop.permute.xlu1 %219 }
  0xc2   : > { %285 = vrot.lane.b32.xlu0 %v1873_v3, %s1809_s4  ;;  %s1818_s4 = smov 80  }
  0xc3   : > { %616 = vrot.lane.b32.xlu1 %v1859_v0, %s1810_s5 }
  0xc4   : > { %v222_v47 = vpop.permute.xlu0 %221 }
  0xc5   : > { %v2037_v48 = vpop.permute.xlu1 %554  ;;  %1060 = vmatprep.subr.bf16.mxu1 %v222_v47  ;;  %v228_v49 = vsel %vm227_vm2, %v220_v46, %v222_v47 }
  0xc6   : > { %618 = vrot.lane.b32.xlu0 %v1867_v2, %s1810_s5  ;;  %1061 = vmatpush1.bf16.msra.mxu1 %v228_v49  ;;  %v560_v49 = vsel %vm558_vm8, %v2026_v43, %v2028_v44 }
  0xc7   : > { %676 = vrot.lane.b32.xlu1 %v510_v50, %s1805_s27 }
  0xc8   : > { %v2046_v51 = vpop.permute.xlu0 %556 }
  0xc9   : > { %v2048_v52 = vpop.permute.xlu1 %552 }
  0xca   : > { %614 = vrot.lane.b32.xlu0 %v1862_v1, %s1810_s5 }
  0xcb   : > { %684 = vrot.lane.b32.xlu1 %v526_v53, %s1805_s27 }
  0xcc   : > { %v224_v54 = vpop.permute.xlu0 %223 }
  0xcd   : > { %v226_v55 = vpop.permute.xlu1 %225 }
  0xce   : > { %1062 = vmatprep.subr.bf16.mxu1 %v226_v55  ;;  %686 = vrot.lane.b32.xlu0 %v1975_v22, %s1805_s27  ;;  %v229_v56 = vsel %vm227_vm2, %v224_v54, %v226_v55  ;;  %v559_v55 = vsel %vm558_vm8, %v2032_v45, %v2026_v43  ;;  %vm362_vm2 = vcmask 736256  }
  0xcf   : > { %294 = vrot.lane.b32.xlu1 %v1862_v1, %s1811_s6  ;;  %1063 = vmatpush1.bf16.msra.mxu1 %v229_v56 }
  0xd0   : > { %v2060_v57 = vpop.permute.xlu0 %565 }
  0xd1   : > { %v2062_v58 = vpop.permute.xlu1 %567 }
  0xd2   : > { %296 = vrot.lane.b32.xlu0 %v1859_v0, %s1811_s6 }
  0xd3   : > { %622 = vrot.lane.b32.xlu1 %v1873_v3, %s1810_s5 }
  0xd4   : > { %v2067_v59 = vpop.permute.xlu0 %563 }
  0xd5   : > { %v235_v60 = vpop.permute.xlu1 %234 }
  0xd6   : > { %624 = vrot.lane.b32.xlu0 %v1877_v4, %s1810_s5 }
  0xd7   : > { %682 = vrot.lane.b32.xlu1 %v525_v61, %s1805_s27 }
  0xd8   : > { %v237_v62 = vpop.permute.xlu0 %236 }
  0xd9   : > { %v2075_v63 = vpop.permute.xlu1 %571  ;;  %1064 = vmatprep.subr.bf16.mxu1 %v237_v62  ;;  %v243_v6 = vsel %vm242_vm4, %v235_v60, %v237_v62  ;;  %v562_v60 = vsel %vm558_vm8, %v2037_v48, %v2046_v51 }
  0xda   : > { %620 = vrot.lane.b32.xlu0 %v1880_v5, %s1810_s5  ;;  %1065 = vmatpush1.bf16.msra.mxu1 %v243_v6 }
  0xdb   : > { %690 = vrot.lane.b32.xlu1 %v528_v7, %s1805_s27 }
  0xdc   : > { %v2084_v8 = vpop.permute.xlu0 %573 }
  0xdd   : > { %v2086_v9 = vpop.permute.xlu1 %569 }
  0xde   : > { %692 = vrot.lane.b32.xlu0 %v1986_v25, %s1805_s27 }
  0xdf   : > { %298 = vrot.lane.b32.xlu1 %v1880_v5, %s1811_s6 }
  0xe0   : > { %v239_v10 = vpop.permute.xlu0 %238 }
  0xe1   : > { %v241_v11 = vpop.permute.xlu1 %240 }
  0xe2   : > { %1066 = vmatprep.subr.bf16.mxu1 %v241_v11  ;;  %300 = vrot.lane.b32.xlu0 %v1873_v3, %s1811_s6  ;;  %v244_v12 = vsel %vm242_vm4, %v239_v10, %v241_v11  ;;  %v561_v10 = vsel %vm558_vm8, %v2048_v52, %v2037_v48  ;;  %vm428_vm4 = vcmask 695296   ;;  %vm1039_vm8 = vcmask 785408  }
  0xe3   : > { %632 = vrot.lane.b32.xlu1 %v1859_v0, %s1812_s7  ;;  %1067 = vmatpush1.bf16.msra.mxu1 %v244_v12  ;;  %v577_v12 = vsel %vm575_vm10, %v2060_v57, %v2062_v58 }
  0xe4   : > { %v2095_v13 = vpop.permute.xlu0 %582 }
  0xe5   : > { %v2100_v15 = vpop.permute.xlu1 %584 }
  0xe6   : > { %634 = vrot.lane.b32.xlu0 %v1867_v2, %s1812_s7 }
  0xe7   : > { %688 = vrot.lane.b32.xlu1 %v527_v16, %s1805_s27 }
  0xe8   : > { %v2108_v17 = vpop.permute.xlu0 %580 }
  0xe9   : > { %v649_v18 = vpop.permute.xlu1 %648 }
  0xea   : > { %630 = vrot.lane.b32.xlu0 %v1862_v1, %s1812_s7 }
  0xeb   : > { %696 = vrot.lane.b32.xlu1 %v543_v19, %s1805_s27 }
  0xec   : > { %v651_v20 = vpop.permute.xlu0 %650 }
  0xed   : > { %v250_v21 = vpop.permute.xlu1 %249  ;;  %v780_v22 = vsel %vm778_vm6, %v649_v18, %v651_v20 }
  0xee   : > { %698 = vrot.lane.b32.xlu0 %v1996_v29, %s1805_s27  ;;  %1198 = vmatprep.subr.bf16.mxu0 %v780_v22  ;;  %v542_v29 = vsel %vm541_vm5, %v2002_v31, %v1994_v28  ;;  %vm449_vm5 = vcmask 687104  }
  0xef   : > { %309 = vrot.lane.b32.xlu1 %v1862_v1, %s1813_s10 }
  0xf0   : > { %v252_v23 = vpop.permute.xlu0 %251 }
  0xf1   : > { %v2121_v24 = vpop.permute.xlu1 %588  ;;  %1068 = vmatprep.subr.bf16.mxu1 %v252_v23  ;;  %v258_v25 = vsel %vm257_vm7, %v250_v21, %v252_v23 }
  0xf2   : > { %311 = vrot.lane.b32.xlu0 %v1859_v0, %s1813_s10  ;;  %1069 = vmatpush1.bf16.msra.mxu1 %v258_v25  ;;  %v578_v25 = vsel %vm575_vm10, %v2086_v9, %v2075_v63 }
  0xf3   : > { %638 = vrot.lane.b32.xlu1 %v1873_v3, %s1812_s7 }
  0xf4   : > { %v2128_v26 = vpop.permute.xlu0 %590 }
  0xf5   : > { %v647_v27 = vpop.permute.xlu1 %646 }
  0xf6   : > { %640 = vrot.lane.b32.xlu0 %v1877_v4, %s1812_s7  ;;  %v779_v30 = vsel %vm778_vm6, %v647_v27, %v649_v18  ;;  %v576_v18 = vsel %vm575_vm10, %v2067_v59, %v2060_v57 }
  0xf7   : > { %694 = vrot.lane.b32.xlu1 %v542_v29, %s1805_s27  ;;  %1199 = vmatpush1.bf16.msra.mxu0 %v779_v30  ;;  %v594_v30 = vsel %vm592_vm12, %v2095_v13, %v2100_v15 }
  0xf8   : > { %v2137_v32 = vpop.permute.xlu0 %586 }
  0xf9   : > { %v655_v33 = vpop.permute.xlu1 %654 }
  0xfa   : > { %636 = vrot.lane.b32.xlu0 %v1880_v5, %s1812_s7 }
  0xfb   : > { %702 = vrot.lane.b32.xlu1 %v545_v35, %s1805_s27 }
  0xfc   : > { %v657_v28 = vpop.permute.xlu0 %656 }
  0xfd   : > { %v254_v31 = vpop.permute.xlu1 %253  ;;  %v782_v38 = vsel %vm778_vm6, %v655_v33, %v657_v28  ;;  %v593_v28 = vsel %vm592_vm12, %v2108_v17, %v2095_v13 }
  0xfe   : > { %704 = vrot.lane.b32.xlu0 %v2012_v36, %s1805_s27  ;;  %1200 = vmatprep.subr.bf16.mxu0 %v782_v38  ;;  %v596_v38 = vsel %vm592_vm12, %v2121_v24, %v2128_v26 }
  0xff   : > { %313 = vrot.lane.b32.xlu1 %v1880_v5, %s1813_s10 }
 0x100   : > { %v256_v39 = vpop.permute.xlu0 %255 }
 0x101   : > { %v653_v40 = vpop.permute.xlu1 %652  ;;  %1070 = vmatprep.subr.bf16.mxu1 %v256_v39  ;;  %v259_v41 = vsel %vm257_vm7, %v254_v31, %v256_v39  ;;  %vm470_vm7 = vcmask 654336  }
 0x102   : > { %315 = vrot.lane.b32.xlu0 %v1873_v3, %s1813_s10  ;;  %1071 = vmatpush1.bf16.msra.mxu1 %v259_v41  ;;  %v781_v36 = vsel %vm778_vm6, %v653_v40, %v655_v33 }
 0x103   : > { %700 = vrot.lane.b32.xlu1 %v544_v42, %s1805_s27  ;;  %1201 = vmatpush1.bf16.msra.mxu0 %v781_v36  ;;  %v595_v42 = vsel %vm592_vm12, %v2137_v32, %v2121_v24 }
 0x104   : > { %v661_v46 = vpop.permute.xlu0 %660 }
 0x105   : > { %v663_v47 = vpop.permute.xlu1 %662 }
 0x106   : > { %708 = vrot.lane.b32.xlu0 %v560_v49, %s1805_s27  ;;  %v784_v34 = vsel %vm778_vm6, %v661_v46, %v663_v47 }
 0x107   : > { %710 = vrot.lane.b32.xlu1 %v2028_v44, %s1805_s27  ;;  %1202 = vmatprep.subr.bf16.mxu0 %v784_v34  ;;  %v1745_v34 = vld [vmem:[%s2706_s2 + $0x14] ss:$28 sps:$4 sm:$0xff]  }
 0x108   : > { %v265_v37 = vpop.permute.xlu0 %264  ;;  %1230 = vmatprep.mubr.bf16.mxu0 %v1745_v34 }
 0x109   : > { %v267_v50 = vpop.permute.xlu1 %266 }
 0x10a   : > { %1072 = vmatprep.subr.bf16.mxu1 %v267_v50  ;;  %324 = vrot.lane.b32.xlu0 %v1862_v1, %s1810_s5  ;;  %v273_v53 = vsel %vm272_vm9, %v265_v37, %v267_v50 }
 0x10b   : > { %326 = vrot.lane.b32.xlu1 %v1859_v0, %s1810_s5  ;;  %1073 = vmatpush1.bf16.msra.mxu1 %v273_v53 }
 0x10c   : > { %v659_v54 = vpop.permute.xlu0 %658 }
 0x10d   : > { %v667_v44 = vpop.permute.xlu1 %666  ;;  %v783_v56 = vsel %vm778_vm6, %v659_v54, %v661_v46 }
 0x10e   : > { %706 = vrot.lane.b32.xlu0 %v559_v55, %s1805_s27  ;;  %1203 = vmatpush1.bf16.msra.mxu0 %v783_v56 }
 0x10f   : > { %714 = vrot.lane.b32.xlu1 %v562_v60, %s1805_s27 }
 0x110   : > { %v669_v61 = vpop.permute.xlu0 %668 }
 0x111   : > { %v269_v62 = vpop.permute.xlu1 %268  ;;  %v786_v6 = vsel %vm778_vm6, %v667_v44, %v669_v61 }
 0x112   : > { %716 = vrot.lane.b32.xlu0 %v2046_v51, %s1805_s27  ;;  %1204 = vmatprep.subr.bf16.mxu0 %v786_v6 }
 0x113   : > { %328 = vrot.lane.b32.xlu1 %v1880_v5, %s1810_s5 }
 0x114   : > { %v271_v43 = vpop.permute.xlu0 %270 }
 0x115   : > { %v2184_v45 = vpop.permute.xlu1 %599  ;;  %1074 = vmatprep.subr.bf16.mxu1 %v271_v43  ;;  %v274_v7 = vsel %vm272_vm9, %v269_v62, %v271_v43  ;;  %v1740_v43 = vld [vmem:[%s2706_s2] ss:$28 sps:$4 sm:$0xff]   ;;  %vm1540_vm9 = vcmask 23552  }
 0x116   : > { %330 = vrot.lane.b32.xlu0 %v1873_v3, %s1810_s5  ;;  %1075 = vmatpush1.bf16.msra.mxu1 %v274_v7 }
 0x117   : > { %712 = vrot.lane.b32.xlu1 %v561_v10, %s1805_s27 }
 0x118   : > { %v2193_v51 = vpop.permute.xlu0 %601 }
 0x119   : > { %v665_v11 = vpop.permute.xlu1 %664  ;;  %v611_v56 = vsel %vm609_vm14, %v2184_v45, %v2193_v51 }
 0x11a   : > { %720 = vrot.lane.b32.xlu0 %v577_v12, %s1805_s27  ;;  %v785_v14 = vsel %vm778_vm6, %v665_v11, %v667_v44 }
 0x11b   : > { %722 = vrot.lane.b32.xlu1 %v2062_v58, %s1805_s27  ;;  %1205 = vmatpush1.bf16.msra.mxu0 %v785_v14  ;;  %v579_v58 = vsel %vm575_vm10, %v2075_v63, %v2084_v8  ;;  %vm1532_vm10 = vcmask 351232  }
 0x11c   : > { %v2202_v48 = vpop.permute.xlu0 %597 }
 0x11d   : > { %v673_v52 = vpop.permute.xlu1 %672  ;;  %v610_v7 = vsel %vm609_vm14, %v2202_v48, %v2184_v45 }
 0x11e   : > { %339 = vrot.lane.b32.xlu0 %v1862_v1, %s1812_s7 }
 0x11f   : > { %341 = vrot.lane.b32.xlu1 %v1859_v0, %s1812_s7 }
 0x120   : > { %v675_v16 = vpop.permute.xlu0 %674 }
 0x121   : > { %v280_v19 = vpop.permute.xlu1 %279  ;;  %v788_v20 = vsel %vm778_vm6, %v673_v52, %v675_v16 }
 0x122   : > { %718 = vrot.lane.b32.xlu0 %v576_v18, %s1805_s27  ;;  %1206 = vmatprep.subr.bf16.mxu0 %v788_v20 }
 0x123   : > { %726 = vrot.lane.b32.xlu1 %v579_v58, %s1805_s27 }
 0x124   : > { %v282_v21 = vpop.permute.xlu0 %281 }
 0x125   : > { %v2217_v22 = vpop.permute.xlu1 %605  ;;  %1076 = vmatprep.subr.bf16.mxu1 %v282_v21  ;;  %v288_v23 = vsel %vm287_vm11, %v280_v19, %v282_v21 }
 0x126   : > { %728 = vrot.lane.b32.xlu0 %v2084_v8, %s1805_s27  ;;  %1077 = vmatpush1.bf16.msra.mxu1 %v288_v23 }
 0x127   : > { %343 = vrot.lane.b32.xlu1 %v1880_v5, %s1812_s7 }
 0x128   : > { %v2224_v57 = vpop.permute.xlu0 %607 }
 0x129   : > { %v671_v59 = vpop.permute.xlu1 %670  ;;  %v613_v14 = vsel %vm609_vm14, %v2217_v22, %v2224_v57 }
 0x12a   : > { %345 = vrot.lane.b32.xlu0 %v1873_v3, %s1812_s7  ;;  %v787_v27 = vsel %vm778_vm6, %v671_v59, %v673_v52 }
 0x12b   : > { %724 = vrot.lane.b32.xlu1 %v578_v25, %s1805_s27  ;;  %1207 = vmatpush1.bf16.msra.mxu0 %v787_v27  ;;  %v1748_v25 = vld [vmem:[%s2706_s2 + $0x3c] ss:$28 sps:$4 sm:$0xff]  }
 0x12c   : > { %v2233_v8 = vpop.permute.xlu0 %603 }
 0x12d   : > { %v679_v29 = vpop.permute.xlu1 %678  ;;  %v612_v18 = vsel %vm609_vm14, %v2233_v8, %v2217_v22  ;;  %v1750_v8 = vld [vmem:[%s2706_s2 + $0x38] ss:$28 sps:$4 sm:$0xff]  }
 0x12e   : > { %732 = vrot.lane.b32.xlu0 %v594_v30, %s1805_s27 }
 0x12f   : > { %734 = vrot.lane.b32.xlu1 %v2100_v15, %s1805_s27 }
 0x130   : > { %v681_v63 = vpop.permute.xlu0 %680 }
 0x131   : > { %v284_v9 = vpop.permute.xlu1 %283  ;;  %v790_v33 = vsel %vm778_vm6, %v679_v29, %v681_v63 }
 0x132   : > { %354 = vrot.lane.b32.xlu0 %v1862_v1, %s1814_s11  ;;  %1208 = vmatprep.subr.bf16.mxu0 %v790_v33 }
 0x133   : > { %356 = vrot.lane.b32.xlu1 %v1859_v0, %s1814_s11 }
 0x134   : > { %v286_v35 = vpop.permute.xlu0 %285 }
 0x135   : > { %v2247_v31 = vpop.permute.xlu1 %616  ;;  %1078 = vmatprep.subr.bf16.mxu1 %v286_v35  ;;  %v289_v15 = vsel %vm287_vm11, %v284_v9, %v286_v35  ;;  %vm1537_vm11 = vcmask 1047896  }
 0x136   : > { %730 = vrot.lane.b32.xlu0 %v593_v28, %s1805_s27  ;;  %1079 = vmatpush1.bf16.msra.mxu1 %v289_v15  ;;  %v1756_v28 = vld [vmem:[%s2706_s2 + $0x70] ss:$28 sps:$4 sm:$0xff]  }
 0x137   : > { %738 = vrot.lane.b32.xlu1 %v596_v38, %s1805_s27 }
 0x138   : > { %v2255_v39 = vpop.permute.xlu0 %618 }
 0x139   : > { %v677_v40 = vpop.permute.xlu1 %676  ;;  %v627_v23 = vsel %vm332_vm0, %v2247_v31, %v2255_v39 }
 0x13a   : > { %740 = vrot.lane.b32.xlu0 %v2128_v26, %s1805_s27  ;;  %v789_v13 = vsel %vm778_vm6, %v677_v40, %v679_v29 }
 0x13b   : > { %358 = vrot.lane.b32.xlu1 %v1880_v5, %s1814_s11  ;;  %1209 = vmatpush1.bf16.msra.mxu0 %v789_v13 }
 0x13c   : > { %v2261_v17 = vpop.permute.xlu0 %614 }
 0x13d   : > { %v685_v41 = vpop.permute.xlu1 %684 }
 0x13e   : > { %360 = vrot.lane.b32.xlu0 %v1873_v3, %s1814_s11 }
 0x13f   : > { %736 = vrot.lane.b32.xlu1 %v595_v42, %s1805_s27 }
 0x140   : > { %v687_v36 = vpop.permute.xlu0 %686 }
 0x141   : > { %v295_v46 = vpop.permute.xlu1 %294  ;;  %v792_v26 = vsel %vm778_vm6, %v685_v41, %v687_v36  ;;  %v1762_v36 = vld [vmem:[%s2706_s2 + $0xa8] ss:$28 sps:$4 sm:$0xff]  }
 0x142   : > { %397 = vrot.lane.b32.xlu0 %v1859_v0, %s1815_s14  ;;  %1210 = vmatprep.subr.bf16.mxu0 %v792_v26 }
 0x143   : > { %399 = vrot.lane.b32.xlu1 %v1867_v2, %s1815_s14 }
 0x144   : > { %v297_v47 = vpop.permute.xlu0 %296 }
 0x145   : > { %v2271_v49 = vpop.permute.xlu1 %622  ;;  %1080 = vmatprep.subr.bf16.mxu1 %v297_v47  ;;  %v303_v24 = vsel %vm302_vm13, %v295_v46, %v297_v47 }
 0x146   : > { %395 = vrot.lane.b32.xlu0 %v1862_v1, %s1815_s14  ;;  %1081 = vmatpush1.bf16.msra.mxu1 %v303_v24 }
 0x147   : > { %403 = vrot.lane.b32.xlu1 %v1873_v3, %s1815_s14 }
 0x148   : > { %v2276_v32 = vpop.permute.xlu0 %624 }
 0x149   : > { %v683_v37 = vpop.permute.xlu1 %682  ;;  %v629_v33 = vsel %vm332_vm0, %v2271_v49, %v2276_v32 }
 0x14a   : > { %405 = vrot.lane.b32.xlu0 %v1877_v4, %s1815_s14  ;;  %v791_v50 = vsel %vm778_vm6, %v683_v37, %v685_v41  ;;  %v1783_v41 = vld [vmem:[%s1856_s17 + $0x8] ss:$12 sps:$4 sm:$0xff]   ;;  %v1784_v37 = vld [vmem:[%s1856_s17] ss:$12 sps:$4 sm:$0xff]  }
 0x14b   : > { %401 = vrot.lane.b32.xlu1 %v1880_v5, %s1815_s14  ;;  %1211 = vmatpush1.bf16.msra.mxu0 %v791_v50  ;;  %v1766_v50 = vld [vmem:[%s2706_s2 + $0xc] ss:$28 sps:$4 sm:$0xff]  }
 0x14c   : > { %v2284_v53 = vpop.permute.xlu0 %620 }
 0x14d   : > { %v691_v54 = vpop.permute.xlu1 %690  ;;  %v628_v15 = vsel %vm332_vm0, %v2284_v53, %v2271_v49 }
 0x14e   : > { %418 = vrot.lane.b32.xlu0 %v1859_v0, %s1816_s18 }
 0x14f   : > { %420 = vrot.lane.b32.xlu1 %v1867_v2, %s1816_s18 }
 0x150   : > { %v693_v55 = vpop.permute.xlu0 %692 }
 0x151   : > { %v299_v44 = vpop.permute.xlu1 %298  ;;  %v794_v60 = vsel %vm778_vm6, %v691_v54, %v693_v55 }
 0x152   : > { %744 = vrot.lane.b32.xlu0 %v611_v56, %s1805_s27  ;;  %1212 = vmatprep.subr.bf16.mxu0 %v794_v60  ;;  %v1786_v60 = vld [vmem:[%s1856_s17 + $0x20] ss:$12 sps:$4 sm:$0xff]  }
 0x153   : > { %746 = vrot.lane.b32.xlu1 %v2193_v51, %s1805_s27 }
 0x154   : > { %v301_v61 = vpop.permute.xlu0 %300 }
 0x155   : > { %v2297_v62 = vpop.permute.xlu1 %632  ;;  %1082 = vmatprep.subr.bf16.mxu1 %v301_v61  ;;  %v304_v6 = vsel %vm302_vm13, %v299_v44, %v301_v61  ;;  %v1785_v44 = vld [vmem:[%s1856_s17 + $0x1c] ss:$12 sps:$4 sm:$0xff]  }
 0x156   : > { %416 = vrot.lane.b32.xlu0 %v1862_v1, %s1816_s18  ;;  %1083 = vmatpush1.bf16.msra.mxu1 %v304_v6 }
 0x157   : > { %742 = vrot.lane.b32.xlu1 %v610_v7, %s1805_s27 }
 0x158   : > { %v2309_v10 = vpop.permute.xlu0 %634 }
 0x159   : > { %v689_v51 = vpop.permute.xlu1 %688  ;;  %1085 = vmatmul.mubr.bf16.vlgmr.msra.gmra.mrb[0].mxu1 %v1740_v43  ;;  %v643_v26 = vsel %vm347_vm1, %v2297_v62, %v2309_v10 }
 0x15a   : > { %424 = vrot.lane.b32.xlu0 %v1873_v3, %s1816_s18  ;;  %v793_v11 = vsel %vm778_vm6, %v689_v51, %v691_v54  ;;  %1094 = vmatprep.mubr.bf16.mxu1 %v1748_v25 }
 0x15b   : > { %426 = vrot.lane.b32.xlu1 %v1877_v4, %s1816_s18  ;;  %1213 = vmatpush1.bf16.msra.mxu0 %v793_v11 }
 0x15c   : > { %v2316_v45 = vpop.permute.xlu0 %630 }
 0x15d   : > { %v697_v12 = vpop.permute.xlu1 %696  ;;  %v642_v34 = vsel %vm347_vm1, %v2316_v45, %v2297_v62  ;;  %v1787_v45 = vld [vmem:[%s1856_s17 + $0x18] ss:$12 sps:$4 sm:$0xff]  }
 0x15e   : > { %750 = vrot.lane.b32.xlu0 %v613_v14, %s1805_s27 }
 0x15f   : > { %752 = vrot.lane.b32.xlu1 %v2224_v57, %s1805_s27 }
 0x160   : > { %v699_v48 = vpop.permute.xlu0 %698 }
 0x161   : > { %v310_v52 = vpop.permute.xlu1 %309  ;;  %v796_v16 = vsel %vm778_vm6, %v697_v12, %v699_v48  ;;  %1095 = vmatmul.mubr.bf16.gmra.mrb[4].mxu1 %v1750_v8 }
 0x162   : > { %422 = vrot.lane.b32.xlu0 %v1880_v5, %s1816_s18  ;;  %1214 = vmatprep.subr.bf16.mxu0 %v796_v16 }
 0x163   : > { %748 = vrot.lane.b32.xlu1 %v612_v18, %s1805_s27 }
 0x164   : > { %v312_v19 = vpop.permute.xlu0 %311 }
 0x165   : > { %v2331_v20 = vpop.permute.xlu1 %638  ;;  %1125 = vmatprep.subr.bf16.mxu1 %v312_v19  ;;  %v318_v58 = vsel %vm317_vm15, %v310_v52, %v312_v19 }
 0x166   : > { %439 = vrot.lane.b32.xlu0 %v1859_v0, %s1817_s21  ;;  %1126 = vmatpush1.bf16.msra.mxu1 %v318_v58 }
 0x167   : > { %441 = vrot.lane.b32.xlu1 %v1867_v2, %s1817_s21  ;;  %v626_v2 = vsel %vm332_vm0, %v2261_v17, %v2247_v31  ;;  %v1782_v17 = vld [vmem:[%s1856_s17 + $0x4] ss:$12 sps:$4 sm:$0xff]  }
 0x168   : > { %v2338_v21 = vpop.permute.xlu0 %640 }
 0x169   : > { %v695_v22 = vpop.permute.xlu1 %694  ;;  %v645_v6 = vsel %vm347_vm1, %v2331_v20, %v2338_v21 }
 0x16a   : > { %756 = vrot.lane.b32.xlu0 %v627_v23, %s1805_s27  ;;  %v795_v57 = vsel %vm778_vm6, %v695_v22, %v697_v12 }
 0x16b   : > { %758 = vrot.lane.b32.xlu1 %v2255_v39, %s1805_s27  ;;  %1215 = vmatpush1.bf16.msra.mxu0 %v795_v57 }
 0x16c   : > { %v2347_v0 = vpop.permute.xlu0 %636 }
 0x16d   : > { %v703_v59 = vpop.permute.xlu1 %702  ;;  %v644_v51 = vsel %vm347_vm1, %v2347_v0, %v2331_v20 }
 0x16e   : > { %437 = vrot.lane.b32.xlu0 %v1862_v1, %s1817_s21 }
 0x16f   : > { %754 = vrot.lane.b32.xlu1 %v626_v2, %s1805_s27 }
 0x170   : > { %v705_v27 = vpop.permute.xlu0 %704 }
 0x171   : > { %v314_v29 = vpop.permute.xlu1 %313  ;;  %v798_v30 = vsel %vm778_vm6, %v703_v59, %v705_v27 }
 0x172   : > { %445 = vrot.lane.b32.xlu0 %v1873_v3, %s1817_s21  ;;  %1216 = vmatprep.subr.bf16.mxu0 %v798_v30  ;;  %v1754_v3 = vld [vmem:[%s2706_s2 + $0x74] ss:$28 sps:$4 sm:$0xff]  }
 0x173   : > { %447 = vrot.lane.b32.xlu1 %v1877_v4, %s1817_s21  ;;  %1104 = vmatprep.mubr.bf16.mxu1 %v1754_v3  ;;  %v1743_v3 = vld [vmem:[%s2706_s2 + $0x10] ss:$28 sps:$4 sm:$0xff]  }
 0x174   : > { %v316_v1 = vpop.permute.xlu0 %315  ;;  %1105 = vmatmul.mubr.bf16.gmra.mrb[8].mxu1 %v1756_v28 }
 0x175   : > { %v319_v63 = vsel %vm317_vm15, %v314_v29, %v316_v1  ;;  %v701_v9 = vpop.permute.xlu1 %700  ;;  %1127 = vmatprep.subr.bf16.mxu1 %v316_v1 }
 0x176   : > { %762 = vrot.lane.b32.xlu0 %v629_v33, %s1805_s27  ;;  %1128 = vmatpush1.bf16.msra.mxu1 %v319_v63  ;;  %v797_v35 = vsel %vm778_vm6, %v701_v9, %v703_v59 }
 0x177   : > { %764 = vrot.lane.b32.xlu1 %v2276_v32, %s1805_s27  ;;  %1217 = vmatpush1.bf16.msra.mxu0 %v797_v35 }
 0x178   : > { %v709_v4 = vpop.permute.xlu0 %708 }
 0x179   : > { %v711_v31 = vpop.permute.xlu1 %710 }
 0x17a   : > { %443 = vrot.lane.b32.xlu0 %v1880_v5, %s1817_s21  ;;  %v800_v38 = vsel %vm778_vm6, %v709_v4, %v711_v31  ;;  %v1760_v5 = vld [vmem:[%s2706_s2 + $0xac] ss:$28 sps:$4 sm:$0xff]  }
 0x17b   : > { %760 = vrot.lane.b32.xlu1 %v628_v15, %s1805_s27  ;;  %1218 = vmatprep.subr.bf16.mxu0 %v800_v38 }
 0x17c   : > { %v325_v39 = vpop.permute.xlu0 %324  ;;  %1114 = vmatprep.mubr.bf16.mxu1 %v1760_v5 }
 0x17d   : > { %v327_v40 = vpop.permute.xlu1 %326  ;;  %1115 = vmatmul.mubr.bf16.gmra.mrb[12].mxu1 %v1762_v36 }
 0x17e   : > { %v333_v13 = vsel %vm332_vm0, %v325_v39, %v327_v40  ;;  %1129 = vmatprep.subr.bf16.mxu1 %v327_v40  ;;  %460 = vrot.lane.b32.xlu0 %v1782_v17, %s1818_s4  ;;  %v1752_v17 = vld [vmem:[%s2706_s2 + $0x84] ss:$28 sps:$4 sm:$0xff]  }
 0x17f   : > { %462 = vrot.lane.b32.xlu1 %v1783_v41, %s1818_s4  ;;  %1130 = vmatpush1.bf16.msra.mxu1 %v333_v13  ;;  %v1751_v13 = vld [vmem:[%s2706_s2 + $0x48] ss:$28 sps:$4 sm:$0xff]  }
 0x180   : > { %v707_v42 = vpop.permute.xlu0 %706  ;;  %1157 = vmatprep.mubr.bf16.mxu1 %v1766_v50 }
 0x181   : > { %v715_v46 = vpop.permute.xlu1 %714  ;;  %v799_v47 = vsel %vm778_vm6, %v707_v42, %v709_v4  ;;  %v1746_v4 = vld [vmem:[%s2706_s2 + $0x4c] ss:$28 sps:$4 sm:$0xff]  }
 0x182   : > { %768 = vrot.lane.b32.xlu0 %v643_v26, %s1805_s27  ;;  %1219 = vmatpush1.bf16.msra.mxu0 %v799_v47 }
 0x183   : > { %770 = vrot.lane.b32.xlu1 %v2309_v10, %s1805_s27 }
 0x184   : > { %v717_v49 = vpop.permute.xlu0 %716 }
 0x185   : > { %v329_v24 = vpop.permute.xlu1 %328  ;;  %v802_v32 = vsel %vm778_vm6, %v715_v46, %v717_v49  ;;  %v1757_v49 = vld [vmem:[%s2706_s2 + $0x80] ss:$28 sps:$4 sm:$0xff]  }
 0x186   : > { %458 = vrot.lane.b32.xlu0 %v1784_v37, %s1818_s4  ;;  %1220 = vmatprep.subr.bf16.mxu0 %v802_v32 }
 0x187   : > { %766 = vrot.lane.b32.xlu1 %v642_v34, %s1805_s27 }
 0x188   : > { %v331_v53 = vpop.permute.xlu0 %330 }
 0x189   : > { %v334_v54 = vsel %vm332_vm0, %v329_v24, %v331_v53  ;;  %v713_v55 = vpop.permute.xlu1 %712  ;;  %1131 = vmatprep.subr.bf16.mxu1 %v331_v53  ;;  %v1758_v24 = vld [vmem:[%s2706_s2 + $0xbc] ss:$28 sps:$4 sm:$0xff]  }
 0x18a   : > { %466 = vrot.lane.b32.xlu0 %v1785_v44, %s1818_s4  ;;  %1132 = vmatpush1.bf16.msra.mxu1 %v334_v54  ;;  %v801_v56 = vsel %vm778_vm6, %v713_v55, %v715_v46  ;;  %v1763_v44 = vld [vmem:[%s2706_s2 + $0xb8] ss:$28 sps:$4 sm:$0xff]  }
 0x18b   : > { %468 = vrot.lane.b32.xlu1 %v1786_v60, %s1818_s4  ;;  %1221 = vmatpush1.bf16.msra.mxu0 %v801_v56 }
 0x18c   : > { %v721_v61 = vpop.permute.xlu0 %720 }
 0x18d   : > { %v723_v62 = vpop.permute.xlu1 %722 }
 0x18e   : > { %774 = vrot.lane.b32.xlu0 %v645_v6, %s1805_s27  ;;  %v804_v43 = vsel %vm778_vm6, %v721_v61, %v723_v62  ;;  %v1819_v62 = vmov 0  }
 0x18f   : > { %776 = vrot.lane.b32.xlu1 %v2338_v21, %s1805_s27  ;;  %1222 = vmatprep.subr.bf16.mxu0 %v804_v43 }
 0x190   : > { %v340_v7 = vpop.permute.xlu0 %339 }
 0x191   : > { %v342_v10 = vpop.permute.xlu1 %341 }
 0x192   : > { %v348_v11 = vsel %vm347_vm1, %v340_v7, %v342_v10  ;;  %1133 = vmatprep.subr.bf16.mxu1 %v342_v10  ;;  %464 = vrot.lane.b32.xlu0 %v1787_v45, %s1818_s4 }
 0x193   : > { %772 = vrot.lane.b32.xlu1 %v644_v51, %s1805_s27  ;;  %1134 = vmatpush1.bf16.msra.mxu1 %v348_v11 }
 0x194   : > { %v719_v12 = vpop.permute.xlu0 %718 }
 0x195   : > { %v727_v14 = vpop.permute.xlu1 %726  ;;  %v803_v48 = vsel %vm778_vm6, %v719_v12, %v721_v61 }
 0x196   : > { %1223 = vmatpush1.bf16.msra.mxu0 %v803_v48 }
 0x198   : > { %v729_v52 = vpop.permute.xlu0 %728 }
 0x199   : > { %v344_v16 = vpop.permute.xlu1 %343  ;;  %v806_v18 = vsel %vm778_vm6, %v727_v14, %v729_v52 }
 0x19a   : > { %1224 = vmatprep.subr.bf16.mxu0 %v806_v18 }
 0x19c   : > { %v346_v19 = vpop.permute.xlu0 %345 }
 0x19d   : > { %v349_v20 = vsel %vm347_vm1, %v344_v16, %v346_v19  ;;  %v725_v58 = vpop.permute.xlu1 %724  ;;  %1135 = vmatprep.subr.bf16.mxu1 %v346_v19 }
 0x19e   : > { %1136 = vmatpush1.bf16.msra.mxu1 %v349_v20  ;;  %v805_v21 = vsel %vm778_vm6, %v725_v58, %v727_v14 }
 0x19f   : > { %1225 = vmatpush1.bf16.msra.mxu0 %v805_v21 }
 0x1a0   : > { %v733_v22 = vpop.permute.xlu0 %732 }
 0x1a1   : > { %v735_v23 = vpop.permute.xlu1 %734 }
 0x1a2   : > { %v808_v57 = vsel %vm778_vm6, %v733_v22, %v735_v23 }
 0x1a3   : > { %1226 = vmatprep.subr.bf16.mxu0 %v808_v57 }
 0x1a4   : > { %v355_v0 = vpop.permute.xlu0 %354 }
 0x1a5   : > { %v357_v59 = vpop.permute.xlu1 %356 }
 0x1a6   : > { %v363_v2 = vsel %vm362_vm2, %v355_v0, %v357_v59  ;;  %1137 = vmatprep.subr.bf16.mxu1 %v357_v59 }
 0x1a7   : > { %1138 = vmatpush1.bf16.msra.mxu1 %v363_v2 }
 0x1a8   : > { %v731_v25 = vpop.permute.xlu0 %730 }
 0x1a9   : > { %v739_v27 = vpop.permute.xlu1 %738  ;;  %v807_v8 = vsel %vm778_vm6, %v731_v25, %v733_v22 }
 0x1aa   : > { %1227 = vmatpush1.bf16.msra.mxu0 %v807_v8 }
 0x1ac   : > { %v741_v29 = vpop.permute.xlu0 %740 }
 0x1ad   : > { %v359_v30 = vpop.permute.xlu1 %358  ;;  %v810_v1 = vsel %vm778_vm6, %v739_v27, %v741_v29 }
 0x1ae   : > { %1228 = vmatprep.subr.bf16.mxu0 %v810_v1 }
 0x1b0   : > { %v361_v63 = vpop.permute.xlu0 %360 }
 0x1b1   : > { %v364_v9 = vsel %vm362_vm2, %v359_v30, %v361_v63  ;;  %v737_v33 = vpop.permute.xlu1 %736  ;;  %1139 = vmatprep.subr.bf16.mxu1 %v361_v63 }
 0x1b2   : > { %1140 = vmatpush1.bf16.msra.mxu1 %v364_v9  ;;  %v809_v35 = vsel %vm778_vm6, %v737_v33, %v739_v27 }
 0x1b3   : > { %1229 = vmatpush1.bf16.msra.mxu0 %v809_v35 }
 0x1b4   : > { %v398_v28 = vpop.permute.xlu0 %397 }
 0x1b5   : > { %v400_v31 = vpop.permute.xlu1 %399 }
 0x1b6   : > { %v409_v15 = vsel %vm407_vm3, %v398_v28, %v400_v31  ;;  %1231 = vmatmul.mubr.bf16.vlgmr.msra.gmra.mrb[0].mxu0 %v1743_v3 }
 0x1b7   : > { %1141 = vmatprep.subr.bf16.mxu1 %v409_v15  ;;  %1240 = vmatprep.mubr.bf16.mxu0 %v1746_v4 }
 0x1b8   : > { %v396_v38 = vpop.permute.xlu0 %395 }
 0x1b9   : > { %v408_v39 = vsel %vm407_vm3, %v396_v38, %v398_v28  ;;  %v404_v40 = vpop.permute.xlu1 %403 }
 0x1ba   : > { %1142 = vmatpush1.bf16.msra.mxu1 %v408_v39 }
 0x1bc   : > { %v406_v41 = vpop.permute.xlu0 %405 }
 0x1bd   : > { %v402_v5 = vpop.permute.xlu1 %401  ;;  %v411_v42 = vsel %vm407_vm3, %v404_v40, %v406_v41 }
 0x1be   : > { %v410_v36 = vsel %vm407_vm3, %v402_v5, %v404_v40  ;;  %1143 = vmatprep.subr.bf16.mxu1 %v411_v42  ;;  %1241 = vmatmul.mubr.bf16.gmra.mrb[4].mxu0 %v1751_v13 }
 0x1bf   : > { %1144 = vmatpush1.bf16.msra.mxu1 %v410_v36  ;;  %1250 = vmatprep.mubr.bf16.mxu0 %v1752_v17  ;;  %v1764_v36 = vld [vmem:[%s2706_s2 + $0x8] ss:$28 sps:$4 sm:$0xff]  }
 0x1c0   : > { %v419_v46 = vpop.permute.xlu0 %418 }
 0x1c1   : > { %v421_v26 = vpop.permute.xlu1 %420 }
 0x1c2   : > { %v430_v47 = vsel %vm428_vm4, %v419_v46, %v421_v26  ;;  %v1767_v26 = vld [vmem:[%s2706_s2 + $0x18] ss:$28 sps:$4 sm:$0xff]  }
 0x1c3   : > { %1145 = vmatprep.subr.bf16.mxu1 %v430_v47  ;;  %v1768_v47 = vld [vmem:[%s2706_s2 + $0x44] ss:$28 sps:$4 sm:$0xff]  }
 0x1c4   : > { %v745_v32 = vpop.permute.xlu0 %744 }
 0x1c5   : > { %v747_v34 = vpop.permute.xlu1 %746 }
 0x1c6   : > { %v812_v37 = vsel %vm778_vm6, %v745_v32, %v747_v34  ;;  %1251 = vmatmul.mubr.bf16.gmra.mrb[8].mxu0 %v1757_v49  ;;  %v1770_v49 = vld [vmem:[%s2706_s2 + $0x40] ss:$28 sps:$4 sm:$0xff]   ;;  %v1774_v34 = vld [vmem:[%s2706_s2 + $0x78] ss:$28 sps:$4 sm:$0xff]  }
 0x1c7   : > { %1271 = vmatprep.subr.bf16.mxu0 %v812_v37  ;;  %1260 = vmatprep.mubr.bf16.mxu0 %v1758_v24  ;;  %v1771_v24 = vld [vmem:[%s2706_s2 + $0x50] ss:$28 sps:$4 sm:$0xff]   ;;  %v1775_v37 = vld [vmem:[%s2706_s2 + $0x88] ss:$28 sps:$4 sm:$0xff]  }
 0x1c8   : > { %v417_v50 = vpop.permute.xlu0 %416 }
 0x1c9   : > { %v429_v53 = vsel %vm428_vm4, %v417_v50, %v419_v46  ;;  %v743_v54 = vpop.permute.xlu1 %742  ;;  %v1776_v50 = vld [vmem:[%s2706_s2 + $0xb4] ss:$28 sps:$4 sm:$0xff]  }
 0x1ca   : > { %v811_v55 = vsel %vm778_vm6, %v743_v54, %v745_v32  ;;  %1146 = vmatpush1.bf16.msra.mxu1 %v429_v53  ;;  %v1772_v32 = vld [vmem:[%s2706_s2 + $0x7c] ss:$28 sps:$4 sm:$0xff]   ;;  %v1778_v53 = vld [vmem:[%s2706_s2 + $0xb0] ss:$28 sps:$4 sm:$0xff]  }
 0x1cb   : > { %1272 = vmatpush1.bf16.msra.mxu0 %v811_v55  ;;  %v1779_v54 = vld [vmem:[%s2706_s2 + $0xc0] ss:$28 sps:$4 sm:$0xff]   ;;  %v1346_v55 = vlaneseq }
 0x1cc   : > { %v425_v56 = vpop.permute.xlu0 %424 }
 0x1cd   : > { %v427_v60 = vpop.permute.xlu1 %426 }
 0x1ce   : > { %v432_v61 = vsel %vm428_vm4, %v425_v56, %v427_v60  ;;  %1261 = vmatmul.mubr.bf16.gmra.mrb[12].mxu0 %v1763_v44  ;;  %v1347_v44 = vshrl.u32 %v1346_v55, 7  ;;  %v1344_v60 = vld [vmem:[%s2704_s0] sm:$0x3] }
 0x1cf   : > { %1147 = vmatprep.subr.bf16.mxu1 %v432_v61  ;;  %1303 = vmatprep.mubr.bf16.mxu0 %v1819_v62 }
 0x1d0   : > { %v751_v6 = vpop.permute.xlu0 %750  ;;  %v1348_v61 = vsub.s32 0, %v1347_v44 }
 0x1d1   : > { %v753_v43 = vpop.permute.xlu1 %752 }
 0x1d2   : > { %v814_v7 = vsel %vm778_vm6, %v751_v6, %v753_v43 }
 0x1d3   : > { %1273 = vmatprep.subr.bf16.mxu0 %v814_v7 }
 0x1d4   : > { %v423_v10 = vpop.permute.xlu0 %422 }
 0x1d5   : > { %v431_v51 = vsel %vm428_vm4, %v423_v10, %v425_v56  ;;  %v749_v11 = vpop.permute.xlu1 %748  ;;  %v1352_v56 = vsub.s32 1, %v1347_v44 }
 0x1d6   : > { %v813_v45 = vsel %vm778_vm6, %v749_v11, %v751_v6  ;;  %1148 = vmatpush1.bf16.msra.mxu1 %v431_v51  ;;  %v2540_v51 = vrot.slane %v1344_v60, %v1348_v61 }
 0x1d7   : > { %1274 = vmatpush1.bf16.msra.mxu0 %v813_v45  ;;  %v2536_v7 = vrot.slane %v1344_v60, %v1352_v56 }
 0x1d8   : > { %v440_v12 = vpop.permute.xlu0 %439 }
 0x1d9   : > { %v442_v14 = vpop.permute.xlu1 %441 }
 0x1da   : > { %v451_v48 = vsel %vm449_vm5, %v440_v12, %v442_v14 }
 0x1db   : > { %1149 = vmatprep.subr.bf16.mxu1 %v451_v48 }
 0x1dc   : > { %v757_v52 = vpop.permute.xlu0 %756 }
 0x1dd   : > { %v759_v16 = vpop.permute.xlu1 %758 }
 0x1de   : > { %v816_v18 = vsel %vm778_vm6, %v757_v52, %v759_v16 }
 0x1df   : > { %1275 = vmatprep.subr.bf16.mxu0 %v816_v18 }
 0x1e0   : > { %v438_v19 = vpop.permute.xlu0 %437 }
 0x1e1   : > { %v450_v20 = vsel %vm449_vm5, %v438_v19, %v440_v12  ;;  %v755_v58 = vpop.permute.xlu1 %754 }
 0x1e2   : > { %v815_v21 = vsel %vm778_vm6, %v755_v58, %v757_v52  ;;  %1150 = vmatpush1.bf16.msra.mxu1 %v450_v20 }
 0x1e3   : > { %1276 = vmatpush1.bf16.msra.mxu0 %v815_v21 }
 0x1e4   : > { %v446_v22 = vpop.permute.xlu0 %445 }
 0x1e5   : > { %v448_v23 = vpop.permute.xlu1 %447 }
 0x1e6   : > { %v453_v57 = vsel %vm449_vm5, %v446_v22, %v448_v23 }
 0x1e7   : > { %1151 = vmatprep.subr.bf16.mxu1 %v453_v57 }
 0x1e8   : > { %v763_v0 = vpop.permute.xlu0 %762 }
 0x1e9   : > { %v765_v59 = vpop.permute.xlu1 %764 }
 0x1ea   : > { %v818_v2 = vsel %vm778_vm6, %v763_v0, %v765_v59 }
 0x1eb   : > { %1277 = vmatprep.subr.bf16.mxu0 %v818_v2 }
 0x1ec   : > { %v444_v25 = vpop.permute.xlu0 %443 }
 0x1ed   : > { %v452_v27 = vsel %vm449_vm5, %v444_v25, %v446_v22  ;;  %v761_v8 = vpop.permute.xlu1 %760 }
 0x1ee   : > { %v817_v29 = vsel %vm778_vm6, %v761_v8, %v763_v0  ;;  %1152 = vmatpush1.bf16.msra.mxu1 %v452_v27 }
 0x1ef   : > { %1278 = vmatpush1.bf16.msra.mxu0 %v817_v29 }
 0x1f0   : > { %v461_v30 = vpop.permute.xlu0 %460 }
 0x1f1   : > { %v463_v1 = vpop.permute.xlu1 %462 }
 0x1f2   : > { %v472_v63 = vsel %vm470_vm7, %v461_v30, %v463_v1 }
 0x1f3   : > { %1153 = vmatprep.subr.bf16.mxu1 %v472_v63 }
 0x1f4   : > { %v769_v9 = vpop.permute.xlu0 %768 }
 0x1f5   : > { %v771_v33 = vpop.permute.xlu1 %770 }
 0x1f6   : > { %v820_v35 = vsel %vm778_vm6, %v769_v9, %v771_v33 }
 0x1f7   : > { %1279 = vmatprep.subr.bf16.mxu0 %v820_v35 }
 0x1f8   : > { %v459_v3 = vpop.permute.xlu0 %458 }
 0x1f9   : > { %v471_v4 = vsel %vm470_vm7, %v459_v3, %v461_v30  ;;  %v767_v28 = vpop.permute.xlu1 %766 }
 0x1fa   : > { %v819_v31 = vsel %vm778_vm6, %v767_v28, %v769_v9  ;;  %1154 = vmatpush1.bf16.msra.mxu1 %v471_v4 }
 0x1fb   : > { %1280 = vmatpush1.bf16.msra.mxu0 %v819_v31 }
 0x1fc   : > { %v467_v15 = vpop.permute.xlu0 %466 }
 0x1fd   : > { %v469_v38 = vpop.permute.xlu1 %468 }
 0x1fe   : > { %v474_v39 = vsel %vm470_vm7, %v467_v15, %v469_v38 }
 0x1ff   : > { %1155 = vmatprep.subr.bf16.mxu1 %v474_v39 }
 0x200   : > { %v775_v40 = vpop.permute.xlu0 %774 }
 0x201   : > { %v777_v13 = vpop.permute.xlu1 %776 }
 0x202   : > { %v822_v17 = vsel %vm778_vm6, %v775_v40, %v777_v13 }
 0x203   : > { %1281 = vmatprep.subr.bf16.mxu0 %v822_v17 }
 0x204   : > { %v465_v41 = vpop.permute.xlu0 %464 }
 0x205   : > { %v473_v5 = vsel %vm470_vm7, %v465_v41, %v467_v15  ;;  %v773_v42 = vpop.permute.xlu1 %772 }
 0x206   : > { %v821_v46 = vsel %vm778_vm6, %v773_v42, %v775_v40  ;;  %1156 = vmatpush1.bf16.msra.mxu1 %v473_v5  ;;  %vm1372_vm6 = vcmask 719872  }
 0x207   : > { %1282 = vmatpush1.bf16.msra.mxu0 %v821_v46 }
 0x209   : > { %1158 = vmatmul.mubr.bf16.vlgmr.msra.gmra.mrb[0].mxu1 %v1764_v36 }
 0x20a   : > { %1642 = vmatmul.mubr.msk.bf16.vlgmr.msra.gmra.mrb[0].mxu0 %vm1039_vm8, %v1767_v26  ;;  %1167 = vmatprep.mubr.bf16.mxu1 %v1768_v47 }
 0x20b   : > { %1313 = vmatprep.mubr.bf16.mxu0 %v1819_v62 }
 0x211   : > { %1168 = vmatmul.mubr.bf16.gmra.mrb[4].mxu1 %v1770_v49 }
 0x212   : > { %1643 = vmatmul.mubr.msk.bf16.gmra.mrb[4].mxu0 %vm1039_vm8, %v1771_v24  ;;  %1177 = vmatprep.mubr.bf16.mxu1 %v1772_v32 }
 0x213   : > { %1323 = vmatprep.mubr.bf16.mxu0 %v1819_v62 }
 0x219   : > { %1178 = vmatmul.mubr.bf16.gmra.mrb[8].mxu1 %v1774_v34 }
 0x21a   : > { %1644 = vmatmul.mubr.msk.bf16.gmra.mrb[8].mxu0 %vm1039_vm8, %v1775_v37  ;;  %1187 = vmatprep.mubr.bf16.mxu1 %v1776_v50 }
 0x21b   : > { %1333 = vmatprep.mubr.bf16.mxu0 %v1819_v62 }
 0x221   : > { %1188 = vmatmul.mubr.bf16.gmra.mrb[12].mxu1 %v1778_v53 }
 0x222   : > { %1645 = vmatmul.mubr.msk.bf16.gmra.mrb[12].mxu0 %vm1039_vm8, %v1779_v54 }
 0x2dc   : > { %v1159_v62 = vpop.f32.mrb[0].mxu1 }
 0x2dd   : > { %v1305_v6 = vpop.f32.mrb[0].mxu0  ;;  %v1161_v43 = vpop.f32.mrb[1].mxu1 }
 0x2de   : > { %v2538_v10 = vadd.f32 %v1305_v6, %v1159_v62  ;;  %v1307_v11 = vpop.f32.mrb[1].mxu0  ;;  %v1163_v45 = vpop.f32.mrb[2].mxu1 }
 0x2df   : > { %v2542_v12 = vadd.f32 %v1307_v11, %v1161_v43  ;;  %v1309_v14 = vpop.f32.mrb[2].mxu0  ;;  %v1165_v48 = vpop.f32.mrb[3].mxu1 }
 0x2e0   : > { %v2544_v52 = vadd.f32 %v1309_v14, %v1163_v45  ;;  %v1311_v16 = vpop.f32.mrb[3].mxu0  ;;  %v1356_v20 = vmul.f32 %v2538_v10, %v2540_v51 }
 0x2e1   : > { %v1357_v18 = vmul.f32 %v2542_v12, %v2536_v7  ;;  %v2548_v19 = vadd.f32 %v1311_v16, %v1165_v48 }
 0x2e2   : > { %v1358_v22 = vmul.f32 %v2544_v52, %v2540_v51 }
 0x2e3   : > { %v1359_v58 = vmul.f32 %v2548_v19, %v2536_v7  ;;  %v1373_v21 = vsel %vm1372_vm6, %v1357_v18, 0.0 }
 0x2e4   : > { %v1169_v23 = vpop.f32.mrb[4].mxu1  ;;  %v1374_v57 = vadd.f32 %v1373_v21, %v1356_v20 }
 0x2e5   : > { %v1315_v0 = vpop.f32.mrb[4].mxu0  ;;  %v1171_v59 = vpop.f32.mrb[5].mxu1  ;;  %v1377_v2 = vsel %vm1372_vm6, %v1359_v58, 0.0 }
 0x2e6   : > { %v2558_v25 = vadd.f32 %v1315_v0, %v1169_v23  ;;  %v1317_v27 = vpop.f32.mrb[5].mxu0  ;;  %1375 = vadd.xlane.f32.xlu0 %v1374_v57  ;;  %v1173_v8 = vpop.f32.mrb[6].mxu1  ;;  %v1378_v29 = vadd.f32 %v1377_v2, %v1358_v22 }
 0x2e7   : > { %v2560_v30 = vadd.f32 %v1317_v27, %v1171_v59  ;;  %v1319_v1 = vpop.f32.mrb[6].mxu0  ;;  %v1175_v63 = vpop.f32.mrb[7].mxu1 }
 0x2e8   : > { %v2562_v9 = vadd.f32 %v1319_v1, %v1173_v8  ;;  %v1321_v33 = vpop.f32.mrb[7].mxu0  ;;  %1379 = vadd.xlane.f32.xlu1 %v1378_v29  ;;  %v1360_v4 = vmul.f32 %v2558_v25, %v2540_v51 }
 0x2e9   : > { %v1361_v35 = vmul.f32 %v2560_v30, %v2536_v7  ;;  %v2566_v3 = vadd.f32 %v1321_v33, %v1175_v63 }
 0x2ea   : > { %v1362_v17 = vmul.f32 %v2562_v9, %v2540_v51 }
 0x2eb   : > { %v1363_v28 = vmul.f32 %v2566_v3, %v2536_v7  ;;  %v1381_v31 = vsel %vm1372_vm6, %v1361_v35, 0.0 }
 0x2ec   : > { %v1179_v15 = vpop.f32.mrb[8].mxu1  ;;  %v1382_v38 = vadd.f32 %v1381_v31, %v1360_v4 }
 0x2ed   : > { %v1325_v39 = vpop.f32.mrb[8].mxu0  ;;  %v1181_v40 = vpop.f32.mrb[9].mxu1  ;;  %v1385_v13 = vsel %vm1372_vm6, %v1363_v28, 0.0 }
 0x2ee   : > { %v2576_v41 = vadd.f32 %v1325_v39, %v1179_v15  ;;  %v1327_v5 = vpop.f32.mrb[9].mxu0  ;;  %1383 = vadd.xlane.f32.xlu0 %v1382_v38  ;;  %v1183_v42 = vpop.f32.mrb[10].mxu1  ;;  %v1386_v24 = vadd.f32 %v1385_v13, %v1362_v17 }
 0x2ef   : > { %v2578_v36 = vadd.f32 %v1327_v5, %v1181_v40  ;;  %v1329_v46 = vpop.f32.mrb[10].mxu0  ;;  %v1185_v26 = vpop.f32.mrb[11].mxu1 }
 0x2f0   : > { %v2580_v47 = vadd.f32 %v1329_v46, %v1183_v42  ;;  %v1331_v49 = vpop.f32.mrb[11].mxu0  ;;  %v1364_v37 = vmul.f32 %v2576_v41, %v2540_v51 }
 0x2f1   : > { %v1365_v32 = vmul.f32 %v2578_v36, %v2536_v7  ;;  %v2584_v34 = vadd.f32 %v1331_v49, %v1185_v26 }
 0x2f2   : > { %1387 = vadd.xlane.f32.xlu0 %v1386_v24  ;;  %v1366_v54 = vmul.f32 %v2580_v47, %v2540_v51 }
 0x2f3   : > { %v1367_v50 = vmul.f32 %v2584_v34, %v2536_v7  ;;  %v1389_v53 = vsel %vm1372_vm6, %v1365_v32, 0.0 }
 0x2f4   : > { %v1189_v55 = vpop.f32.mrb[12].mxu1  ;;  %v1390_v44 = vadd.f32 %v1389_v53, %v1364_v37 }
 0x2f5   : > { %v1335_v56 = vpop.f32.mrb[12].mxu0  ;;  %v1191_v60 = vpop.f32.mrb[13].mxu1  ;;  %v1393_v61 = vsel %vm1372_vm6, %v1367_v50, 0.0 }
 0x2f6   : > { %v2594_v62 = vadd.f32 %v1335_v56, %v1189_v55  ;;  %v1337_v6 = vpop.f32.mrb[13].mxu0  ;;  %1391 = vadd.xlane.f32.xlu1 %v1390_v44  ;;  %v1193_v43 = vpop.f32.mrb[14].mxu1  ;;  %v1394_v11 = vadd.f32 %v1393_v61, %v1366_v54 }
 0x2f7   : > { %v2596_v45 = vadd.f32 %v1337_v6, %v1191_v60  ;;  %v1339_v14 = vpop.f32.mrb[14].mxu0  ;;  %v1195_v48 = vpop.f32.mrb[15].mxu1 }
 0x2f8   : > { %v2598_v16 = vadd.f32 %v1339_v14, %v1193_v43  ;;  %v1341_v18 = vpop.f32.mrb[15].mxu0  ;;  %1395 = vadd.xlane.f32.xlu0 %v1394_v11  ;;  %v1368_v21 = vmul.f32 %v2594_v62, %v2540_v51 }
 0x2f9   : > { %v1369_v20 = vmul.f32 %v2596_v45, %v2536_v7  ;;  %v2602_v58 = vadd.f32 %v1341_v18, %v1195_v48 }
 0x2fa   : > { %v1370_v57 = vmul.f32 %v2598_v16, %v2540_v51 }
 0x2fb   : > { %v1371_v22 = vmul.f32 %v2602_v58, %v2536_v7  ;;  %v1397_v23 = vsel %vm1372_vm6, %v1369_v20, 0.0 }
 0x2fc   : > { %v1398_v0 = vadd.f32 %v1397_v23, %v1368_v21 }
 0x2fd   : > { %v1401_v59 = vsel %vm1372_vm6, %v1371_v22, 0.0 }
 0x2fe   : > { %1399 = vadd.xlane.f32.xlu1 %v1398_v0  ;;  %v1402_v2 = vadd.f32 %v1401_v59, %v1370_v57 }
 0x300   : > { %1403 = vadd.xlane.f32.xlu0 %v1402_v2 }
 0x373   : > { %v1376_v27 = vpop.xlane.xlu0 %1375 }
 0x375   : > { %v1380_v29 = vpop.xlane.xlu1 %1379 }
 0x376   : > { %v1405_v1 = vadd.f32 %v1380_v29, %v1376_v27 }
 0x37b   : > { %v1384_v8 = vpop.xlane.xlu0 %1383 }
 0x37c   : > { %v1406_v33 = vadd.f32 %v1405_v1, %v1384_v8 }
 0x37f   : > { %v1388_v63 = vpop.xlane.xlu0 %1387 }
 0x380   : > { %v1407_v4 = vadd.f32 %v1406_v33, %v1388_v63 }
 0x383   : > { %v1392_v35 = vpop.xlane.xlu1 %1391 }
 0x384   : > { %v1408_v28 = vadd.f32 %v1407_v4, %v1392_v35 }
 0x385   : > { %v1396_v31 = vpop.xlane.xlu0 %1395 }
 0x386   : > { %v1409_v15 = vadd.f32 %v1408_v28, %v1396_v31 }
 0x38b   : > { %v1400_v38 = vpop.xlane.xlu1 %1399 }
 0x38c   : > { %v1410_v39 = vadd.f32 %v1409_v15, %v1400_v38 }
 0x38d   : > { %v1404_v40 = vpop.xlane.xlu0 %1403 }
 0x38e   : > { %v1411_v13 = vadd.f32 %v1410_v39, %v1404_v40 }
 0x390   : > { %v2612_v17 = vmul.f32 0.001953125, %v1411_v13 }
 0x392   : > { %v1423_v5 = vsub.f32 %v2544_v52, %v2612_v17  ;;  %v1424_v42 = vsub.f32 %v2548_v19, %v2612_v17  ;;  %v1413_v46 = vsub.f32 %v2538_v10, %v2612_v17  ;;  %v1414_v26 = vsub.f32 %v2542_v12, %v2612_v17 }
 0x393   : > { %v1449_v49 = vsub.f32 %v2562_v9, %v2612_v17  ;;  %v1450_v24 = vsub.f32 %v2566_v3, %v2612_v17  ;;  %v1436_v32 = vsub.f32 %v2558_v25, %v2612_v17  ;;  %v1437_v37 = vsub.f32 %v2560_v30, %v2612_v17 }
 0x394   : > { %v1425_v50 = vmul.f32 %v1423_v5, %v2540_v51  ;;  %v1426_v53 = vmul.f32 %v1424_v42, %v2536_v7  ;;  %v1415_v54 = vmul.f32 %v1413_v46, %v2540_v51  ;;  %v1416_v55 = vmul.f32 %v1414_v26, %v2536_v7 }
 0x395   : > { %v1451_v44 = vmul.f32 %v1449_v49, %v2540_v51  ;;  %v1452_v56 = vmul.f32 %v1450_v24, %v2536_v7  ;;  %v1438_v60 = vmul.f32 %v1436_v32, %v2540_v51  ;;  %v1439_v61 = vmul.f32 %v1437_v37, %v2536_v7 }
 0x396   : > { %v1427_v6 = vmul.f32 %v1425_v50, %v1425_v50  ;;  %v1428_v43 = vmul.f32 %v1426_v53, %v1426_v53  ;;  %v1417_v11 = vmul.f32 %v1415_v54, %v1415_v54  ;;  %v1418_v14 = vmul.f32 %v1416_v55, %v1416_v55 }
 0x397   : > { %v1453_v48 = vmul.f32 %v1451_v44, %v1451_v44  ;;  %v1454_v18 = vmul.f32 %v1452_v56, %v1452_v56  ;;  %v1440_v20 = vmul.f32 %v1438_v60, %v1438_v60  ;;  %v1441_v21 = vmul.f32 %v1439_v61, %v1439_v61 }
 0x398   : > { %v1429_v22 = vsel %vm1372_vm6, %v1428_v43, 0.0  ;;  %v1419_v23 = vsel %vm1372_vm6, %v1418_v14, 0.0  ;;  %v1475_v57 = vsub.f32 %v2580_v47, %v2612_v17  ;;  %v1476_v0 = vsub.f32 %v2584_v34, %v2612_v17 }
 0x399   : > { %v1430_v59 = vadd.f32 %v1429_v22, %v1427_v6  ;;  %v1420_v2 = vadd.f32 %v1419_v23, %v1417_v11  ;;  %v1455_v27 = vsel %vm1372_vm6, %v1454_v18, 0.0  ;;  %v1442_v8 = vsel %vm1372_vm6, %v1441_v21, 0.0 }
 0x39a   : > { %v1456_v29 = vadd.f32 %v1455_v27, %v1453_v48  ;;  %v1443_v1 = vadd.f32 %v1442_v8, %v1440_v20  ;;  %v1477_v63 = vmul.f32 %v1475_v57, %v2540_v51  ;;  %v1478_v33 = vmul.f32 %v1476_v0, %v2536_v7 }
 0x39b   : > { %1431 = vadd.xlane.f32.xlu0 %v1430_v59  ;;  %1421 = vadd.xlane.f32.xlu1 %v1420_v2  ;;  %v1462_v35 = vsub.f32 %v2576_v41, %v2612_v17  ;;  %v1463_v4 = vsub.f32 %v2578_v36, %v2612_v17  ;;  %v1501_v28 = vsub.f32 %v2598_v16, %v2612_v17  ;;  %v1820_v14 = vmov 0.0  }
 0x39c   : > { %v1479_v31 = vmul.f32 %v1477_v63, %v1477_v63  ;;  %v1480_v15 = vmul.f32 %v1478_v33, %v1478_v33  ;;  %v1502_v38 = vsub.f32 %v2602_v58, %v2612_v17  ;;  %v1488_v39 = vsub.f32 %v2594_v62, %v2612_v17  ;;  %1525 = vst [vmem:[%s2674_s29 + $0x10] sm:$0xff] %v1820_v14 }
 0x39d   : > { %v1464_v40 = vmul.f32 %v1462_v35, %v2540_v51  ;;  %v1465_v13 = vmul.f32 %v1463_v4, %v2536_v7  ;;  %v1503_v5 = vmul.f32 %v1501_v28, %v2540_v51  ;;  %v1489_v42 = vsub.f32 %v2596_v45, %v2612_v17  ;;  %1523 = vst [vmem:[%s2674_s29] sm:$0xff] %v1820_v14 }
 0x39e   : > { %v1481_v46 = vsel %vm1372_vm6, %v1480_v15, 0.0  ;;  %v1504_v26 = vmul.f32 %v1502_v38, %v2536_v7  ;;  %v1490_v49 = vmul.f32 %v1488_v39, %v2540_v51  ;;  %v1434_v27 = vmax.f32 %v2538_v10, %v2544_v52 }
 0x39f   : > { %1457 = vadd.xlane.f32.xlu0 %v1456_v29  ;;  %1444 = vadd.xlane.f32.xlu1 %v1443_v1  ;;  %v1466_v24 = vmul.f32 %v1464_v40, %v1464_v40  ;;  %v1467_v32 = vmul.f32 %v1465_v13, %v1465_v13  ;;  %v1491_v50 = vmul.f32 %v1489_v42, %v2536_v7 }
 0x3a0   : > { %v1506_v37 = vmul.f32 %v1504_v26, %v1504_v26  ;;  %v1482_v53 = vadd.f32 %v1481_v46, %v1479_v31  ;;  %v1505_v55 = vmul.f32 %v1503_v5, %v1503_v5  ;;  %v1492_v60 = vmul.f32 %v1490_v49, %v1490_v49 }
 0x3a1   : > { %v1468_v54 = vsel %vm1372_vm6, %v1467_v32, 0.0  ;;  %v1493_v61 = vmul.f32 %v1491_v50, %v1491_v50  ;;  %v1435_v8 = vmax.f32 %v2542_v12, %v2548_v19  ;;  %v1447_v1 = vmax.f32 %v1434_v27, %v2558_v25 }
 0x3a2   : > { %v1469_v44 = vadd.f32 %v1468_v54, %v1466_v24  ;;  %v1507_v56 = vsel %vm1372_vm6, %v1506_v37, 0.0 }
 0x3a3   : > { %1483 = vadd.xlane.f32.xlu0 %v1482_v53  ;;  %v1494_v6 = vsel %vm1372_vm6, %v1493_v61, 0.0  ;;  %v1508_v43 = vadd.f32 %v1507_v56, %v1505_v55  ;;  %v1448_v63 = vmax.f32 %v1435_v8, %v2560_v30  ;;  %v1460_v31 = vmax.f32 %v1447_v1, %v2562_v9 }
 0x3a4   : > { %1470 = vadd.xlane.f32.xlu1 %v1469_v44  ;;  %v1495_v11 = vadd.f32 %v1494_v6, %v1492_v60 }
 0x3a5   : > { %v1461_v15 = vmax.f32 %v1448_v63, %v2566_v3  ;;  %v1473_v39 = vmax.f32 %v1460_v31, %v2576_v41 }
 0x3a7   : > { %1509 = vadd.xlane.f32.xlu0 %v1508_v43  ;;  %v1474_v10 = vmax.f32 %v1461_v15, %v2578_v36  ;;  %v1486_v12 = vmax.f32 %v1473_v39, %v2580_v47 }
 0x3a8   : > { %1496 = vadd.xlane.f32.xlu1 %v1495_v11 }
 0x3a9   : > { %v1487_v19 = vmax.f32 %v1474_v10, %v2584_v34  ;;  %v1499_v25 = vmax.f32 %v1486_v12, %v2594_v62 }
 0x3ab   : > { %v1500_v30 = vmax.f32 %v1487_v19, %v2596_v45  ;;  %v1512_v40 = vmax.f32 %v1499_v25, %v2598_v16 }
 0x3ad   : > { %v1513_v9 = vmax.f32 %v1500_v30, %v2602_v58  ;;  %v1517_v41 = vsub.f32 %v1512_v40, %v2612_v17 }
 0x3af   : > { %v1518_v3 = vsub.f32 %v1513_v9, %v2612_v17 }
 0x428   : > { %v1432_v48 = vpop.xlane.xlu0 %1431  ;;  %v1422_v18 = vpop.xlane.xlu1 %1421 }
 0x429   : > { %v1433_v20 = vadd.f32 %v1432_v48, %v1422_v18 }
 0x42c   : > { %v1458_v21 = vpop.xlane.xlu0 %1457  ;;  %v1445_v22 = vpop.xlane.xlu1 %1444 }
 0x42d   : > { %v1446_v23 = vadd.f32 %v1445_v22, %v1433_v20 }
 0x42f   : > { %v1459_v57 = vadd.f32 %v1458_v21, %v1446_v23 }
 0x430   : > { %v1484_v0 = vpop.xlane.xlu0 %1483 }
 0x431   : > { %v1471_v59 = vpop.xlane.xlu1 %1470 }
 0x432   : > { %v1472_v2 = vadd.f32 %v1471_v59, %v1459_v57 }
 0x434   : > { %v1485_v29 = vadd.f32 %v1484_v0, %v1472_v2  ;;  %v1510_v4 = vpop.xlane.xlu0 %1509 }
 0x435   : > { %v1497_v33 = vpop.xlane.xlu1 %1496 }
 0x436   : > { %v1498_v35 = vadd.f32 %v1497_v33, %v1485_v29 }
 0x438   : > { %v1511_v28 = vadd.f32 %v1510_v4, %v1498_v35 }
 0x43a   : > { %v1514_v38 = vmul.f32 0.001953125, %v1511_v28 }
 0x43c   : > { %v1515_v52 = vadd.f32 1e-05, %v1514_v38 }
 0x43e   : > { %1780 = vrsqrt.f32 %v1515_v52 }
 0x448   : > { %v1781_v36 = vpop.eup %1780 }
 0x449   : > { %v1520_v13 = vmul.f32 %v1781_v36, %v1518_v3  ;;  %v1519_v47 = vmul.f32 %v1781_v36, %v1517_v41 }
 0x44b   : > { %v1522_v34 = vmul.f32 %v1520_v13, %v2536_v7  ;;  %v1521_v62 = vmul.f32 %v1519_v47, %v2540_v51 }
 0x44d   : > { %1530 = vrot.lane.b32.xlu0 %v1522_v34, %s1821_s13  ;;  %1528 = vrot.lane.b32.xlu1 %v1521_v62, %s1821_s13 }
 0x4bf   : > { %v1531_v45 = vpop.permute.xlu0 %1530  ;;  %v1529_v16 = vpop.permute.xlu1 %1528 }
 0x4c0   : > { %1541 = vst.msk [vmem:[%s2674_s29 + $0x10] sm:$0xff] %vm1540_vm9, %v1531_v45  ;;  %v1533_v58 = vsel %vm1532_vm10, %v1529_v16, %v1531_v45 }
 0x4c1   : > { %1538 = vst.msk [vmem:[%s2674_s29] sm:$0xff] %vm1537_vm11, %v1529_v16  ;;  %1539 = vst [vmem:[%s2674_s29 + $0x8] sm:$0xff] %v1533_v58 }
 0x4c2 PF: > { %s13_s12 = sadd.s32 1, %s1794_s12  }
 0x4c3   : > { %p10_p4 = scmp.ge.s32.totalorder %s13_s12, 4  }
 0x4c5   :  { %12 = sbr.rel (!%p10_p4) target bundleno = 1 (0x1), region = 62 }

// kernel: share_combine3_forward.5
= control target key start
LH: loop header
LB: loop body
LE: loop exit
PB: predicated region body
PF: predicated region fallthrough
CT: control target
= control target key end

     0   :  { %s1796_s21 = smov 0   ;;  %s2209_s0 = inlined_call_operand.vmem [shape: f32[1,216], index: 0, kind: input, shape index: {}]   ;;  %s2210_s1 = inlined_call_operand.vmem [shape: f32[2,8,384], index: 1, kind: input, shape index: {}]   ;;  %s2211_s2 = inlined_call_operand.vmem [shape: f32[2,8,384], index: 2, kind: input, shape index: {}]   ;;  %s2212_s3 = inlined_call_operand.vmem [shape: f32[2,8,384], index: 3, kind: input, shape index: {}]   ;;  %s2213_s4 = inlined_call_operand.vmem [shape: bf16[8,216], index: 4, kind: input, shape index: {}]   ;;  %s2214_s5 = inlined_call_operand.vmem [shape: bf16[8,216], index: 5, kind: input, shape index: {}]   ;;  %s2215_s6 = inlined_call_operand.vmem [shape: f32[2,8,384], index: 6, kind: output, shape index: {}]  }
   0x1 LB: > { %s1287_s22 = sadd.s32 4294967295, %s1734_s21   ;;  %p1291_p0 = scmp.ge.s32.totalorder %s1734_s21, 1  ;;  %s1734_s21 = sphi %s1796_s21, %s16_s21  }
   0x2   : > { %p232_p1 = scmp.lt.s32.totalorder %s1734_s21, 3 }
   0x4   : > { %p233_p2 = pnand %p1291_p0, %p232_p1 }
   0x5   : > { %p272_p3 = scmp.lt.s32.totalorder (!%p233_p2), %s1287_s22, 1  ;;  %s1736_s9 = smov (!%p233_p2), 105   ;;  %vm324_vm3 = vcmask (!%p233_p2), 1039360   ;;  %vm462_vm4 = vcmask (!%p233_p2), 859136   ;;  %vm471_vm5 = vcmask (!%p233_p2), 850944   ;;  %vm489_vm6 = vcmask (!%p233_p2), 809984  }
   0x6   : > { %236 = sbr.rel (%p233_p2) target bundleno = 1907 (0x773), region = 44  ;;  %s1737_s10 = smov (!%p233_p2), 127   ;;  %vm480_vm7 = vcmask (!%p233_p2), 842752   ;;  %vm507_vm8 = vcmask (!%p233_p2), 793600   ;;  %vm498_vm9 = vcmask (!%p233_p2), 801792   ;;  %vm516_vm10 = vcmask (!%p233_p2), 760832  }
   0x7   : > { %s1738_s11 = smov (!%p233_p2), 104   ;;  %s1739_s12 = smov (!%p233_p2), 99   ;;  %vm388_vm11 = vcmask (!%p233_p2), 752640   ;;  %vm671_vm12 = vcmask (!%p233_p2), 719872   ;;  %vm396_vm13 = vcmask (!%p233_p2), 744448   ;;  %vm2222_vm14 = vcmask (!%p233_p2), 1031168  }
   0x8   : > { %s1740_s13 = smov (!%p233_p2), 103   ;;  %s1741_s14 = smov (!%p233_p2), 97   ;;  %vm2219_vm15 = vcmask (!%p233_p2), 998400  }
   0x9   : > { %s1742_s15 = smov (!%p233_p2), 98   ;;  %s1743_s16 = smov (!%p233_p2), 93  }
   0xa   : > { %s1744_s17 = smov (!%p233_p2), 92   ;;  %s1745_s18 = smov (!%p233_p2), 91  }
   0xb   : > { %s1746_s19 = smov (!%p233_p2), 122   ;;  %s1747_s20 = smov (!%p233_p2), 126  }
   0xc   : > { %s1749_s24 = smov (!%p233_p2), 121   ;;  %s1750_s25 = smov (!%p233_p2), 115  }
   0xd   : > { %s2276_s22 = smov (!%p272_p3, %s1287_s22), 1  ;;  %s2217_s27 = smov 90  }
   0xe   : > { %s1804_s23 = smul.u32 24, %s2276_s22  ;;  %s1748_s22 = smov 120  }
   0xf   : > { %s2216_s28 = smov 114   ;;  %s1755_s30 = smov 85  }
  0x10   : > { %s276_s26 = scalar_lea.vmem %s2210_s1, %s1804_s23  ;;  %s281_s29 = scalar_lea.vmem %s2211_s2, %s1804_s23 }
  0x11   : > { %s286_s8 = scalar_lea.vmem %s2212_s3, %s1804_s23  ;;  %v295_v0 = vld [vmem:[%s276_s26 + $0x8] sm:$0xff]  ;;  %v296_v1 = vld [vmem:[%s276_s26 + $0x10] sm:$0xff]  ;;  %v297_v2 = vld [vmem:[%s281_s29] sm:$0xff]  ;;  %s1756_s7 = smov 84  }
  0x12   : > { %v298_v3 = vld [vmem:[%s281_s29 + $0x8] sm:$0xff]  ;;  %v299_v4 = vld [vmem:[%s281_s29 + $0x10] sm:$0xff]  ;;  %v303_v5 = vld [vmem:[%s286_s8] sm:$0xff]  ;;  %s1754_s29 = smov 86  }
  0x13   : > { %v301_v6 = vadd.f32 %v298_v3, %v295_v0  ;;  %v302_v7 = vadd.f32 %v299_v4, %v296_v1  ;;  %v304_v8 = vld [vmem:[%s286_s8 + $0x8] sm:$0xff]  ;;  %v305_v9 = vld [vmem:[%s286_s8 + $0x10] sm:$0xff]  ;;  %v294_v10 = vld [vmem:[%s276_s26] sm:$0xff]  ;;  %s2218_s26 = smov 116   ;;  %s1757_s8 = smov 80  }
  0x14   : > { %v300_v11 = vadd.f32 %v297_v2, %v294_v10 }
  0x15   : > { %v307_v12 = vadd.f32 %v304_v8, %v301_v6  ;;  %v308_v13 = vadd.f32 %v305_v9, %v302_v7 }
  0x16   : > { %v306_v14 = vadd.f32 %v303_v5, %v300_v11 }
  0x17   : > { %vm310_vm0 = vcmp.ge.f32.partialorder %v307_v12, 0.0  ;;  %vm311_vm1 = vcmp.ge.f32.partialorder %v308_v13, 0.0  ;;  %v313_v15 = vmul.f32 0.01, %v307_v12  ;;  %v314_v16 = vmul.f32 0.01, %v308_v13 }
  0x18   : > { %v312_v19 = vmul.f32 0.01, %v306_v14  ;;  %vm309_vm2 = vcmp.ge.f32.partialorder %v306_v14, 0.0 }
  0x19   : > { %v1818_v17 = vsel %vm310_vm0, %v307_v12, %v313_v15  ;;  %v317_v18 = vsel %vm311_vm1, %v308_v13, %v314_v16  ;;  %vm2221_vm0 = vcmask 990208   ;;  %vm2220_vm1 = vcmask 982016  }
  0x1a   : > { %v1345_v20 = vpack.i.bf16 %v317_v18, %v1818_v17  ;;  %v1823_v21 = vsel %vm309_vm2, %v306_v14, %v312_v19  ;;  %vm2232_vm2 = vcmask 949248  }
  0x1b   : > { %v1385_v22 = vpack.i.bf16 %v1818_v17, %v1823_v21 }
  0x1c   : > { %1346 = vrot.lane.b32.xlu1 %v1345_v20, %s1736_s9  ;;  %1341 = vrot.lane.b32.xlu0 %v1345_v20, %s1737_s10 }
  0x20   : > { %1351 = vrot.lane.b32.xlu1 %v1345_v20, %s1738_s11  ;;  %320 = vrot.lane.b32.xlu0 %v1823_v21, %s1737_s10 }
  0x24   : > { %465 = vrot.lane.b32.xlu1 %v1823_v21, %s1738_s11  ;;  %456 = vrot.lane.b32.xlu0 %v1823_v21, %s1736_s9 }
  0x28   : > { %1361 = vrot.lane.b32.xlu1 %v1345_v20, %s1739_s12  ;;  %1356 = vrot.lane.b32.xlu0 %v1345_v20, %s1740_s13 }
  0x2c   : > { %483 = vrot.lane.b32.xlu1 %v1823_v21, %s1739_s12  ;;  %474 = vrot.lane.b32.xlu0 %v1823_v21, %s1740_s13 }
  0x30   : > { %1371 = vrot.lane.b32.xlu1 %v1345_v20, %s1741_s14  ;;  %1366 = vrot.lane.b32.xlu0 %v1345_v20, %s1742_s15 }
  0x34   : > { %501 = vrot.lane.b32.xlu1 %v1823_v21, %s1741_s14  ;;  %492 = vrot.lane.b32.xlu0 %v1823_v21, %s1742_s15 }
  0x38   : > { %1381 = vrot.lane.b32.xlu1 %v1345_v20, %s1743_s16  ;;  %1376 = vrot.lane.b32.xlu0 %v1345_v20, %s1744_s17 }
  0x3c   : > { %510 = vrot.lane.b32.xlu1 %v1823_v21, %s1743_s16  ;;  %384 = vrot.lane.b32.xlu0 %v1823_v21, %s1744_s17 }
  0x40   : > { %522 = vrot.lane.b32.xlu1 %v317_v18, %s1745_s18  ;;  %1386 = vrot.lane.b32.xlu0 %v1385_v22, %s1745_s18 }
  0x44   : > { %1396 = vrot.lane.b32.xlu1 %v1385_v22, %s1746_s19  ;;  %1391 = vrot.lane.b32.xlu0 %v1385_v22, %s1747_s20 }
  0x48   : > { %1406 = vrot.lane.b32.xlu1 %v1385_v22, %s1748_s22  ;;  %1401 = vrot.lane.b32.xlu0 %v1385_v22, %s1749_s24 }
  0x4c   : > { %1416 = vrot.lane.b32.xlu1 %v1385_v22, %s1750_s25  ;;  %1411 = vrot.lane.b32.xlu0 %v1385_v22, %s2218_s26  ;;  %s1760_s26 = smov 43  }
  0x50   : > { %1426 = vrot.lane.b32.xlu1 %v1385_v22, %s2217_s27  ;;  %1421 = vrot.lane.b32.xlu0 %v1385_v22, %s2216_s28  ;;  %s1758_s28 = smov 79  }
  0x54   : > { %1431 = vrot.lane.b32.xlu0 %v1345_v20, %s1754_s29  ;;  %1436 = vrot.lane.b32.xlu1 %v1345_v20, %s1755_s30 }
  0x58   : > { %409 = vrot.lane.b32.xlu0 %v1823_v21, %s1754_s29  ;;  %420 = vrot.lane.b32.xlu1 %v1823_v21, %s1755_s30 }
  0x5c   : > { %1441 = vrot.lane.b32.xlu0 %v1345_v20, %s1756_s7  ;;  %1446 = vrot.lane.b32.xlu1 %v1345_v20, %s1757_s8 }
  0x60   : > { %431 = vrot.lane.b32.xlu0 %v1823_v21, %s1756_s7  ;;  %442 = vrot.lane.b32.xlu1 %v1823_v21, %s1757_s8 }
  0x64   : > { %1451 = vrot.lane.b32.xlu0 %v1345_v20, %s1758_s28 }
  0x8e   : > { %v1347_v23 = vpop.permute.xlu1 %1346  ;;  %v1342_v24 = vpop.permute.xlu0 %1341 }
  0x8f   : > { %v1349_v25 = vunpack.i.h.bf16 %v1347_v23  ;;  %v1348_v26 = vunpack.i.l.bf16 %v1347_v23  ;;  %v1344_v27 = vunpack.i.h.bf16 %v1342_v24  ;;  %v1343_v28 = vunpack.i.l.bf16 %v1342_v24 }
  0x91   : > { %v637_v29 = vpack.c.bf16 %v1343_v28, %v1818_v17  ;;  %v455_v30 = vsel %vm324_vm3, %v1343_v28, %v1344_v27  ;;  %v464_v37 = vsel %vm462_vm4, %v1348_v26, %v1349_v25 }
  0x92   : > { %v1352_v31 = vpop.permute.xlu1 %1351  ;;  %v321_v32 = vpop.permute.xlu0 %320  ;;  %v1455_v33 = vpack.i.bf16 %v1344_v27, %v455_v30  ;;  %v1465_v43 = vpack.i.bf16 %v1349_v25, %v464_v37 }
  0x93   : > { %v1354_v34 = vunpack.i.h.bf16 %v1352_v31  ;;  %v1353_v35 = vunpack.i.l.bf16 %v1352_v31  ;;  %v325_v36 = vsel %vm324_vm3, %v321_v32, %v1343_v28  ;;  %682 = vmatprep.subr.bf16.mxu0 %v637_v29  ;;  %v1918_v28 = vld [vmem:[%s2213_s4] sm:$0xff] }
  0x94   : > { %v1460_v38 = vpack.i.bf16 %v325_v36, %v1823_v21  ;;  %1456 = vrot.lane.b32.xlu1 %v1455_v33, %s1758_s28  ;;  %v636_v39 = vpack.c.bf16 %v325_v36, %v1823_v21  ;;  %v1297_v29 = vcombine.high %v1918_v28, %v1918_v28 }
  0x95   : > { %v473_v40 = vsel %vm471_vm5, %v1353_v35, %v1354_v34 }
  0x96   : > { %v466_v41 = vpop.permute.xlu1 %465  ;;  %1461 = vrot.lane.b32.xlu0 %v1460_v38, %s1758_s28  ;;  %683 = vmatpush1.bf16.msra.mxu0 %v636_v39  ;;  %v457_v42 = vpop.permute.xlu0 %456  ;;  %v1470_v46 = vpack.i.bf16 %v1354_v34, %v473_v40 }
  0x97   : > { %v472_v44 = vsel %vm471_vm5, %v466_v41, %v1353_v35  ;;  %v463_v45 = vsel %vm462_vm4, %v457_v42, %v1348_v26  ;;  %1299 = vmatprep.mubr.msk.bf16.mxu0 %vm671_vm12, %v1297_v29 }
  0x98   : > { %1466 = vrot.lane.b32.xlu1 %v1465_v43, %s1758_s28  ;;  %v1475_v47 = vpack.i.bf16 %v472_v44, %v463_v45 }
  0x9a   : > { %v1362_v48 = vpop.permute.xlu1 %1361  ;;  %1471 = vrot.lane.b32.xlu0 %v1470_v46, %s1758_s28  ;;  %v1357_v49 = vpop.permute.xlu0 %1356 }
  0x9b   : > { %v1364_v50 = vunpack.i.h.bf16 %v1362_v48  ;;  %v1363_v51 = vunpack.i.l.bf16 %v1362_v48  ;;  %v1359_v52 = vunpack.i.h.bf16 %v1357_v49  ;;  %v1358_v53 = vunpack.i.l.bf16 %v1357_v49 }
  0x9c   : > { %1476 = vrot.lane.b32.xlu1 %v1475_v47, %s1758_s28 }
  0x9d   : > { %v491_v54 = vsel %vm489_vm6, %v1363_v51, %v1364_v50  ;;  %v482_v55 = vsel %vm480_vm7, %v1358_v53, %v1359_v52 }
  0x9e   : > { %v484_v56 = vpop.permute.xlu1 %483  ;;  %v475_v57 = vpop.permute.xlu0 %474  ;;  %v1485_v58 = vpack.i.bf16 %v1364_v50, %v491_v54  ;;  %v1480_v59 = vpack.i.bf16 %v1359_v52, %v482_v55 }
  0x9f   : > { %v490_v60 = vsel %vm489_vm6, %v484_v56, %v1363_v51  ;;  %v481_v61 = vsel %vm480_vm7, %v475_v57, %v1358_v53 }
  0xa0   : > { %1486 = vrot.lane.b32.xlu1 %v1485_v58, %s1758_s28  ;;  %1481 = vrot.lane.b32.xlu0 %v1480_v59, %s1758_s28  ;;  %v1490_v62 = vpack.i.bf16 %v490_v60, %v481_v61 }
  0xa2   : > { %v1372_v63 = vpop.permute.xlu1 %1371  ;;  %v1367_v0 = vpop.permute.xlu0 %1366 }
  0xa3   : > { %v1374_v1 = vunpack.i.h.bf16 %v1372_v63  ;;  %v1373_v2 = vunpack.i.l.bf16 %v1372_v63  ;;  %v1369_v3 = vunpack.i.h.bf16 %v1367_v0  ;;  %v1368_v4 = vunpack.i.l.bf16 %v1367_v0 }
  0xa4   : > { %1491 = vrot.lane.b32.xlu0 %v1490_v62, %s1758_s28 }
  0xa5   : > { %v500_v5 = vsel %vm498_vm9, %v1368_v4, %v1369_v3  ;;  %v509_v6 = vsel %vm507_vm8, %v1373_v2, %v1374_v1 }
  0xa6   : > { %v502_v7 = vpop.permute.xlu1 %501  ;;  %v493_v8 = vpop.permute.xlu0 %492  ;;  %v1495_v9 = vpack.i.bf16 %v1369_v3, %v500_v5  ;;  %v1500_v10 = vpack.i.bf16 %v1374_v1, %v509_v6 }
  0xa7   : > { %v508_v11 = vsel %vm507_vm8, %v502_v7, %v1373_v2  ;;  %v499_v12 = vsel %vm498_vm9, %v493_v8, %v1368_v4 }
  0xa8   : > { %1496 = vrot.lane.b32.xlu1 %v1495_v9, %s1758_s28  ;;  %1501 = vrot.lane.b32.xlu0 %v1500_v10, %s1758_s28  ;;  %v1505_v13 = vpack.i.bf16 %v508_v11, %v499_v12 }
  0xaa   : > { %v1382_v14 = vpop.permute.xlu1 %1381  ;;  %v1377_v15 = vpop.permute.xlu0 %1376 }
  0xab   : > { %v1384_v16 = vunpack.i.h.bf16 %v1382_v14  ;;  %v1383_v17 = vunpack.i.l.bf16 %v1382_v14  ;;  %v1379_v18 = vunpack.i.h.bf16 %v1377_v15  ;;  %v1902_v19 = vunpack.i.l.bf16 %v1377_v15 }
  0xac   : > { %1506 = vrot.lane.b32.xlu1 %v1505_v13, %s1758_s28 }
  0xad   : > { %v521_v20 = vsel %vm388_vm11, %v1902_v19, %v1379_v18  ;;  %v518_v21 = vsel %vm516_vm10, %v1383_v17, %v1384_v16 }
  0xae   : > { %v511_v22 = vpop.permute.xlu1 %510  ;;  %v385_v23 = vpop.permute.xlu0 %384  ;;  %v1515_v24 = vpack.i.bf16 %v1379_v18, %v521_v20  ;;  %v1510_v25 = vpack.i.bf16 %v1384_v16, %v518_v21 }
  0xaf   : > { %v517_v26 = vsel %vm516_vm10, %v511_v22, %v1383_v17  ;;  %v1911_v27 = vsel %vm388_vm11, %v385_v23, %v1902_v19 }
  0xb0   : > { %1516 = vrot.lane.b32.xlu1 %v1515_v24, %s1758_s28  ;;  %1511 = vrot.lane.b32.xlu0 %v1510_v25, %s1758_s28  ;;  %v1520_v30 = vpack.i.bf16 %v1911_v27, %v517_v26 }
  0xb2   : > { %v523_v31 = vpop.permute.xlu1 %522  ;;  %v1387_v32 = vpop.permute.xlu0 %1386 }
  0xb3   : > { %v1389_v33 = vunpack.i.h.bf16 %v1387_v32  ;;  %v1388_v34 = vunpack.i.l.bf16 %v1387_v32 }
  0xb4   : > { %1521 = vrot.lane.b32.xlu0 %v1520_v30, %s1758_s28 }
  0xb5   : > { %v1926_v35 = vsel %vm396_vm13, %v1388_v34, %v1389_v33  ;;  %v524_v36 = vsel %vm396_vm13, %v1389_v33, %v523_v31 }
  0xb6   : > { %v1397_v37 = vpop.permute.xlu1 %1396  ;;  %v1392_v38 = vpop.permute.xlu0 %1391  ;;  %v1525_v39 = vpack.i.bf16 %v524_v36, %v1926_v35 }
  0xb7   : > { %v1399_v40 = vunpack.i.h.bf16 %v1397_v37  ;;  %v1398_v41 = vunpack.i.l.bf16 %v1397_v37  ;;  %v1394_v42 = vunpack.i.h.bf16 %v1392_v38  ;;  %v1393_v43 = vunpack.i.l.bf16 %v1392_v38 }
  0xb8   : > { %1526 = vrot.lane.b32.xlu1 %v1525_v39, %s1758_s28  ;;  %589 = vrot.lane.b32.xlu0 %v523_v31, %s1758_s28 }
  0xb9   : > { %v639_v44 = vpack.c.bf16 %v1399_v40, %v1394_v42  ;;  %v333_v45 = vsel %vm2222_vm14, %v1393_v43, %v1394_v42  ;;  %v341_v46 = vsel %vm2219_vm15, %v1398_v41, %v1399_v40  ;;  %vm2223_vm15 = vcmask 941056  }
  0xba   : > { %v1407_v47 = vpop.permute.xlu1 %1406  ;;  %v1402_v48 = vpop.permute.xlu0 %1401  ;;  %v638_v49 = vpack.c.bf16 %v341_v46, %v333_v45  ;;  %vm2231_vm14 = vcmask 703488  }
  0xbb   : > { %v1409_v50 = vunpack.i.h.bf16 %v1407_v47  ;;  %v1408_v51 = vunpack.i.l.bf16 %v1407_v47  ;;  %v1404_v52 = vunpack.i.h.bf16 %v1402_v48  ;;  %v1403_v53 = vunpack.i.l.bf16 %v1402_v48  ;;  %684 = vmatprep.subr.bf16.mxu0 %v639_v44 }
  0xbc   : > { %685 = vmatpush1.bf16.msra.mxu0 %v638_v49 }
  0xbd   : > { %v641_v54 = vpack.c.bf16 %v1409_v50, %v1404_v52  ;;  %v349_v55 = vsel %vm2221_vm0, %v1403_v53, %v1404_v52  ;;  %v357_v56 = vsel %vm2220_vm1, %v1408_v51, %v1409_v50  ;;  %vm2225_vm1 = vcmask 932864  }
  0xbe   : > { %v1417_v57 = vpop.permute.xlu1 %1416  ;;  %v1412_v58 = vpop.permute.xlu0 %1411  ;;  %v640_v59 = vpack.c.bf16 %v357_v56, %v349_v55  ;;  %vm2224_vm0 = vcmask 736256  }
  0xbf   : > { %v1419_v60 = vunpack.i.h.bf16 %v1417_v57  ;;  %v1418_v61 = vunpack.i.l.bf16 %v1417_v57  ;;  %v1414_v62 = vunpack.i.h.bf16 %v1412_v58  ;;  %v1413_v63 = vunpack.i.l.bf16 %v1412_v58  ;;  %686 = vmatprep.subr.bf16.mxu0 %v641_v54 }
  0xc0   : > { %687 = vmatpush1.bf16.msra.mxu0 %v640_v59 }
  0xc1   : > { %v643_v0 = vpack.c.bf16 %v1419_v60, %v1414_v62  ;;  %v365_v1 = vsel %vm2232_vm2, %v1413_v63, %v1414_v62  ;;  %v373_v2 = vsel %vm2223_vm15, %v1418_v61, %v1419_v60  ;;  %vm2226_vm15 = vcmask 695296  }
  0xc2   : > { %v1427_v3 = vpop.permute.xlu1 %1426  ;;  %v1422_v4 = vpop.permute.xlu0 %1421  ;;  %v642_v5 = vpack.c.bf16 %v373_v2, %v365_v1  ;;  %vm776_vm2 = vcmask 1047896  }
  0xc3   : > { %v1429_v6 = vunpack.i.h.bf16 %v1427_v3  ;;  %v1428_v7 = vunpack.i.l.bf16 %v1427_v3  ;;  %v1424_v8 = vunpack.i.h.bf16 %v1422_v4  ;;  %v1423_v9 = vunpack.i.l.bf16 %v1422_v4  ;;  %688 = vmatprep.subr.bf16.mxu0 %v643_v0 }
  0xc4   : > { %689 = vmatpush1.bf16.msra.mxu0 %v642_v5 }
  0xc5   : > { %v645_v10 = vpack.c.bf16 %v1902_v19, %v1424_v8  ;;  %v381_v11 = vsel %vm2225_vm1, %v1423_v9, %v1424_v8  ;;  %v647_v12 = vpack.c.bf16 %v1429_v6, %v1389_v33  ;;  %v405_v14 = vsel %vm2224_vm0, %v1428_v7, %v1429_v6 }
  0xc6   : > { %v644_v13 = vpack.c.bf16 %v1911_v27, %v381_v11  ;;  %v1432_v15 = vpop.permute.xlu0 %1431  ;;  %v1437_v16 = vpop.permute.xlu1 %1436  ;;  %v646_v23 = vpack.c.bf16 %v405_v14, %v1926_v35  ;;  %vm2230_vm0 = vcmask 687104   ;;  %vm2227_vm1 = vcmask 654336  }
  0xc7   : > { %690 = vmatprep.subr.bf16.mxu0 %v645_v10  ;;  %v1434_v17 = vunpack.i.h.bf16 %v1432_v15  ;;  %v1433_v18 = vunpack.i.l.bf16 %v1432_v15  ;;  %v1439_v20 = vunpack.i.h.bf16 %v1437_v16  ;;  %v1438_v21 = vunpack.i.l.bf16 %v1437_v16 }
  0xc8   : > { %691 = vmatpush1.bf16.msra.mxu0 %v644_v13 }
  0xc9   : > { %692 = vmatprep.subr.bf16.mxu0 %v647_v12  ;;  %v417_v19 = vsel %vm2231_vm14, %v1433_v18, %v1434_v17  ;;  %v428_v22 = vsel %vm2226_vm15, %v1438_v21, %v1439_v20 }
  0xca   : > { %v410_v24 = vpop.permute.xlu0 %409  ;;  %v421_v25 = vpop.permute.xlu1 %420  ;;  %v649_v26 = vpack.c.bf16 %v428_v22, %v417_v19 }
  0xcb   : > { %v416_v27 = vsel %vm2231_vm14, %v410_v24, %v1433_v18  ;;  %v427_v29 = vsel %vm2226_vm15, %v421_v25, %v1438_v21  ;;  %vm2229_vm15 = vcmask 646144   ;;  %vm771_vm14 = vcmask 351232  }
  0xcc   : > { %693 = vmatpush1.bf16.msra.mxu0 %v646_v23  ;;  %v648_v30 = vpack.c.bf16 %v427_v29, %v416_v27 }
  0xcd   : > { %694 = vmatprep.subr.bf16.mxu0 %v649_v26 }
  0xce   : > { %v1442_v31 = vpop.permute.xlu0 %1441  ;;  %v1447_v32 = vpop.permute.xlu1 %1446 }
  0xcf   : > { %v1444_v33 = vunpack.i.h.bf16 %v1442_v31  ;;  %v1443_v34 = vunpack.i.l.bf16 %v1442_v31  ;;  %v1449_v36 = vunpack.i.h.bf16 %v1447_v32  ;;  %v1448_v37 = vunpack.i.l.bf16 %v1447_v32 }
  0xd0   : > { %695 = vmatpush1.bf16.msra.mxu0 %v648_v30 }
  0xd1   : > { %v439_v35 = vsel %vm2230_vm0, %v1443_v34, %v1444_v33  ;;  %v450_v38 = vsel %vm2227_vm1, %v1448_v37, %v1449_v36 }
  0xd2   : > { %v432_v39 = vpop.permute.xlu0 %431  ;;  %v443_v40 = vpop.permute.xlu1 %442  ;;  %v651_v41 = vpack.c.bf16 %v450_v38, %v439_v35 }
  0xd3   : > { %v438_v42 = vsel %vm2230_vm0, %v432_v39, %v1443_v34  ;;  %v449_v43 = vsel %vm2227_vm1, %v443_v40, %v1448_v37  ;;  %vm2228_vm1 = vcmask 1043456   ;;  %vm779_vm0 = vcmask 23552  }
  0xd4   : > { %v650_v44 = vpack.c.bf16 %v449_v43, %v438_v42  ;;  %696 = vmatprep.subr.bf16.mxu0 %v651_v41 }
  0xd6   : > { %697 = vmatpush1.bf16.msra.mxu0 %v650_v44  ;;  %v1452_v45 = vpop.permute.xlu0 %1451 }
  0xd7   : > { %v1454_v46 = vunpack.i.h.bf16 %v1452_v45  ;;  %v1453_v47 = vunpack.i.l.bf16 %v1452_v45 }
  0xd9   : > { %v593_v51 = vsel %vm2229_vm15, %v1453_v47, %v1454_v46 }
 0x106   : > { %v1457_v48 = vpop.permute.xlu1 %1456 }
 0x107   : > { %v1459_v49 = vunpack.i.h.bf16 %v1457_v48  ;;  %v1458_v50 = vunpack.i.l.bf16 %v1457_v48 }
 0x108   : > { %v1462_v52 = vpop.permute.xlu0 %1461 }
 0x109   : > { %v1464_v53 = vunpack.i.h.bf16 %v1462_v52  ;;  %v1463_v54 = vunpack.i.l.bf16 %v1462_v52  ;;  %v595_v55 = vsel %vm2229_vm15, %v1458_v50, %v1459_v49 }
 0x10a   : > { %v1467_v56 = vpop.permute.xlu1 %1466  ;;  %v653_v57 = vpack.c.bf16 %v595_v55, %v593_v51 }
 0x10b   : > { %v1469_v58 = vunpack.i.h.bf16 %v1467_v56  ;;  %v1468_v59 = vunpack.i.l.bf16 %v1467_v56  ;;  %v592_v60 = vsel %vm2229_vm15, %v1463_v54, %v1453_v47  ;;  %v594_v61 = vsel %vm2229_vm15, %v1464_v53, %v1458_v50 }
 0x10c   : > { %v1472_v62 = vpop.permute.xlu0 %1471  ;;  %698 = vmatprep.subr.bf16.mxu0 %v653_v57  ;;  %v652_v63 = vpack.c.bf16 %v594_v61, %v592_v60 }
 0x10d   : > { %v1474_v0 = vunpack.i.h.bf16 %v1472_v62  ;;  %v1473_v1 = vunpack.i.l.bf16 %v1472_v62  ;;  %v597_v5 = vsel %vm2229_vm15, %v1468_v59, %v1469_v58 }
 0x10e   : > { %v1477_v2 = vpop.permute.xlu1 %1476  ;;  %699 = vmatpush1.bf16.msra.mxu0 %v652_v63 }
 0x10f   : > { %v1479_v3 = vunpack.i.h.bf16 %v1477_v2  ;;  %v1478_v4 = vunpack.i.l.bf16 %v1477_v2  ;;  %v599_v6 = vsel %vm2229_vm15, %v1473_v1, %v1474_v0  ;;  %v1296_v2 = vcombine.low %v1918_v28, %v1918_v28 }
 0x110   : > { %v655_v7 = vpack.c.bf16 %v599_v6, %v597_v5  ;;  %v293_v6 = vld [vmem:[%s2209_s0] sm:$0x3] }
 0x111   : > { %v596_v8 = vsel %vm2229_vm15, %v1478_v4, %v1468_v59  ;;  %v598_v9 = vsel %vm2229_vm15, %v1479_v3, %v1473_v1  ;;  %v724_v3 = vlaneseq }
 0x112   : > { %v1487_v10 = vpop.permute.xlu1 %1486  ;;  %700 = vmatprep.subr.bf16.mxu0 %v655_v7  ;;  %v1482_v11 = vpop.permute.xlu0 %1481  ;;  %v654_v12 = vpack.c.bf16 %v598_v9, %v596_v8 }
 0x113   : > { %v1489_v13 = vunpack.i.h.bf16 %v1487_v10  ;;  %v1488_v14 = vunpack.i.l.bf16 %v1487_v10  ;;  %v1484_v15 = vunpack.i.h.bf16 %v1482_v11  ;;  %v1483_v16 = vunpack.i.l.bf16 %v1482_v11 }
 0x114   : > { %701 = vmatpush1.bf16.msra.mxu0 %v654_v12  ;;  %v725_v4 = vshrl.u32 %v724_v3, 7 }
 0x115   : > { %v601_v17 = vsel %vm2229_vm15, %v1483_v16, %v1484_v15  ;;  %v603_v18 = vsel %vm2229_vm15, %v1488_v14, %v1489_v13 }
 0x116   : > { %v1492_v20 = vpop.permute.xlu0 %1491  ;;  %v657_v21 = vpack.c.bf16 %v603_v18, %v601_v17  ;;  %v730_v5 = vsub.s32 1, %v725_v4  ;;  %v726_v7 = vsub.s32 0, %v725_v4 }
 0x117   : > { %v1494_v19 = vunpack.i.h.bf16 %v1492_v20  ;;  %v1493_v22 = vunpack.i.l.bf16 %v1492_v20 }
 0x118   : > { %702 = vmatprep.subr.bf16.mxu0 %v657_v21  ;;  %v1980_v8 = vrot.slane %v293_v6, %v730_v5  ;;  %v1982_v9 = vrot.slane %v293_v6, %v726_v7 }
 0x119   : > { %v600_v23 = vsel %vm2229_vm15, %v1493_v22, %v1483_v16  ;;  %v602_v24 = vsel %vm2229_vm15, %v1494_v19, %v1488_v14 }
 0x11a   : > { %v1497_v25 = vpop.permute.xlu1 %1496  ;;  %v1502_v26 = vpop.permute.xlu0 %1501  ;;  %v656_v27 = vpack.c.bf16 %v602_v24, %v600_v23 }
 0x11b   : > { %v1499_v29 = vunpack.i.h.bf16 %v1497_v25  ;;  %v1498_v30 = vunpack.i.l.bf16 %v1497_v25  ;;  %v1504_v31 = vunpack.i.h.bf16 %v1502_v26  ;;  %v1503_v32 = vunpack.i.l.bf16 %v1502_v26 }
 0x11c   : > { %703 = vmatpush1.bf16.msra.mxu0 %v656_v27  ;;  %v1759_v27 = vmov 0.0  }
 0x11d   : > { %v605_v33 = vsel %vm2229_vm15, %v1498_v30, %v1499_v29  ;;  %v607_v34 = vsel %vm2229_vm15, %v1503_v32, %v1504_v31  ;;  %764 = vst [vmem:[#allocation2 + $0x10] sm:$0xff] %v1759_v27  ;;  %762 = vst [vmem:[#allocation2] sm:$0xff] %v1759_v27 }
 0x11e   : > { %v1507_v36 = vpop.permute.xlu1 %1506  ;;  %v659_v37 = vpack.c.bf16 %v607_v34, %v605_v33 }
 0x11f   : > { %v1509_v35 = vunpack.i.h.bf16 %v1507_v36  ;;  %v1508_v38 = vunpack.i.l.bf16 %v1507_v36 }
 0x120   : > { %704 = vmatprep.subr.bf16.mxu0 %v659_v37 }
 0x121   : > { %v604_v39 = vsel %vm2229_vm15, %v1508_v38, %v1498_v30  ;;  %v606_v40 = vsel %vm2229_vm15, %v1509_v35, %v1503_v32 }
 0x122   : > { %v1517_v41 = vpop.permute.xlu1 %1516  ;;  %v1512_v42 = vpop.permute.xlu0 %1511  ;;  %v658_v43 = vpack.c.bf16 %v606_v40, %v604_v39 }
 0x123   : > { %v1519_v44 = vunpack.i.h.bf16 %v1517_v41  ;;  %v1518_v45 = vunpack.i.l.bf16 %v1517_v41  ;;  %v1514_v46 = vunpack.i.h.bf16 %v1512_v42  ;;  %v1513_v47 = vunpack.i.l.bf16 %v1512_v42 }
 0x124   : > { %705 = vmatpush1.bf16.msra.mxu0 %v658_v43 }
 0x125   : > { %v609_v48 = vsel %vm2229_vm15, %v1513_v47, %v1514_v46  ;;  %v611_v49 = vsel %vm2229_vm15, %v1518_v45, %v1519_v44 }
 0x126   : > { %v1522_v50 = vpop.permute.xlu0 %1521  ;;  %v661_v51 = vpack.c.bf16 %v611_v49, %v609_v48 }
 0x127   : > { %v1524_v52 = vunpack.i.h.bf16 %v1522_v50  ;;  %v1523_v53 = vunpack.i.l.bf16 %v1522_v50 }
 0x128   : > { %706 = vmatprep.subr.bf16.mxu0 %v661_v51 }
 0x129   : > { %v608_v54 = vsel %vm2229_vm15, %v1523_v53, %v1513_v47  ;;  %v610_v55 = vsel %vm2229_vm15, %v1524_v52, %v1518_v45 }
 0x12a   : > { %v1527_v56 = vpop.permute.xlu1 %1526  ;;  %v660_v57 = vpack.c.bf16 %v610_v55, %v608_v54  ;;  %v590_v60 = vpop.permute.xlu0 %589 }
 0x12b   : > { %v1529_v58 = vunpack.i.h.bf16 %v1527_v56  ;;  %v1528_v59 = vunpack.i.l.bf16 %v1527_v56 }
 0x12c   : > { %707 = vmatpush1.bf16.msra.mxu0 %v660_v57 }
 0x12d   : > { %v613_v61 = vsel %vm2229_vm15, %v1529_v58, %v590_v60  ;;  %v612_v62 = vsel %vm2229_vm15, %v1528_v59, %v1529_v58 }
 0x12e   : > { %v663_v63 = vpack.c.bf16 %v613_v61, %v613_v61  ;;  %v662_v0 = vpack.c.bf16 %v612_v62, %v612_v62 }
 0x130   : > { %1298 = vmatprep.subr.msk.bf16.mxu0 %vm2228_vm1, %v663_v63  ;;  %v677_v1 = vsel %vm2228_vm1, %v662_v0, 0 }
 0x131   : > { %709 = vmatpush1.bf16.msra.mxu0 %v677_v1 }
 0x134   : > { %715 = vmatmul.mubr.bf16.vlgmr.msra.gmra.mrb[0].mxu0 %v1296_v2 }
 0x207   : > { %v716_v10 = vpop.f32.mrb[0].mxu0 }
 0x208   : > { %v718_v11 = vpop.f32.mrb[1].mxu0  ;;  %v734_v28 = vmul.f32 %v1982_v9, %v716_v10 }
 0x209   : > { %v735_v12 = vmul.f32 %v1980_v8, %v718_v11  ;;  %v720_v13 = vpop.f32.mrb[2].mxu0 }
 0x20a   : > { %v721_v14 = vpop.f32.mrb[3].mxu0 }
 0x20b   : > { %v736_v15 = vsel %vm671_vm12, %v735_v12, 0.0 }
 0x20c   : > { %v737_v16 = vadd.f32 %v736_v15, %v734_v28 }
 0x20e   : > { %738 = vadd.xlane.f32.xlu1 %v737_v16 }
 0x29b   : > { %v739_v17 = vpop.xlane.xlu1 %738 }
 0x29c   : > { %v740_v18 = vmul.f32 0.015625, %v739_v17 }
 0x29e   : > { %v741_v20 = vsub.f32 %v716_v10, %v740_v18  ;;  %v742_v21 = vsub.f32 %v718_v11, %v740_v18 }
 0x2a0   : > { %v743_v19 = vmul.f32 %v741_v20, %v1982_v9  ;;  %v744_v22 = vmul.f32 %v742_v21, %v1980_v8 }
 0x2a2   : > { %v745_v23 = vmul.f32 %v743_v19, %v743_v19  ;;  %v746_v24 = vmul.f32 %v744_v22, %v744_v22 }
 0x2a4   : > { %v747_v25 = vsel %vm671_vm12, %v746_v24, 0.0 }
 0x2a5   : > { %v748_v26 = vadd.f32 %v747_v25, %v745_v23 }
 0x2a7   : > { %749 = vadd.xlane.f32.xlu0 %v748_v26 }
 0x334   : > { %v750_v29 = vpop.xlane.xlu0 %749 }
 0x335   : > { %v751_v30 = vmul.f32 0.015625, %v750_v29 }
 0x337   : > { %v752_v31 = vadd.f32 1e-05, %v751_v30 }
 0x339   : > { %1724 = vrsqrt.f32 %v752_v31 }
 0x343   : > { %v1725_v32 = vpop.eup %1724 }
 0x344   : > { %v755_v33 = vmul.f32 %v1725_v32, %v744_v22  ;;  %v754_v34 = vmul.f32 %v1725_v32, %v743_v19 }
 0x346   : > { %vm757_vm1 = vcmp.ge.f32.partialorder %v755_v33, 0.0  ;;  %v759_v36 = vmul.f32 0.01, %v755_v33  ;;  %vm756_vm15 = vcmp.ge.f32.partialorder %v754_v34, 0.0  ;;  %v758_v37 = vmul.f32 0.01, %v754_v34 }
 0x348   : > { %v761_v35 = vsel %vm757_vm1, %v755_v33, %v759_v36  ;;  %v760_v38 = vsel %vm756_vm15, %v754_v34, %v758_v37 }
 0x349   : > { %769 = vrot.lane.b32.xlu1 %v761_v35, %s1760_s26  ;;  %767 = vrot.lane.b32.xlu0 %v760_v38, %s1760_s26 }
 0x3bb   : > { %v770_v39 = vpop.permute.xlu1 %769  ;;  %v768_v40 = vpop.permute.xlu0 %767 }
 0x3bc   : > { %780 = vst.msk [vmem:[#allocation2 + $0x10] sm:$0xff] %vm779_vm0, %v770_v39  ;;  %v1996_v41 = vsel %vm771_vm14, %v768_v40, %v770_v39 }
 0x3bd   : > { %777 = vst.msk [vmem:[#allocation2] sm:$0xff] %vm776_vm2, %v768_v40 }
 0x3c3   : > { %v783_v43 = vld [vmem:[#allocation2 + $0x10] sm:$0xff] }
 0x3c4   : > { %v1999_v42 = vld [vmem:[#allocation2] sm:$0xff]  ;;  %v1530_v44 = vpack.i.bf16 %v783_v43, %v1996_v41 }
 0x3c5   : > { %907 = vrot.lane.b32.xlu1 %v1999_v42, %s1736_s9  ;;  %786 = vrot.lane.b32.xlu0 %v1999_v42, %s1737_s10  ;;  %v1575_v45 = vpack.i.bf16 %v1996_v41, %v1999_v42 }
 0x3c9   : > { %923 = vrot.lane.b32.xlu1 %v1999_v42, %s1740_s13  ;;  %915 = vrot.lane.b32.xlu0 %v1999_v42, %s1738_s11 }
 0x3cd   : > { %939 = vrot.lane.b32.xlu1 %v1999_v42, %s1742_s15  ;;  %931 = vrot.lane.b32.xlu0 %v1999_v42, %s1739_s12 }
 0x3d1   : > { %842 = vrot.lane.b32.xlu1 %v1999_v42, %s1744_s17  ;;  %947 = vrot.lane.b32.xlu0 %v1999_v42, %s1741_s14 }
 0x3d5   : > { %864 = vrot.lane.b32.xlu1 %v1999_v42, %s1754_s29  ;;  %955 = vrot.lane.b32.xlu0 %v1999_v42, %s1743_s16 }
 0x3d9   : > { %966 = vrot.lane.b32.xlu0 %v783_v43, %s1745_s18  ;;  %1531 = vrot.lane.b32.xlu1 %v1530_v44, %s1737_s10  ;;  %s2234_s10 = smov 90  }
 0x3dd   : > { %1541 = vrot.lane.b32.xlu0 %v1530_v44, %s1738_s11  ;;  %1536 = vrot.lane.b32.xlu1 %v1530_v44, %s1736_s9  ;;  %s2233_s9 = smov 116   ;;  %s2235_s11 = smov 114  }
 0x3e1   : > { %1551 = vrot.lane.b32.xlu0 %v1530_v44, %s1739_s12  ;;  %1546 = vrot.lane.b32.xlu1 %v1530_v44, %s1740_s13 }
 0x3e5   : > { %1561 = vrot.lane.b32.xlu0 %v1530_v44, %s1741_s14  ;;  %1556 = vrot.lane.b32.xlu1 %v1530_v44, %s1742_s15 }
 0x3e9   : > { %1571 = vrot.lane.b32.xlu0 %v1530_v44, %s1743_s16  ;;  %1566 = vrot.lane.b32.xlu1 %v1530_v44, %s1744_s17  ;;  %s291_s16 = scalar_lea.vmem %s2215_s6, %s1804_s23 }
 0x3ea   : > { %1194 = vst [vmem:[%s291_s16 + $0x10] sm:$0xff] %v1759_v27  ;;  %1192 = vst [vmem:[%s291_s16] sm:$0xff] %v1759_v27 }
 0x3ed   : > { %874 = vrot.lane.b32.xlu0 %v1999_v42, %s1755_s30  ;;  %884 = vrot.lane.b32.xlu1 %v1999_v42, %s1756_s7 }
 0x3f1   : > { %894 = vrot.lane.b32.xlu0 %v1999_v42, %s1757_s8  ;;  %1576 = vrot.lane.b32.xlu1 %v1575_v45, %s1745_s18 }
 0x3f5   : > { %1586 = vrot.lane.b32.xlu0 %v1575_v45, %s1746_s19  ;;  %1581 = vrot.lane.b32.xlu1 %v1575_v45, %s1747_s20 }
 0x3f9   : > { %1596 = vrot.lane.b32.xlu0 %v1575_v45, %s1748_s22  ;;  %1591 = vrot.lane.b32.xlu1 %v1575_v45, %s1749_s24 }
 0x3fd   : > { %1606 = vrot.lane.b32.xlu0 %v1575_v45, %s1750_s25  ;;  %1601 = vrot.lane.b32.xlu1 %v1575_v45, %s2233_s9 }
 0x401   : > { %1616 = vrot.lane.b32.xlu0 %v1575_v45, %s2234_s10  ;;  %1611 = vrot.lane.b32.xlu1 %v1575_v45, %s2235_s11 }
 0x405   : > { %1626 = vrot.lane.b32.xlu0 %v1530_v44, %s1755_s30  ;;  %1621 = vrot.lane.b32.xlu1 %v1530_v44, %s1754_s29 }
 0x409   : > { %1636 = vrot.lane.b32.xlu0 %v1530_v44, %s1757_s8  ;;  %1631 = vrot.lane.b32.xlu1 %v1530_v44, %s1756_s7 }
 0x40d   : > { %1641 = vrot.lane.b32.xlu1 %v1530_v44, %s1758_s28 }
 0x437   : > { %v908_v46 = vpop.permute.xlu1 %907  ;;  %v787_v47 = vpop.permute.xlu0 %786 }
 0x43b   : > { %v924_v48 = vpop.permute.xlu1 %923  ;;  %v916_v49 = vpop.permute.xlu0 %915 }
 0x43f   : > { %v2054_v50 = vpop.permute.xlu1 %939  ;;  %v932_v51 = vpop.permute.xlu0 %931 }
 0x443   : > { %v2056_v52 = vpop.permute.xlu1 %842  ;;  %v2058_v53 = vpop.permute.xlu0 %947 }
 0x447   : > { %v2060_v54 = vpop.permute.xlu1 %864  ;;  %v2062_v55 = vpop.permute.xlu0 %955 }
 0x44b   : > { %v2064_v56 = vpop.permute.xlu0 %966  ;;  %v1532_v57 = vpop.permute.xlu1 %1531 }
 0x44c   : > { %v1534_v58 = vunpack.i.h.bf16 %v1532_v57  ;;  %v1533_v59 = vunpack.i.l.bf16 %v1532_v57 }
 0x44e   : > { %v906_v60 = vsel %vm324_vm3, %v1533_v59, %v1534_v58  ;;  %v1080_v61 = vpack.c.bf16 %v1533_v59, %v1996_v41  ;;  %v790_v62 = vsel %vm324_vm3, %v787_v47, %v1533_v59  ;;  %vm2236_vm3 = vcmask 1031168  }
 0x44f   : > { %v1645_v63 = vpack.i.bf16 %v1534_v58, %v906_v60  ;;  %v1542_v0 = vpop.permute.xlu0 %1541  ;;  %v1537_v1 = vpop.permute.xlu1 %1536  ;;  %v1650_v2 = vpack.i.bf16 %v790_v62, %v1999_v42  ;;  %v1079_v3 = vpack.c.bf16 %v790_v62, %v1999_v42 }
 0x450   : > { %v1544_v4 = vunpack.i.h.bf16 %v1542_v0  ;;  %v1543_v5 = vunpack.i.l.bf16 %v1542_v0  ;;  %v1539_v6 = vunpack.i.h.bf16 %v1537_v1  ;;  %v1538_v7 = vunpack.i.l.bf16 %v1537_v1  ;;  %1123 = vmatprep.subr.bf16.mxu1 %v1080_v61 }
 0x451   : > { %1646 = vrot.lane.b32.xlu0 %v1645_v63, %s1758_s28  ;;  %1651 = vrot.lane.b32.xlu1 %v1650_v2, %s1758_s28  ;;  %v2120_v2 = vld [vmem:[%s2214_s5] sm:$0xff] }
 0x452   : > { %v922_v10 = vsel %vm471_vm5, %v1543_v5, %v1544_v4  ;;  %v914_v11 = vsel %vm462_vm4, %v1538_v7, %v1539_v6  ;;  %1124 = vmatpush1.bf16.msra.mxu1 %v1079_v3  ;;  %v921_v13 = vsel %vm471_vm5, %v916_v49, %v1543_v5  ;;  %v913_v14 = vsel %vm462_vm4, %v908_v46, %v1538_v7 }
 0x453   : > { %v1660_v12 = vpack.i.bf16 %v1544_v4, %v922_v10  ;;  %v1655_v28 = vpack.i.bf16 %v1539_v6, %v914_v11  ;;  %v1552_v15 = vpop.permute.xlu0 %1551  ;;  %v1547_v16 = vpop.permute.xlu1 %1546  ;;  %v1665_v19 = vpack.i.bf16 %v921_v13, %v913_v14  ;;  %v1301_v6 = vcombine.high %v2120_v2, %v2120_v2 }
 0x454   : > { %v1554_v17 = vunpack.i.h.bf16 %v1552_v15  ;;  %v1553_v18 = vunpack.i.l.bf16 %v1552_v15  ;;  %v1549_v20 = vunpack.i.h.bf16 %v1547_v16  ;;  %v1548_v21 = vunpack.i.l.bf16 %v1547_v16 }
 0x455   : > { %1656 = vrot.lane.b32.xlu0 %v1655_v28, %s1758_s28  ;;  %1661 = vrot.lane.b32.xlu1 %v1660_v12, %s1758_s28  ;;  %vm2237_vm4 = vcmask 998400   ;;  %vm2238_vm5 = vcmask 990208  }
 0x456   : > { %v930_v22 = vsel %vm480_vm7, %v1548_v21, %v1549_v20  ;;  %v938_v23 = vsel %vm489_vm6, %v1553_v18, %v1554_v17  ;;  %v937_v24 = vsel %vm489_vm6, %v932_v51, %v1553_v18  ;;  %v929_v26 = vsel %vm480_vm7, %v924_v48, %v1548_v21  ;;  %1303 = vmatprep.mubr.msk.bf16.mxu1 %vm671_vm12, %v1301_v6 }
 0x457   : > { %v1670_v25 = vpack.i.bf16 %v1549_v20, %v930_v22  ;;  %v1562_v29 = vpop.permute.xlu0 %1561  ;;  %v1557_v30 = vpop.permute.xlu1 %1556  ;;  %v1675_v36 = vpack.i.bf16 %v1554_v17, %v938_v23  ;;  %v1680_v37 = vpack.i.bf16 %v937_v24, %v929_v26  ;;  %vm2239_vm6 = vcmask 982016  }
 0x458   : > { %v1564_v31 = vunpack.i.h.bf16 %v1562_v29  ;;  %v1563_v32 = vunpack.i.l.bf16 %v1562_v29  ;;  %v1559_v33 = vunpack.i.h.bf16 %v1557_v30  ;;  %v1558_v34 = vunpack.i.l.bf16 %v1557_v30 }
 0x459   : > { %1666 = vrot.lane.b32.xlu0 %v1665_v19, %s1758_s28  ;;  %1671 = vrot.lane.b32.xlu1 %v1670_v25, %s1758_s28  ;;  %vm2240_vm7 = vcmask 949248  }
 0x45a   : > { %v954_v39 = vsel %vm507_vm8, %v1563_v32, %v1564_v31  ;;  %v946_v40 = vsel %vm498_vm9, %v1558_v34, %v1559_v33  ;;  %v953_v49 = vsel %vm507_vm8, %v2058_v53, %v1563_v32  ;;  %v945_v51 = vsel %vm498_vm9, %v2054_v50, %v1558_v34 }
 0x45b   : > { %v1572_v35 = vpop.permute.xlu0 %1571  ;;  %v1567_v38 = vpop.permute.xlu1 %1566  ;;  %v1690_v43 = vpack.i.bf16 %v1564_v31, %v954_v39  ;;  %v1685_v44 = vpack.i.bf16 %v1559_v33, %v946_v40  ;;  %v1695_v58 = vpack.i.bf16 %v953_v49, %v945_v51  ;;  %vm2241_vm8 = vcmask 941056  }
 0x45c   : > { %v1574_v41 = vunpack.i.h.bf16 %v1572_v35  ;;  %v1573_v42 = vunpack.i.l.bf16 %v1572_v35  ;;  %v1569_v45 = vunpack.i.h.bf16 %v1567_v38  ;;  %v2089_v46 = vunpack.i.l.bf16 %v1567_v38 }
 0x45d   : > { %1676 = vrot.lane.b32.xlu0 %v1675_v36, %s1758_s28  ;;  %1681 = vrot.lane.b32.xlu1 %v1680_v37, %s1758_s28  ;;  %vm2242_vm9 = vcmask 932864  }
 0x45e   : > { %v962_v57 = vsel %vm516_vm10, %v1573_v42, %v1574_v41  ;;  %v965_v60 = vsel %vm388_vm11, %v2089_v46, %v1569_v45  ;;  %v961_v53 = vsel %vm516_vm10, %v2062_v55, %v1573_v42  ;;  %v2111_v50 = vsel %vm388_vm11, %v2056_v52, %v2089_v46 }
 0x45f   : > { %v2091_v47 = vpop.permute.xlu0 %874  ;;  %v2093_v48 = vpop.permute.xlu1 %884  ;;  %v1700_v59 = vpack.i.bf16 %v1574_v41, %v962_v57  ;;  %v1705_v1 = vpack.i.bf16 %v1569_v45, %v965_v60  ;;  %v1710_v55 = vpack.i.bf16 %v2111_v50, %v961_v53  ;;  %vm2243_vm10 = vcmask 736256  }
 0x460   : > { %vm2244_vm11 = vcmask 703488  }
 0x461   : > { %1686 = vrot.lane.b32.xlu0 %v1685_v44, %s1758_s28  ;;  %1691 = vrot.lane.b32.xlu1 %v1690_v43, %s1758_s28  ;;  %vm2246_vm15 = vmmov %vm2244_vm11 }
 0x463   : > { %v2104_v61 = vpop.permute.xlu0 %894  ;;  %v1577_v62 = vpop.permute.xlu1 %1576 }
 0x464   : > { %v2113_v63 = vunpack.i.h.bf16 %v1577_v62  ;;  %v1578_v0 = vunpack.i.l.bf16 %v1577_v62 }
 0x465   : > { %1696 = vrot.lane.b32.xlu0 %v1695_v58, %s1758_s28  ;;  %1701 = vrot.lane.b32.xlu1 %v1700_v59, %s1758_s28 }
 0x466   : > { %v968_v52 = vsel %vm396_vm13, %v2113_v63, %v2064_v56  ;;  %v2128_v3 = vsel %vm396_vm13, %v1578_v0, %v2113_v63  ;;  %vm2245_vm13 = vcmask 695296  }
 0x467   : > { %v1587_v4 = vpop.permute.xlu0 %1586  ;;  %v1582_v5 = vpop.permute.xlu1 %1581  ;;  %v1715_v15 = vpack.i.bf16 %v968_v52, %v2128_v3  ;;  %vm2247_vm1 = vmmov %vm2245_vm13 }
 0x468   : > { %v1589_v7 = vunpack.i.h.bf16 %v1587_v4  ;;  %v1588_v10 = vunpack.i.l.bf16 %v1587_v4  ;;  %v1584_v11 = vunpack.i.h.bf16 %v1582_v5  ;;  %v1583_v12 = vunpack.i.l.bf16 %v1582_v5 }
 0x469   : > { %1706 = vrot.lane.b32.xlu0 %v1705_v1, %s1758_s28  ;;  %1711 = vrot.lane.b32.xlu1 %v1710_v55, %s1758_s28 }
 0x46a   : > { %v1082_v13 = vpack.c.bf16 %v1589_v7, %v1584_v11  ;;  %v797_v28 = vsel %vm2236_vm3, %v1583_v12, %v1584_v11  ;;  %v804_v14 = vsel %vm2237_vm4, %v1588_v10, %v1589_v7  ;;  %vm2248_vm3 = vcmask 687104  }
 0x46b   : > { %v1597_v16 = vpop.permute.xlu0 %1596  ;;  %v1592_v17 = vpop.permute.xlu1 %1591  ;;  %v1081_v18 = vpack.c.bf16 %v804_v14, %v797_v28  ;;  %vm2249_vm4 = vcmask 654336  }
 0x46c   : > { %v1599_v20 = vunpack.i.h.bf16 %v1597_v16  ;;  %v1598_v21 = vunpack.i.l.bf16 %v1597_v16  ;;  %v1594_v19 = vunpack.i.h.bf16 %v1592_v17  ;;  %v1593_v22 = vunpack.i.l.bf16 %v1592_v17  ;;  %1125 = vmatprep.subr.bf16.mxu1 %v1082_v13 }
 0x46d   : > { %1716 = vrot.lane.b32.xlu0 %v1715_v15, %s1758_s28  ;;  %1033 = vrot.lane.b32.xlu1 %v2064_v56, %s1758_s28 }
 0x46e   : > { %v1084_v23 = vpack.c.bf16 %v1599_v20, %v1594_v19  ;;  %1126 = vmatpush1.bf16.msra.mxu1 %v1081_v18  ;;  %v811_v24 = vsel %vm2238_vm5, %v1593_v22, %v1594_v19  ;;  %v818_v25 = vsel %vm2239_vm6, %v1598_v21, %v1599_v20  ;;  %vm2250_vm5 = vmmov %vm2248_vm3 }
 0x46f   : > { %v1607_v26 = vpop.permute.xlu0 %1606  ;;  %v1602_v29 = vpop.permute.xlu1 %1601  ;;  %v1083_v30 = vpack.c.bf16 %v818_v25, %v811_v24  ;;  %vm2251_vm6 = vmmov %vm2249_vm4 }
 0x470   : > { %v1609_v31 = vunpack.i.h.bf16 %v1607_v26  ;;  %v1608_v32 = vunpack.i.l.bf16 %v1607_v26  ;;  %v1604_v33 = vunpack.i.h.bf16 %v1602_v29  ;;  %v1603_v34 = vunpack.i.l.bf16 %v1602_v29  ;;  %1127 = vmatprep.subr.bf16.mxu1 %v1084_v23 }
 0x472   : > { %v1086_v36 = vpack.c.bf16 %v1609_v31, %v1604_v33  ;;  %1128 = vmatpush1.bf16.msra.mxu1 %v1083_v30  ;;  %v825_v37 = vsel %vm2240_vm7, %v1603_v34, %v1604_v33  ;;  %v832_v56 = vsel %vm2241_vm8, %v1608_v32, %v1609_v31  ;;  %vm2252_vm7 = vcmask 646144  }
 0x473   : > { %v1617_v35 = vpop.permute.xlu0 %1616  ;;  %v1612_v38 = vpop.permute.xlu1 %1611  ;;  %v1085_v39 = vpack.c.bf16 %v832_v56, %v825_v37  ;;  %vm2253_vm8 = vmmov %vm2252_vm7 }
 0x474   : > { %v1619_v40 = vunpack.i.h.bf16 %v1617_v35  ;;  %v1618_v41 = vunpack.i.l.bf16 %v1617_v35  ;;  %v1614_v42 = vunpack.i.h.bf16 %v1612_v38  ;;  %v1613_v43 = vunpack.i.l.bf16 %v1612_v38  ;;  %1129 = vmatprep.subr.bf16.mxu1 %v1086_v36 }
 0x476   : > { %v1088_v44 = vpack.c.bf16 %v2089_v46, %v1614_v42  ;;  %1130 = vmatpush1.bf16.msra.mxu1 %v1085_v39  ;;  %v839_v45 = vsel %vm2242_vm9, %v1613_v43, %v1614_v42  ;;  %v860_v58 = vsel %vm2243_vm10, %v1618_v41, %v1619_v40  ;;  %v1090_v0 = vpack.c.bf16 %v1619_v40, %v2113_v63  ;;  %vm2254_vm9 = vmmov %vm2252_vm7 }
 0x477   : > { %v1627_v49 = vpop.permute.xlu0 %1626  ;;  %v1622_v51 = vpop.permute.xlu1 %1621  ;;  %v1087_v57 = vpack.c.bf16 %v2111_v50, %v839_v45  ;;  %v1089_v4 = vpack.c.bf16 %v860_v58, %v2128_v3  ;;  %vm2255_vm10 = vmmov %vm2252_vm7 }
 0x478   : > { %v1629_v59 = vunpack.i.h.bf16 %v1627_v49  ;;  %v1628_v60 = vunpack.i.l.bf16 %v1627_v49  ;;  %v1624_v62 = vunpack.i.h.bf16 %v1622_v51  ;;  %v1623_v53 = vunpack.i.l.bf16 %v1622_v51  ;;  %1131 = vmatprep.subr.bf16.mxu1 %v1088_v44 }
 0x47a   : > { %1132 = vmatpush1.bf16.msra.mxu1 %v1087_v57  ;;  %v871_v1 = vsel %vm2244_vm11, %v1623_v53, %v1624_v62  ;;  %v881_v46 = vsel %vm2245_vm13, %v1628_v60, %v1629_v59  ;;  %v870_v11 = vsel %vm2246_vm15, %v2060_v54, %v1623_v53  ;;  %v880_v63 = vsel %vm2247_vm1, %v2091_v47, %v1628_v60  ;;  %vm2256_vm11 = vmmov %vm2252_vm7 }
 0x47b   : > { %1133 = vmatprep.subr.bf16.mxu1 %v1090_v0  ;;  %v1637_v55 = vpop.permute.xlu0 %1636  ;;  %v1632_v52 = vpop.permute.xlu1 %1631  ;;  %v1092_v50 = vpack.c.bf16 %v881_v46, %v871_v1  ;;  %v1091_v14 = vpack.c.bf16 %v880_v63, %v870_v11  ;;  %vm2257_vm13 = vmmov %vm2252_vm7 }
 0x47c   : > { %v1639_v5 = vunpack.i.h.bf16 %v1637_v55  ;;  %v1638_v6 = vunpack.i.l.bf16 %v1637_v55  ;;  %v1634_v7 = vunpack.i.h.bf16 %v1632_v52  ;;  %v1633_v10 = vunpack.i.l.bf16 %v1632_v52  ;;  %vm2258_vm15 = vmmov %vm2252_vm7 }
 0x47d   : > { %vm2259_vm1 = vmmov %vm2252_vm7 }
 0x47e   : > { %1134 = vmatpush1.bf16.msra.mxu1 %v1089_v4  ;;  %v891_v12 = vsel %vm2248_vm3, %v1633_v10, %v1634_v7  ;;  %v901_v13 = vsel %vm2249_vm4, %v1638_v6, %v1639_v5  ;;  %v890_v3 = vsel %vm2250_vm5, %v2093_v48, %v1633_v10  ;;  %v900_v15 = vsel %vm2251_vm6, %v2104_v61, %v1638_v6  ;;  %vm2260_vm3 = vmmov %vm2259_vm1 }
 0x47f   : > { %1135 = vmatprep.subr.bf16.mxu1 %v1092_v50  ;;  %v1094_v28 = vpack.c.bf16 %v901_v13, %v891_v12  ;;  %v1093_v54 = vpack.c.bf16 %v900_v15, %v890_v3  ;;  %v1642_v16 = vpop.permute.xlu1 %1641  ;;  %vm2261_vm4 = vmmov %vm2259_vm1 }
 0x480   : > { %v1644_v47 = vunpack.i.h.bf16 %v1642_v16  ;;  %v1643_v17 = vunpack.i.l.bf16 %v1642_v16  ;;  %vm2262_vm5 = vmmov %vm2259_vm1 }
 0x481   : > { %vm2263_vm6 = vmmov %vm2259_vm1 }
 0x482   : > { %1136 = vmatpush1.bf16.msra.mxu1 %v1091_v14  ;;  %v1036_v24 = vsel %vm2252_vm7, %v1643_v17, %v1644_v47  ;;  %vm2264_vm7 = vmmov %vm2259_vm1 }
 0x483   : > { %1137 = vmatprep.subr.bf16.mxu1 %v1094_v28 }
 0x486   : > { %1138 = vmatpush1.bf16.msra.mxu1 %v1093_v54 }
 0x4c3   : > { %v1647_v18 = vpop.permute.xlu0 %1646  ;;  %v1652_v20 = vpop.permute.xlu1 %1651 }
 0x4c4   : > { %v1649_v21 = vunpack.i.h.bf16 %v1647_v18  ;;  %v1648_v19 = vunpack.i.l.bf16 %v1647_v18  ;;  %v1654_v22 = vunpack.i.h.bf16 %v1652_v20  ;;  %v1653_v23 = vunpack.i.l.bf16 %v1652_v20 }
 0x4c6   : > { %v1038_v48 = vsel %vm2253_vm8, %v1648_v19, %v1649_v21  ;;  %v1035_v25 = vsel %vm2254_vm9, %v1653_v23, %v1643_v17  ;;  %v1037_v61 = vsel %vm2255_vm10, %v1654_v22, %v1648_v19  ;;  %vm2265_vm8 = vmmov %vm2259_vm1 }
 0x4c7   : > { %v1657_v26 = vpop.permute.xlu0 %1656  ;;  %v1662_v29 = vpop.permute.xlu1 %1661  ;;  %v1096_v30 = vpack.c.bf16 %v1038_v48, %v1036_v24  ;;  %v1095_v31 = vpack.c.bf16 %v1037_v61, %v1035_v25  ;;  %vm2266_vm9 = vmmov %vm2259_vm1 }
 0x4c8   : > { %v1659_v32 = vunpack.i.h.bf16 %v1657_v26  ;;  %v1658_v33 = vunpack.i.l.bf16 %v1657_v26  ;;  %v1664_v34 = vunpack.i.h.bf16 %v1662_v29  ;;  %v1663_v36 = vunpack.i.l.bf16 %v1662_v29  ;;  %vm2267_vm10 = vmmov %vm2259_vm1 }
 0x4c9   : > { %1139 = vmatprep.subr.bf16.mxu1 %v1096_v30 }
 0x4ca   : > { %1140 = vmatpush1.bf16.msra.mxu1 %v1095_v31  ;;  %v1040_v37 = vsel %vm2256_vm11, %v1658_v33, %v1659_v32  ;;  %v1042_v56 = vsel %vm2257_vm13, %v1663_v36, %v1664_v34  ;;  %vm2268_vm11 = vmmov %vm2259_vm1 }
 0x4cb   : > { %v1667_v35 = vpop.permute.xlu0 %1666  ;;  %v1672_v38 = vpop.permute.xlu1 %1671  ;;  %v1098_v39 = vpack.c.bf16 %v1042_v56, %v1040_v37  ;;  %vm2269_vm13 = vmmov %vm2259_vm1 }
 0x4cc   : > { %v1669_v40 = vunpack.i.h.bf16 %v1667_v35  ;;  %v1668_v41 = vunpack.i.l.bf16 %v1667_v35  ;;  %v1674_v42 = vunpack.i.h.bf16 %v1672_v38  ;;  %v1673_v43 = vunpack.i.l.bf16 %v1672_v38 }
 0x4cd   : > { %1141 = vmatprep.subr.bf16.mxu1 %v1098_v39  ;;  %v1300_v38 = vcombine.low %v2120_v2, %v2120_v2 }
 0x4ce   : > { %v1039_v44 = vsel %vm2258_vm15, %v1668_v41, %v1658_v33  ;;  %v1041_v45 = vsel %vm2259_vm1, %v1669_v40, %v1663_v36  ;;  %v1044_v53 = vsel %vm2260_vm3, %v1673_v43, %v1674_v42  ;;  %vm2270_vm15 = vmmov %vm2259_vm1 }
 0x4cf   : > { %v1677_v49 = vpop.permute.xlu0 %1676  ;;  %v1682_v51 = vpop.permute.xlu1 %1681  ;;  %v1097_v57 = vpack.c.bf16 %v1041_v45, %v1039_v44  ;;  %vm2271_vm3 = vmmov %vm2259_vm1 }
 0x4d0   : > { %v1679_v58 = vunpack.i.h.bf16 %v1677_v49  ;;  %v1678_v59 = vunpack.i.l.bf16 %v1677_v49  ;;  %v1684_v60 = vunpack.i.h.bf16 %v1682_v51  ;;  %v1683_v62 = vunpack.i.l.bf16 %v1682_v51 }
 0x4d1   : > { %1142 = vmatpush1.bf16.msra.mxu1 %v1097_v57 }
 0x4d2   : > { %v1046_v0 = vsel %vm2261_vm4, %v1678_v59, %v1679_v58  ;;  %v1043_v1 = vsel %vm2262_vm5, %v1683_v62, %v1673_v43  ;;  %v1045_v46 = vsel %vm2263_vm6, %v1684_v60, %v1678_v59  ;;  %vm2272_vm4 = vmmov %vm2259_vm1  ;;  %vm2273_vm5 = vcmask 1043456  }
 0x4d3   : > { %v1687_v55 = vpop.permute.xlu0 %1686  ;;  %v1692_v52 = vpop.permute.xlu1 %1691  ;;  %v1100_v4 = vpack.c.bf16 %v1046_v0, %v1044_v53  ;;  %v1099_v50 = vpack.c.bf16 %v1045_v46, %v1043_v1  ;;  %vm2274_vm6 = vmmov %vm2273_vm5 }
 0x4d4   : > { %v1689_v5 = vunpack.i.h.bf16 %v1687_v55  ;;  %v1688_v6 = vunpack.i.l.bf16 %v1687_v55  ;;  %v1694_v7 = vunpack.i.h.bf16 %v1692_v52  ;;  %v1693_v10 = vunpack.i.l.bf16 %v1692_v52 }
 0x4d5   : > { %1143 = vmatprep.subr.bf16.mxu1 %v1100_v4 }
 0x4d6   : > { %1144 = vmatpush1.bf16.msra.mxu1 %v1099_v50  ;;  %v1048_v11 = vsel %vm2264_vm7, %v1688_v6, %v1689_v5  ;;  %v1050_v63 = vsel %vm2265_vm8, %v1693_v10, %v1694_v7 }
 0x4d7   : > { %v1697_v12 = vpop.permute.xlu0 %1696  ;;  %v1702_v13 = vpop.permute.xlu1 %1701  ;;  %v1102_v28 = vpack.c.bf16 %v1050_v63, %v1048_v11 }
 0x4d8   : > { %v1699_v14 = vunpack.i.h.bf16 %v1697_v12  ;;  %v1698_v3 = vunpack.i.l.bf16 %v1697_v12  ;;  %v1704_v15 = vunpack.i.h.bf16 %v1702_v13  ;;  %v1703_v54 = vunpack.i.l.bf16 %v1702_v13 }
 0x4d9   : > { %1145 = vmatprep.subr.bf16.mxu1 %v1102_v28 }
 0x4da   : > { %v1047_v16 = vsel %vm2266_vm9, %v1698_v3, %v1688_v6  ;;  %v1049_v47 = vsel %vm2267_vm10, %v1699_v14, %v1693_v10  ;;  %v1052_v24 = vsel %vm2268_vm11, %v1703_v54, %v1704_v15 }
 0x4db   : > { %v1707_v17 = vpop.permute.xlu0 %1706  ;;  %v1712_v18 = vpop.permute.xlu1 %1711  ;;  %v1101_v20 = vpack.c.bf16 %v1049_v47, %v1047_v16 }
 0x4dc   : > { %v1709_v21 = vunpack.i.h.bf16 %v1707_v17  ;;  %v1708_v19 = vunpack.i.l.bf16 %v1707_v17  ;;  %v1714_v22 = vunpack.i.h.bf16 %v1712_v18  ;;  %v1713_v23 = vunpack.i.l.bf16 %v1712_v18 }
 0x4dd   : > { %1146 = vmatpush1.bf16.msra.mxu1 %v1101_v20 }
 0x4de   : > { %v1054_v48 = vsel %vm2269_vm13, %v1708_v19, %v1709_v21  ;;  %v1051_v25 = vsel %vm2270_vm15, %v1713_v23, %v1703_v54  ;;  %v1053_v61 = vsel %vm2259_vm1, %v1714_v22, %v1708_v19 }
 0x4df   : > { %v1717_v26 = vpop.permute.xlu0 %1716  ;;  %v1104_v29 = vpack.c.bf16 %v1054_v48, %v1052_v24  ;;  %v1103_v30 = vpack.c.bf16 %v1053_v61, %v1051_v25  ;;  %v1034_v33 = vpop.permute.xlu1 %1033 }
 0x4e0   : > { %v1719_v31 = vunpack.i.h.bf16 %v1717_v26  ;;  %v1718_v32 = vunpack.i.l.bf16 %v1717_v26 }
 0x4e1   : > { %1147 = vmatprep.subr.bf16.mxu1 %v1104_v29 }
 0x4e2   : > { %v1056_v34 = vsel %vm2271_vm3, %v1719_v31, %v1034_v33  ;;  %1148 = vmatpush1.bf16.msra.mxu1 %v1103_v30  ;;  %v1055_v36 = vsel %vm2272_vm4, %v1718_v32, %v1719_v31 }
 0x4e3   : > { %v1106_v37 = vpack.c.bf16 %v1056_v34, %v1056_v34  ;;  %v1105_v56 = vpack.c.bf16 %v1055_v36, %v1055_v36 }
 0x4e5   : > { %1302 = vmatprep.subr.msk.bf16.mxu1 %vm2273_vm5, %v1106_v37  ;;  %v1118_v35 = vsel %vm2274_vm6, %v1105_v56, 0 }
 0x4e6   : > { %1150 = vmatpush1.bf16.msra.mxu1 %v1118_v35 }
 0x4e9   : > { %1156 = vmatmul.mubr.bf16.vlgmr.msra.gmra.mrb[0].mxu1 %v1300_v38 }
 0x5bc   : > { %v1157_v39 = vpop.f32.mrb[0].mxu1 }
 0x5bd   : > { %v1159_v40 = vpop.f32.mrb[1].mxu1  ;;  %v1164_v43 = vmul.f32 %v1157_v39, %v1982_v9 }
 0x5be   : > { %v1165_v41 = vmul.f32 %v1159_v40, %v1980_v8  ;;  %v1161_v42 = vpop.f32.mrb[2].mxu1 }
 0x5bf   : > { %v1162_v44 = vpop.f32.mrb[3].mxu1 }
 0x5c0   : > { %v1166_v45 = vsel %vm671_vm12, %v1165_v41, 0.0 }
 0x5c1   : > { %v1167_v49 = vadd.f32 %v1166_v45, %v1164_v43 }
 0x5c3   : > { %1168 = vadd.xlane.f32.xlu0 %v1167_v49 }
 0x650   : > { %v1169_v51 = vpop.xlane.xlu0 %1168 }
 0x651   : > { %v1170_v57 = vmul.f32 0.015625, %v1169_v51 }
 0x653   : > { %v1171_v58 = vsub.f32 %v1157_v39, %v1170_v57  ;;  %v1172_v59 = vsub.f32 %v1159_v40, %v1170_v57 }
 0x655   : > { %v1173_v2 = vmul.f32 %v1171_v58, %v1982_v9  ;;  %v1174_v60 = vmul.f32 %v1172_v59, %v1980_v8 }
 0x657   : > { %v1176_v62 = vmul.f32 %v1174_v60, %v1174_v60  ;;  %v1175_v53 = vmul.f32 %v1173_v2, %v1173_v2 }
 0x659   : > { %v1177_v0 = vsel %vm671_vm12, %v1176_v62, 0.0 }
 0x65a   : > { %v1178_v1 = vadd.f32 %v1177_v0, %v1175_v53 }
 0x65c   : > { %1179 = vadd.xlane.f32.xlu1 %v1178_v1 }
 0x6e9   : > { %v1180_v46 = vpop.xlane.xlu1 %1179 }
 0x6ea   : > { %v1181_v55 = vmul.f32 0.015625, %v1180_v46 }
 0x6ec   : > { %v1182_v52 = vadd.f32 1e-05, %v1181_v55 }
 0x6ee   : > { %1726 = vrsqrt.f32 %v1182_v52 }
 0x6f8   : > { %v1727_v9 = vpop.eup %1726 }
 0x6f9   : > { %v1185_v8 = vmul.f32 %v1727_v9, %v1174_v60  ;;  %v1184_v4 = vmul.f32 %v1727_v9, %v1173_v2 }
 0x6fb   : > { %vm1187_vm7 = vcmp.ge.f32.partialorder %v1185_v8, 0.0  ;;  %v1189_v50 = vmul.f32 0.01, %v1185_v8  ;;  %vm1186_vm12 = vcmp.ge.f32.partialorder %v1184_v4, 0.0  ;;  %v1188_v5 = vmul.f32 0.01, %v1184_v4 }
 0x6fd   : > { %v1191_v6 = vsel %vm1187_vm7, %v1185_v8, %v1189_v50  ;;  %v1190_v7 = vsel %vm1186_vm12, %v1184_v4, %v1188_v5 }
 0x6fe   : > { %1199 = vrot.lane.b32.xlu1 %v1191_v6, %s1760_s26  ;;  %1197 = vrot.lane.b32.xlu0 %v1190_v7, %s1760_s26 }
 0x770   : > { %v1200_v10 = vpop.permute.xlu1 %1199  ;;  %v1198_v11 = vpop.permute.xlu0 %1197 }
 0x771   : > { %1207 = vst.msk [vmem:[%s291_s16 + $0x10] sm:$0xff] %vm779_vm0, %v1200_v10  ;;  %v1201_v27 = vsel %vm771_vm14, %v1198_v11, %v1200_v10 }
 0x772   : > { %1205 = vst.msk [vmem:[%s291_s16] sm:$0xff] %vm776_vm2, %v1198_v11  ;;  %1206 = vst [vmem:[%s291_s16 + $0x8] sm:$0xff] %v1201_v27 }
 0x773 PF: > { %s16_s21 = sadd.s32 1, %s1734_s21  }
 0x774   : > { %p13_p4 = scmp.ge.s32.totalorder %s16_s21, 4  }
 0x776   :  { %15 = sbr.rel (!%p13_p4) target bundleno = 1 (0x1), region = 80 }

</bundles_post_ra>
